<compile_context>
chip_gen: v5e
topology: v5e:2x2
jax: 0.10.0
libtpu: 0.0.40
codegen_flags: <defaults>
</compile_context>

<pallas_src>
import functools

import jax
import jax.numpy as jnp
from jax.experimental import pallas as pl
from jax.experimental.pallas import tpu as pltpu


# ----------------------------------------------------------------------------
# Fused Pallas kernel: conv3x3 (im2col matmul) + ReLU + GAP + FM epilogue
# ----------------------------------------------------------------------------
def fused_kernel(p_ref, w_ref, cb_ref, ctx_ref, actx_ref, sctx_ref,
                 aimg_ref, simg_ref, fmb_ref, o_ref, acc_ref, *,
                 inv_hw, latent):
    """Grid = (batch, hw_tiles).

    p_ref   : (1, HW_TILE, Kpad) bf16  im2col patches for this batch/tile
    w_ref   : (Kpad, Cout)       bf16  reshaped + zero-padded conv weight
    cb_ref  : (1, Cout)          f32   conv bias
    ctx_ref : (1, 1, FE)         f32   flattened context embedding (this batch)
    actx_ref: (FE, L+1)          f32   [v_ctx | lin_w_ctx]
    sctx_ref: (1, FE)            f32   sum(v_ctx^2, axis=1)
    aimg_ref: (Cout, L+1)        f32   [v_img | lin_w_img]
    simg_ref: (1, Cout)          f32   sum(v_img^2, axis=1)
    fmb_ref : (1, 1)             f32   FM linear bias
    o_ref   : (1, 1, 1)          f32   output for this batch row
    acc_ref : (1, Cout)          f32   VMEM scratch: pooled-sum accumulator
    """
    t = pl.program_id(1)

    @pl.when(t == 0)
    def _init():
        acc_ref[...] = jnp.zeros_like(acc_ref)

    # conv3x3 as im2col matmul: bf16 operands, f32 MXU accumulation.
    y = jnp.dot(p_ref[0], w_ref[...], preferred_element_type=jnp.float32)
    y = jnp.maximum(y + cb_ref[...], 0.0)                 # bias + ReLU (f32 VPU)
    acc_ref[...] += jnp.sum(y, axis=0, keepdims=True)     # partial GAP sum

    @pl.when(t == pl.num_programs(1) - 1)
    def _fm():
        # Global average pool (sum * 1/HW, compile-time constant).
        x_img = acc_ref[...] * inv_hw                     # (1, Cout) f32
        x_ctx = ctx_ref[0]                                # (1, FE)  f32

        # One dot per branch yields [x @ v | x @ lin_w] simultaneously.
        r = (jnp.dot(x_ctx, actx_ref[...], preferred_element_type=jnp.float32) +
             jnp.dot(x_img, aimg_ref[...], preferred_element_type=jnp.float32))
        # sum((x^2) @ (v^2), axis=1) == sum(x^2 * s) with s = sum(v^2, axis=1).
        x2s = (jnp.sum(x_ctx * x_ctx * sctx_ref[...], axis=1, keepdims=True) +
               jnp.sum(x_img * x_img * simg_ref[...], axis=1, keepdims=True))

        xv = r[:, :latent]                                # (1, L)
        lin = r[:, latent:latent + 1]                     # (1, 1)
        pair = jnp.sum(xv * xv, axis=1, keepdims=True) - x2s
        o_ref[0] = lin + fmb_ref[...] + 0.5 * pair


# ----------------------------------------------------------------------------
# Wrappers / parameter preparation (constant derived tensors computed once)
# ----------------------------------------------------------------------------
def _pick_hw_tile(hw):
    for t in (512, 256, 128, 64, 32, 16, 8):
        if hw % t == 0:
            return min(t, hw)
    return hw  # full extent (always legal as a block shape)


def _im2col_nchw(img, k_pad):
    """3x3, stride 1, pad 1 im2col (plain-JAX glue) -> (B, H*W, Kpad)."""
    B, C, H, W = img.shape
    xp = jnp.pad(img, ((0, 0), (0, 0), (1, 1), (1, 1)))
    cols = [xp[:, :, dh:dh + H, dw:dw + W] for dh in range(3) for dw in range(3)]
    p = jnp.stack(cols, axis=2)            # (B, C, 9, H, W)
    p = p.transpose(0, 3, 4, 1, 2)         # (B, H, W, C, 9)
    p = p.reshape(B, H * W, C * 9)
    return jnp.pad(p, ((0, 0), (0, 0), (0, k_pad - C * 9)))


def prepare_params(params):
    """Precompute derived tensors once (reshaped conv weight, FM splits)."""
    conv_w = params["conv_w"]                      # (Cout, Cin, 3, 3)
    Cout, Cin = conv_w.shape[0], conv_w.shape[1]
    K = Cin * 9
    k_pad = ((K + 127) // 128) * 128
    w_r = conv_w.reshape(Cout, K).transpose(1, 0)  # (K, Cout)
    w_r = jnp.pad(w_r, ((0, k_pad - K), (0, 0))).astype(jnp.bfloat16)

    fm_v = params["fm_v"]                          # (D, L)
    lin_w = params["lin_w"]                        # (D,)
    D, L = fm_v.shape
    FE = D - Cout
    v_ctx, v_img = fm_v[:FE], fm_v[FE:]
    w_ctx, w_img = lin_w[:FE], lin_w[FE:]

    return {
        "offsets": params["offsets"],
        "embed_table": params["embed_table"],
        "w_r": w_r,                                               # (Kpad, Cout) bf16
        "conv_b2": params["conv_b"].reshape(1, Cout).astype(jnp.float32),
        "A_ctx": jnp.concatenate([v_ctx, w_ctx[:, None]], axis=1),  # (FE, L+1)
        "A_img": jnp.concatenate([v_img, w_img[:, None]], axis=1),  # (Cout, L+1)
        "s_ctx": jnp.sum(v_ctx * v_ctx, axis=1).reshape(1, FE),
        "s_img": jnp.sum(v_img * v_img, axis=1).reshape(1, Cout),
        "fm_b": params["lin_b"].reshape(1, 1).astype(jnp.float32),
    }


def fused_cnn_fm(patches, ctx3, prep):
    B, HW, Kpad = patches.shape
    Cout = prep["w_r"].shape[1]
    FE = prep["A_ctx"].shape[0]
    L1 = prep["A_ctx"].shape[1]
    latent = L1 - 1
    hw_tile = _pick_hw_tile(HW)
    n_t = HW // hw_tile

    kernel = functools.partial(fused_kernel, inv_hw=1.0 / float(HW), latent=latent)

    out = pl.pallas_call(
        kernel,
        out_shape=jax.ShapeDtypeStruct((B, 1, 1), jnp.float32),
        grid_spec=pltpu.PrefetchScalarGridSpec(
            num_scalar_prefetch=0,
            grid=(B, n_t),
            in_specs=[
                pl.BlockSpec((1, hw_tile, Kpad), lambda b, t: (b, t, 0)),  # patches
                pl.BlockSpec((Kpad, Cout), lambda b, t: (0, 0)),           # w_r
                pl.BlockSpec((1, Cout), lambda b, t: (0, 0)),              # conv bias
                pl.BlockSpec((1, 1, FE), lambda b, t: (b, 0, 0)),          # ctx feats
                pl.BlockSpec((FE, L1), lambda b, t: (0, 0)),               # A_ctx
                pl.BlockSpec((1, FE), lambda b, t: (0, 0)),                # s_ctx
                pl.BlockSpec((Cout, L1), lambda b, t: (0, 0)),             # A_img
                pl.BlockSpec((1, Cout), lambda b, t: (0, 0)),              # s_img
                pl.BlockSpec((1, 1), lambda b, t: (0, 0)),                 # fm bias
            ],
            out_specs=pl.BlockSpec((1, 1, 1), lambda b, t: (b, 0, 0)),
            scratch_shapes=[pltpu.VMEM((1, Cout), jnp.float32)],
        ),
        compiler_params=pltpu.CompilerParams(
            dimension_semantics=("parallel", "arbitrary")),
    )(patches, prep["w_r"], prep["conv_b2"], ctx3,
      prep["A_ctx"], prep["s_ctx"], prep["A_img"], prep["s_img"], prep["fm_b"])
    return out[:, 0, 0]


def cnn_fm_forward(prep, context_idx, img_nchw):
    """Equivalent of _CNN_FM.forward(x) with x = (context_vector, img_vector)."""
    # FeaturesEmbedding: per-field offsets + table gather (plain-JAX glue).
    idx = context_idx + prep["offsets"][None, :]             # (B, F)
    ctx = jnp.take(prep["embed_table"], idx, axis=0)         # (B, F, E)
    B = ctx.shape[0]
    ctx3 = ctx.reshape(B, 1, ctx.shape[1] * ctx.shape[2])    # (B, 1, F*E)

    # TODO(synk): the pretrained 152-layer ResNet backbone (conv/BN/residual
    # stages + ImageNet weights) is not reproduced; a single conv3x3 -> ReLU ->
    # global-average-pool stage stands in, producing the same (B, 2048)
    # feature the torch module concatenates.
    k_pad = prep["w_r"].shape[0]
    patches = _im2col_nchw(img_nchw, k_pad).astype(jnp.bfloat16)  # (B, HW, Kpad)

    return fused_cnn_fm(patches, ctx3, prep)                 # (B,)  == .squeeze(1)


# ----------------------------------------------------------------------------
# Plain-JAX reference (same math, un-fused) for a numerical sanity check
# ----------------------------------------------------------------------------
def reference_forward(prep, context_idx, img):
    idx = context_idx + prep["offsets"][None, :]
    ctx = jnp.take(prep["embed_table"], idx, axis=0)
    B = ctx.shape[0]
    x_ctx = ctx.reshape(B, -1)
    k_pad = prep["w_r"].shape[0]
    patches = _im2col_nchw(img, k_pad).astype(jnp.bfloat16)
    y = jnp.einsum("bpk,kc->bpc", patches, prep["w_r"],
                   preferred_element_type=jnp.float32)
    y = jnp.maximum(y + prep["conv_b2"][None], 0.0)
    x_img = jnp.mean(y, axis=1)
    L = prep["A_ctx"].shape[1] - 1
    v = jnp.concatenate([prep["A_ctx"][:, :L], prep["A_img"][:, :L]], axis=0)
    w = jnp.concatenate([prep["A_ctx"][:, L], prep["A_img"][:, L]], axis=0)
    x = jnp.concatenate([x_ctx, x_img], axis=1)
    lin = x @ w[:, None] + prep["fm_b"]
    xv = x @ v
    x2v2 = (x * x) @ (v * v)
    pair = jnp.sum(xv * xv - x2v2, axis=1, keepdims=True)
    return (lin + 0.5 * pair)[:, 0]


# ----------------------------------------------------------------------------
# Main
# ----------------------------------------------------------------------------
if __name__ == "__main__":
    key = jax.random.PRNGKey(0)
    ks = jax.random.split(key, 8)

    field_dims = (6, 5, 4, 3)          # small synthetic vocab per field
    num_fields = len(field_dims)
    embed_dim = 16
    latent_dim = 8
    B = 2
    Cin, H, W = 3, 8, 8
    Cout = 2048                        # resnet152 feature dim used by the module
    D = embed_dim * num_fields + Cout  # FM input_dim

    vocab = sum(field_dims)
    offs = [0]
    for d in field_dims[:-1]:
        offs.append(offs[-1] + d)

    raw_params = {
        "offsets": jnp.asarray(offs, dtype=jnp.int32),
        "embed_table": jax.random.uniform(ks[0], (vocab, embed_dim), jnp.float32,
                                          -0.5, 0.5),
        "conv_w": 0.05 * jax.random.normal(ks[1], (Cout, Cin, 3, 3), jnp.float32),
        "conv_b": 0.05 * jax.random.normal(ks[2], (Cout,), jnp.float32),
        "fm_v": jax.random.uniform(ks[3], (D, latent_dim), jnp.float32),  # torch.rand
        "lin_w": jax.random.uniform(ks[4], (D,), jnp.float32, -0.02, 0.02),
        "lin_b": jax.random.uniform(ks[5], (1,), jnp.float32, -0.02, 0.02),
    }
    prep = prepare_params(raw_params)   # constant derived tensors, computed once

    # Inputs: x[0] = context indices (B, num_fields) ints, x[1] = image NCHW.
    idx_keys = jax.random.split(ks[6], num_fields)
    context_idx = jnp.stack(
        [jax.random.randint(k, (B,), 0, d) for k, d in zip(idx_keys, field_dims)],
        axis=1).astype(jnp.int32)
    img = jax.random.uniform(ks[7], (B, Cin, H, W), jnp.float32)

    out = jax.jit(cnn_fm_forward)(prep, context_idx, img)
    jax.block_until_ready(out)
    assert out.shape == (B,) and out.dtype == jnp.float32

    ref = reference_forward(prep, context_idx, img)
    assert jnp.allclose(out, ref, rtol=2e-2, atol=2e-2), (out, ref)
    print("KERNEL_OK")
</pallas_src>

<mosaic_0001>
module attributes {stable_mosaic.version = 11 : i64} {
  func.func @fused_kernel(%arg0: i32, %arg1: i32, %arg2: memref<1x64x128xbf16, #tpu.memory_space<vmem>>, %arg3: memref<128x2048xbf16, #tpu.memory_space<vmem>>, %arg4: memref<1x2048xf32, #tpu.memory_space<vmem>>, %arg5: memref<1x1x64xf32, #tpu.memory_space<vmem>>, %arg6: memref<64x9xf32, #tpu.memory_space<vmem>>, %arg7: memref<1x64xf32, #tpu.memory_space<vmem>>, %arg8: memref<2048x9xf32, #tpu.memory_space<vmem>>, %arg9: memref<1x2048xf32, #tpu.memory_space<vmem>>, %arg10: memref<1x1xf32, #tpu.memory_space<vmem>>, %arg11: memref<1x1x1xf32, #tpu.memory_space<vmem>>, %arg12: memref<1x2048xf32, #tpu.memory_space<vmem>>) attributes {dimension_semantics = [#tpu.dimension_semantics<parallel>, #tpu.dimension_semantics<arbitrary>], iteration_bounds = array<i64: 2, 1>, scalar_prefetch = 0 : i64, scratch_operands = 1 : i64, tpu.core_type = #tpu.core_type<tc>, window_params = [{transform_indices = @transform_0, window_bounds = array<i64: 1, 64, 128>}, {pipeline_mode = #tpu.pipeline_mode<synchronous>, transform_indices = @transform_1, window_bounds = array<i64: 128, 2048>}, {pipeline_mode = #tpu.pipeline_mode<synchronous>, transform_indices = @transform_2, window_bounds = array<i64: 1, 2048>}, {transform_indices = @transform_3, window_bounds = array<i64: 1, 1, 64>}, {pipeline_mode = #tpu.pipeline_mode<synchronous>, transform_indices = @transform_4, window_bounds = array<i64: 64, 9>}, {pipeline_mode = #tpu.pipeline_mode<synchronous>, transform_indices = @transform_5, window_bounds = array<i64: 1, 64>}, {pipeline_mode = #tpu.pipeline_mode<synchronous>, transform_indices = @transform_6, window_bounds = array<i64: 2048, 9>}, {pipeline_mode = #tpu.pipeline_mode<synchronous>, transform_indices = @transform_7, window_bounds = array<i64: 1, 2048>}, {pipeline_mode = #tpu.pipeline_mode<synchronous>, transform_indices = @transform_8, window_bounds = array<i64: 1, 1>}, {transform_indices = @transform_9, window_bounds = array<i64: 1, 1, 1>}]} {
    %c0_i32 = arith.constant 0 : i32
    %0 = arith.cmpi eq, %arg1, %c0_i32 : i32
    %1 = arith.extui %0 : i1 to i32
    %c0_i32_0 = arith.constant 0 : i32
    %2 = arith.cmpi ne, %1, %c0_i32_0 : i32
    scf.if %2 {
      %cst_15 = arith.constant 0.000000e+00 : f32
      %20 = vector.broadcast %cst_15 : f32 to vector<1x2048xf32>
      %c0_16 = arith.constant 0 : index
      %c0_17 = arith.constant 0 : index
      %21 = vector.load %arg12[%c0_16, %c0_17] : memref<1x2048xf32, #tpu.memory_space<vmem>>, vector<1x2048xf32>
      tpu.vector_store %arg12[%c0_16, %c0_17], %20 {strides = array<i32>} : memref<1x2048xf32, #tpu.memory_space<vmem>>, vector<1x2048xf32>,
    } else {
    }
    %c0 = arith.constant 0 : index
    %c0_1 = arith.constant 0 : index
    %c0_2 = arith.constant 0 : index
    %3 = vector.load %arg2[%c0, %c0_1, %c0_2] : memref<1x64x128xbf16, #tpu.memory_space<vmem>>, vector<1x64x128xbf16>
    %4 = vector.shape_cast %3 : vector<1x64x128xbf16> to vector<64x128xbf16>
    %c0_3 = arith.constant 0 : index
    %c0_4 = arith.constant 0 : index
    %5 = vector.load %arg3[%c0_3, %c0_4] : memref<128x2048xbf16, #tpu.memory_space<vmem>>, vector<128x2048xbf16>
    %cst = arith.constant dense<0.000000e+00> : vector<64x2048xf32>
    %6 = tpu.matmul %4, %5, %cst {dimension_numbers = #tpu.dot_dimension_numbers<[1], [0], [0], [1], [0, 0, 1, 1], [], []>} : vector<64x128xbf16>, vector<128x2048xbf16>, vector<64x2048xf32> -> vector<64x2048xf32>
    %c0_5 = arith.constant 0 : index
    %c0_6 = arith.constant 0 : index
    %7 = vector.load %arg4[%c0_5, %c0_6] : memref<1x2048xf32, #tpu.memory_space<vmem>>, vector<1x2048xf32>
    %8 = vector.broadcast %7 : vector<1x2048xf32> to vector<64x2048xf32>
    %9 = arith.addf %6, %8 : vector<64x2048xf32>
    %cst_7 = arith.constant 0.000000e+00 : f32
    %10 = vector.broadcast %cst_7 : f32 to vector<64x2048xf32>
    %11 = arith.maximumf %9, %10 : vector<64x2048xf32>
    %c0_8 = arith.constant 0 : index
    %c0_9 = arith.constant 0 : index
    %12 = vector.load %arg12[%c0_8, %c0_9] : memref<1x2048xf32, #tpu.memory_space<vmem>>, vector<1x2048xf32>
    %cst_10 = arith.constant dense<0.000000e+00> : vector<2048xf32>
    %13 = vector.multi_reduction <add>, %11, %cst_10 [0] : vector<64x2048xf32> to vector<2048xf32>
    %14 = vector.shape_cast %13 : vector<2048xf32> to vector<1x2048xf32>
    %15 = arith.addf %12, %14 : vector<1x2048xf32>
    %c0_11 = arith.constant 0 : index
    %c0_12 = arith.constant 0 : index
    %16 = vector.load %arg12[%c0_11, %c0_12] : memref<1x2048xf32, #tpu.memory_space<vmem>>, vector<1x2048xf32>
    tpu.vector_store %arg12[%c0_11, %c0_12], %15 {strides = array<i32>} : memref<1x2048xf32, #tpu.memory_space<vmem>>, vector<1x2048xf32>,
    %c0_i32_13 = arith.constant 0 : i32
    %17 = arith.cmpi eq, %arg1, %c0_i32_13 : i32
    %18 = arith.extui %17 : i1 to i32
    %c0_i32_14 = arith.constant 0 : i32
    %19 = arith.cmpi ne, %18, %c0_i32_14 : i32
    scf.if %19 {
      %c0_15 = arith.constant 0 : index
      %c0_16 = arith.constant 0 : index
      %20 = vector.load %arg12[%c0_15, %c0_16] : memref<1x2048xf32, #tpu.memory_space<vmem>>, vector<1x2048xf32>
      %cst_17 = arith.constant 1.562500e-02 : f32
      %21 = vector.broadcast %cst_17 : f32 to vector<1x2048xf32>
      %22 = arith.mulf %20, %21 : vector<1x2048xf32>
      %c0_18 = arith.constant 0 : index
      %c0_19 = arith.constant 0 : index
      %c0_20 = arith.constant 0 : index
      %23 = vector.load %arg5[%c0_18, %c0_19, %c0_20] : memref<1x1x64xf32, #tpu.memory_space<vmem>>, vector<1x1x64xf32>
      %24 = vector.shape_cast %23 : vector<1x1x64xf32> to vector<1x64xf32>
      %c0_21 = arith.constant 0 : index
      %c0_22 = arith.constant 0 : index
      %25 = vector.load %arg6[%c0_21, %c0_22] : memref<64x9xf32, #tpu.memory_space<vmem>>, vector<64x9xf32>
      %cst_23 = arith.constant dense<0.000000e+00> : vector<1x9xf32>
      %26 = tpu.matmul %24, %25, %cst_23 {dimension_numbers = #tpu.dot_dimension_numbers<[1], [0], [0], [1], [0, 0, 1, 1], [], []>} : vector<1x64xf32>, vector<64x9xf32>, vector<1x9xf32> -> vector<1x9xf32>
      %c0_24 = arith.constant 0 : index
      %c0_25 = arith.constant 0 : index
      %27 = vector.load %arg8[%c0_24, %c0_25] : memref<2048x9xf32, #tpu.memory_space<vmem>>, vector<2048x9xf32>
      %cst_26 = arith.constant dense<0.000000e+00> : vector<1x9xf32>
      %28 = tpu.matmul %22, %27, %cst_26 {dimension_numbers = #tpu.dot_dimension_numbers<[1], [0], [0], [1], [0, 0, 1, 1], [], []>} : vector<1x2048xf32>, vector<2048x9xf32>, vector<1x9xf32> -> vector<1x9xf32>
      %29 = arith.addf %26, %28 : vector<1x9xf32>
      %30 = arith.mulf %24, %24 : vector<1x64xf32>
      %c0_27 = arith.constant 0 : index
      %c0_28 = arith.constant 0 : index
      %31 = vector.load %arg7[%c0_27, %c0_28] : memref<1x64xf32, #tpu.memory_space<vmem>>, vector<1x64xf32>
      %32 = arith.mulf %30, %31 : vector<1x64xf32>
      %cst_29 = arith.constant dense<0.000000e+00> : vector<1xf32>
      %33 = vector.multi_reduction <add>, %32, %cst_29 [1] : vector<1x64xf32> to vector<1xf32>
      %34 = vector.shape_cast %33 : vector<1xf32> to vector<1x1xf32>
      %35 = arith.mulf %22, %22 : vector<1x2048xf32>
      %c0_30 = arith.constant 0 : index
      %c0_31 = arith.constant 0 : index
      %36 = vector.load %arg9[%c0_30, %c0_31] : memref<1x2048xf32, #tpu.memory_space<vmem>>, vector<1x2048xf32>
      %37 = arith.mulf %35, %36 : vector<1x2048xf32>
      %cst_32 = arith.constant dense<0.000000e+00> : vector<1xf32>
      %38 = vector.multi_reduction <add>, %37, %cst_32 [1] : vector<1x2048xf32> to vector<1xf32>
      %39 = vector.shape_cast %38 : vector<1xf32> to vector<1x1xf32>
      %40 = arith.addf %34, %39 : vector<1x1xf32>
      %41 = vector.extract_strided_slice %29 {offsets = [0, 0], sizes = [1, 8], strides = [1, 1]} : vector<1x9xf32> to vector<1x8xf32>
      %42 = vector.extract_strided_slice %29 {offsets = [0, 8], sizes = [1, 1], strides = [1, 1]} : vector<1x9xf32> to vector<1x1xf32>
      %43 = arith.mulf %41, %41 : vector<1x8xf32>
      %cst_33 = arith.constant dense<0.000000e+00> : vector<1xf32>
      %44 = vector.multi_reduction <add>, %43, %cst_33 [1] : vector<1x8xf32> to vector<1xf32>
      %45 = vector.shape_cast %44 : vector<1xf32> to vector<1x1xf32>
      %46 = arith.subf %45, %40 : vector<1x1xf32>
      %c0_34 = arith.constant 0 : index
      %c0_35 = arith.constant 0 : index
      %47 = vector.load %arg10[%c0_34, %c0_35] : memref<1x1xf32, #tpu.memory_space<vmem>>, vector<1x1xf32>
      %48 = arith.addf %42, %47 : vector<1x1xf32>
      %cst_36 = arith.constant 5.000000e-01 : f32
      %49 = vector.broadcast %cst_36 : f32 to vector<1x1xf32>
      %50 = arith.mulf %49, %46 : vector<1x1xf32>
      %51 = arith.addf %48, %50 : vector<1x1xf32>
      %c0_37 = arith.constant 0 : index
      %c0_38 = arith.constant 0 : index
      %c0_39 = arith.constant 0 : index
      %52 = vector.load %arg11[%c0_37, %c0_38, %c0_39] : memref<1x1x1xf32, #tpu.memory_space<vmem>>, vector<1x1x1xf32>
      %53 = vector.shape_cast %52 : vector<1x1x1xf32> to vector<1x1xf32>
      %54 = vector.shape_cast %51 : vector<1x1xf32> to vector<1x1x1xf32>
      tpu.vector_store %arg11[%c0_37, %c0_38, %c0_39], %54 {strides = array<i32>} : memref<1x1x1xf32, #tpu.memory_space<vmem>>, vector<1x1x1xf32>,
    } else {
    }
    return
  }
  func.func @transform_0(%arg0: i32, %arg1: i32) -> (i32, i32, i32) {
    %c0_i32 = arith.constant 0 : i32
    %c0_i32_0 = arith.constant 0 : i32
    return %arg0, %arg1, %c0_i32 : i32, i32, i32
  }
  func.func @transform_1(%arg0: i32, %arg1: i32) -> (i32, i32) {
    %c0_i32 = arith.constant 0 : i32
    %c0_i32_0 = arith.constant 0 : i32
    %c0_i32_1 = arith.constant 0 : i32
    return %c0_i32, %c0_i32_0 : i32, i32
  }
  func.func @transform_2(%arg0: i32, %arg1: i32) -> (i32, i32) {
    %c0_i32 = arith.constant 0 : i32
    %c0_i32_0 = arith.constant 0 : i32
    %c0_i32_1 = arith.constant 0 : i32
    return %c0_i32, %c0_i32_0 : i32, i32
  }
  func.func @transform_3(%arg0: i32, %arg1: i32) -> (i32, i32, i32) {
    %c0_i32 = arith.constant 0 : i32
    %c0_i32_0 = arith.constant 0 : i32
    %c0_i32_1 = arith.constant 0 : i32
    return %arg0, %c0_i32, %c0_i32_0 : i32, i32, i32
  }
  func.func @transform_4(%arg0: i32, %arg1: i32) -> (i32, i32) {
    %c0_i32 = arith.constant 0 : i32
    %c0_i32_0 = arith.constant 0 : i32
    %c0_i32_1 = arith.constant 0 : i32
    return %c0_i32, %c0_i32_0 : i32, i32
  }
  func.func @transform_5(%arg0: i32, %arg1: i32) -> (i32, i32) {
    %c0_i32 = arith.constant 0 : i32
    %c0_i32_0 = arith.constant 0 : i32
    %c0_i32_1 = arith.constant 0 : i32
    return %c0_i32, %c0_i32_0 : i32, i32
  }
  func.func @transform_6(%arg0: i32, %arg1: i32) -> (i32, i32) {
    %c0_i32 = arith.constant 0 : i32
    %c0_i32_0 = arith.constant 0 : i32
    %c0_i32_1 = arith.constant 0 : i32
    return %c0_i32, %c0_i32_0 : i32, i32
  }
  func.func @transform_7(%arg0: i32, %arg1: i32) -> (i32, i32) {
    %c0_i32 = arith.constant 0 : i32
    %c0_i32_0 = arith.constant 0 : i32
    %c0_i32_1 = arith.constant 0 : i32
    return %c0_i32, %c0_i32_0 : i32, i32
  }
  func.func @transform_8(%arg0: i32, %arg1: i32) -> (i32, i32) {
    %c0_i32 = arith.constant 0 : i32
    %c0_i32_0 = arith.constant 0 : i32
    %c0_i32_1 = arith.constant 0 : i32
    return %c0_i32, %c0_i32_0 : i32, i32
  }
  func.func @transform_9(%arg0: i32, %arg1: i32) -> (i32, i32, i32) {
    %c0_i32 = arith.constant 0 : i32
    %c0_i32_0 = arith.constant 0 : i32
    %c0_i32_1 = arith.constant 0 : i32
    return %arg0, %c0_i32, %c0_i32_0 : i32, i32, i32
  }
}

</mosaic_0001>

<bundles_post_ra>
// kernel: cnn_fm_forward.1
= control target key start
LH: loop header
LB: loop body
LE: loop exit
PB: predicated region body
PF: predicated region fallthrough
CT: control target
= control target key end

     0   :  { %s3677_s11 = smov 0   ;;  %s3679_s12 = smov 0   ;;  %s5873_s0 = inlined_call_operand.vmem [shape: bf16[2,64,128], index: 0, kind: input, shape index: {}]   ;;  %s5874_s1 = inlined_call_operand.vmem [shape: bf16[128,2048], index: 1, kind: input, shape index: {}]   ;;  %s5875_s2 = inlined_call_operand.vmem [shape: f32[1,2048], index: 2, kind: input, shape index: {}]   ;;  %s5876_s3 = inlined_call_operand.vmem [shape: f32[2,1,64], index: 3, kind: input, shape index: {}]   ;;  %s5877_s4 = inlined_call_operand.vmem [shape: f32[64,9], index: 4, kind: input, shape index: {}]   ;;  %s5878_s5 = inlined_call_operand.vmem [shape: f32[1,64], index: 5, kind: input, shape index: {}]   ;;  %s5879_s6 = inlined_call_operand.vmem [shape: f32[2048,9], index: 6, kind: input, shape index: {}]   ;;  %s5880_s7 = inlined_call_operand.vmem [shape: f32[1,2048], index: 7, kind: input, shape index: {}]   ;;  %s5881_s8 = inlined_call_operand.<no memory space> [shape: f32[1,1], index: 8, kind: input, shape index: {}]   ;;  %s5882_s9 = inlined_call_operand.vmem [shape: f32[2,1,1], index: 9, kind: output, shape index: {}]  }
   0x1   :  { %v14_v0 = vstv %s5881_s8  ;;  %s3681_s13 = smov 0  }
   0x2   :  { %15 = vst [vmem:[#allocation3] sm:$0x1] %v14_v0 }
   0x3 LB: > { %s33_s8 = sadd.s32 1, %s3616_s12  ;;  %p2900_p0 = scmp.ge.s32.totalorder %s3620_s13, 1  ;;  %s3620_s13 = sphi %s3681_s13, %s21_s13   ;;  %s3616_s12 = sphi %s3679_s12, %s5884_s12   ;;  %s3612_s11 = sphi %s3677_s11, %s5883_s11  }
   0x4   : > { %p35_p1 = scmp.ge.s32.totalorder %s33_s8, 2  ;;  %p316_p2 = scmp.lt.s32.totalorder %s3620_s13, 3 }
   0x6   : > { %s5886_s8 = smov (%p35_p1, %s33_s8), 0  ;;  %p317_p3 = pnand %p2900_p0, %p316_p2 }
   0x7   : > { %p358_p4 = scmp.lt.s32.totalorder (!%p317_p3), %s3612_s11, 1  ;;  %s3622_s22 = smov (!%p317_p3), 8  }
   0x8   : > { %320 = sbr.rel (%p317_p3) target bundleno = 843 (0x34b), region = 56  ;;  %s3623_s24 = smov (!%p317_p3), 120  }
   0xd   : > { %v3369_v1 = vld [vmem:[%s5874_s1 + $0x380] sm:$0xf]  ;;  %v3551_v3 = vld [vmem:[%s5874_s1 + $0x384] sm:$0xf]  ;;  %v3377_v6 = vld [vmem:[%s5874_s1 + $0x388] sm:$0xf] }
   0xe   : > { %v3559_v2 = vld [vmem:[%s5874_s1 + $0x3bc] sm:$0xf0]  ;;  %v3371_v5 = vld [vmem:[%s5874_s1 + $0x3c0] sm:$0xf0]  ;;  %v3560_v7 = vld [vmem:[%s5874_s1 + $0x3c4] sm:$0xf0] }
   0xf   : > { %v3370_v4 = vor.u32 %v3559_v2, %v3369_v1  ;;  %v3374_v8 = vor.u32 %v3551_v3, %v3371_v5  ;;  %v3378_v9 = vor.u32 %v3560_v7, %v3377_v6  ;;  %v3552_v10 = vld [vmem:[%s5874_s1 + $0x38c] sm:$0xf]  ;;  %v3305_v12 = vld [vmem:[%s5874_s1 + $0x300] sm:$0xf]  ;;  %v3535_v15 = vld [vmem:[%s5874_s1 + $0x304] sm:$0xf] }
  0x10   : > { %v3379_v11 = vld [vmem:[%s5874_s1 + $0x3c8] sm:$0xf0]  ;;  %v3543_v14 = vld [vmem:[%s5874_s1 + $0x33c] sm:$0xf0]  ;;  %v3307_v16 = vld [vmem:[%s5874_s1 + $0x340] sm:$0xf0] }
  0x11   : > { %1215 = vmatpush.bf16.msra.mxu0 %v3370_v4  ;;  %v3382_v13 = vor.u32 %v3552_v10, %v3379_v11  ;;  %1244 = vmatpush.bf16.msra.mxu1 %v3374_v8  ;;  %v3306_v17 = vor.u32 %v3543_v14, %v3305_v12  ;;  %v3310_v18 = vor.u32 %v3535_v15, %v3307_v16  ;;  %v3313_v19 = vld [vmem:[%s5874_s1 + $0x308] sm:$0xf]  ;;  %v3536_v21 = vld [vmem:[%s5874_s1 + $0x30c] sm:$0xf]  ;;  %v3241_v24 = vld [vmem:[%s5874_s1 + $0x280] sm:$0xf] }
  0x12   : > { %1273 = vmatpush.bf16.msra.mxu2 %v3378_v9  ;;  %v3544_v20 = vld [vmem:[%s5874_s1 + $0x344] sm:$0xf0]  ;;  %v3315_v23 = vld [vmem:[%s5874_s1 + $0x348] sm:$0xf0]  ;;  %v3527_v25 = vld [vmem:[%s5874_s1 + $0x2bc] sm:$0xf0] }
  0x13   : > { %1302 = vmatpush.bf16.msra.mxu3 %v3382_v13  ;;  %v3314_v22 = vor.u32 %v3544_v20, %v3313_v19  ;;  %v3318_v26 = vor.u32 %v3536_v21, %v3315_v23  ;;  %v3519_v27 = vld [vmem:[%s5874_s1 + $0x284] sm:$0xf]  ;;  %v3249_v29 = vld [vmem:[%s5874_s1 + $0x288] sm:$0xf]  ;;  %v3242_v30 = vor.u32 %v3527_v25, %v3241_v24  ;;  %v3520_v32 = vld [vmem:[%s5874_s1 + $0x28c] sm:$0xf] }
  0x14   : > { %v3243_v28 = vld [vmem:[%s5874_s1 + $0x2c0] sm:$0xf0]  ;;  %v3528_v31 = vld [vmem:[%s5874_s1 + $0x2c4] sm:$0xf0]  ;;  %v3251_v33 = vld [vmem:[%s5874_s1 + $0x2c8] sm:$0xf0] }
  0x15   : > { %1216 = vmatpush.bf16.msra.mxu0 %v3306_v17  ;;  %1245 = vmatpush.bf16.msra.mxu1 %v3310_v18  ;;  %v3246_v34 = vor.u32 %v3519_v27, %v3243_v28  ;;  %v3250_v35 = vor.u32 %v3528_v31, %v3249_v29  ;;  %v3177_v36 = vld [vmem:[%s5874_s1 + $0x200] sm:$0xf]  ;;  %v3503_v38 = vld [vmem:[%s5874_s1 + $0x204] sm:$0xf]  ;;  %v3254_v39 = vor.u32 %v3520_v32, %v3251_v33  ;;  %v3185_v41 = vld [vmem:[%s5874_s1 + $0x208] sm:$0xf] }
  0x16   : > { %1274 = vmatpush.bf16.msra.mxu2 %v3314_v22  ;;  %v3511_v37 = vld [vmem:[%s5874_s1 + $0x23c] sm:$0xf0]  ;;  %v3179_v40 = vld [vmem:[%s5874_s1 + $0x240] sm:$0xf0]  ;;  %v3512_v42 = vld [vmem:[%s5874_s1 + $0x244] sm:$0xf0] }
  0x17   : > { %1303 = vmatpush.bf16.msra.mxu3 %v3318_v26  ;;  %v3504_v43 = vld [vmem:[%s5874_s1 + $0x20c] sm:$0xf]  ;;  %v3178_v45 = vor.u32 %v3511_v37, %v3177_v36  ;;  %v3182_v46 = vor.u32 %v3503_v38, %v3179_v40  ;;  %v3186_v47 = vor.u32 %v3512_v42, %v3185_v41  ;;  %v3113_v48 = vld [vmem:[%s5874_s1 + $0x180] sm:$0xf]  ;;  %v3487_v50 = vld [vmem:[%s5874_s1 + $0x184] sm:$0xf] }
  0x18   : > { %v3187_v44 = vld [vmem:[%s5874_s1 + $0x248] sm:$0xf0]  ;;  %v3495_v49 = vld [vmem:[%s5874_s1 + $0x1bc] sm:$0xf0]  ;;  %v3115_v52 = vld [vmem:[%s5874_s1 + $0x1c0] sm:$0xf0] }
  0x19   : > { %1217 = vmatpush.bf16.msra.mxu0 %v3242_v30  ;;  %1246 = vmatpush.bf16.msra.mxu1 %v3246_v34  ;;  %v3190_v51 = vor.u32 %v3504_v43, %v3187_v44  ;;  %v3121_v53 = vld [vmem:[%s5874_s1 + $0x188] sm:$0xf]  ;;  %v3488_v55 = vld [vmem:[%s5874_s1 + $0x18c] sm:$0xf]  ;;  %v3114_v57 = vor.u32 %v3495_v49, %v3113_v48  ;;  %v3118_v58 = vor.u32 %v3487_v50, %v3115_v52  ;;  %v3049_v60 = vld [vmem:[%s5874_s1 + $0x100] sm:$0xf] }
  0x1a   : > { %1275 = vmatpush.bf16.msra.mxu2 %v3250_v35  ;;  %v3496_v54 = vld [vmem:[%s5874_s1 + $0x1c4] sm:$0xf0]  ;;  %v3123_v56 = vld [vmem:[%s5874_s1 + $0x1c8] sm:$0xf0]  ;;  %v3479_v61 = vld [vmem:[%s5874_s1 + $0x13c] sm:$0xf0] }
  0x1b   : > { %1304 = vmatpush.bf16.msra.mxu3 %v3254_v39  ;;  %v3122_v59 = vor.u32 %v3496_v54, %v3121_v53  ;;  %v3471_v62 = vld [vmem:[%s5874_s1 + $0x104] sm:$0xf]  ;;  %v3126_v63 = vor.u32 %v3488_v55, %v3123_v56  ;;  %v3057_v1 = vld [vmem:[%s5874_s1 + $0x108] sm:$0xf]  ;;  %v3472_v3 = vld [vmem:[%s5874_s1 + $0x10c] sm:$0xf]  ;;  %v3050_v5 = vor.u32 %v3479_v61, %v3049_v60 }
  0x1c   : > { %v3051_v0 = vld [vmem:[%s5874_s1 + $0x140] sm:$0xf0]  ;;  %v3480_v2 = vld [vmem:[%s5874_s1 + $0x144] sm:$0xf0]  ;;  %v3059_v4 = vld [vmem:[%s5874_s1 + $0x148] sm:$0xf0] }
  0x1d   : > { %1218 = vmatpush.bf16.msra.mxu0 %v3178_v45  ;;  %1247 = vmatpush.bf16.msra.mxu1 %v3182_v46  ;;  %v2985_v6 = vld [vmem:[%s5874_s1 + $0x80] sm:$0xf]  ;;  %v3054_v7 = vor.u32 %v3471_v62, %v3051_v0  ;;  %v3058_v8 = vor.u32 %v3480_v2, %v3057_v1  ;;  %v3455_v10 = vld [vmem:[%s5874_s1 + $0x84] sm:$0xf]  ;;  %v3062_v12 = vor.u32 %v3472_v3, %v3059_v4  ;;  %v2993_v13 = vld [vmem:[%s5874_s1 + $0x88] sm:$0xf] }
  0x1e   : > { %1276 = vmatpush.bf16.msra.mxu2 %v3186_v47  ;;  %v3463_v9 = vld [vmem:[%s5874_s1 + $0xbc] sm:$0xf0]  ;;  %v2987_v11 = vld [vmem:[%s5874_s1 + $0xc0] sm:$0xf0]  ;;  %v3464_v14 = vld [vmem:[%s5874_s1 + $0xc4] sm:$0xf0] }
  0x1f   : > { %1305 = vmatpush.bf16.msra.mxu3 %v3190_v51  ;;  %v3456_v15 = vld [vmem:[%s5874_s1 + $0x8c] sm:$0xf]  ;;  %v2986_v17 = vor.u32 %v3463_v9, %v2985_v6  ;;  %v2921_v18 = vld [vmem:[%s5874_s1] sm:$0xf]  ;;  %s5888_s11 = smov (!%p358_p4, %s3612_s11), 1  ;;  %v2990_v20 = vor.u32 %v3455_v10, %v2987_v11  ;;  %v2994_v21 = vor.u32 %v3464_v14, %v2993_v13  ;;  %vm2047_vm0 = vcmask 1040384  }
  0x20   : > { %v2995_v16 = vld [vmem:[%s5874_s1 + $0xc8] sm:$0xf0]  ;;  %v3447_v19 = vld [vmem:[%s5874_s1 + $0x3c] sm:$0xf0]  ;;  %v3439_v22 = vld [vmem:[%s5874_s1 + $0x4] sm:$0xf]  ;;  %s372_s27 = scalar_lea.vmem %s5882_s9, %s5888_s11 }
  0x21   : > { %1219 = vmatpush.bf16.msra.mxu0 %v3114_v57  ;;  %1248 = vmatpush.bf16.msra.mxu1 %v3118_v58  ;;  %v2923_v23 = vld [vmem:[%s5874_s1 + $0x40] sm:$0xf0]  ;;  %v2929_v24 = vld [vmem:[%s5874_s1 + $0x8] sm:$0xf]  ;;  %v2998_v25 = vor.u32 %v3456_v15, %v2995_v16  ;;  %v3440_v27 = vld [vmem:[%s5874_s1 + $0xc] sm:$0xf]  ;;  %v2922_v31 = vor.u32 %v3447_v19, %v2921_v18 }
  0x22   : > { %1277 = vmatpush.bf16.msra.mxu2 %v3122_v59  ;;  %v3448_v26 = vld [vmem:[%s5874_s1 + $0x44] sm:$0xf0]  ;;  %s3434_s14 = sshll.u32 %s5888_s11, 5  ;;  %v2931_v28 = vld [vmem:[%s5874_s1 + $0x48] sm:$0xf0]  ;;  %v2926_v34 = vor.u32 %v3439_v22, %v2923_v23  ;;  %vm2049_vm1 = vcmask 1042434  }
  0x23   : > { %1306 = vmatpush.bf16.msra.mxu3 %v3126_v63  ;;  %v3393_v29 = vld [vmem:[%s5874_s1 + $0x398] sm:$0xf]  ;;  %s3903_s23 = scalar_lea.vmem %s5873_s0, %s3434_s14  ;;  %v3554_v32 = vld [vmem:[%s5874_s1 + $0x39c] sm:$0xf]  ;;  %v2930_v35 = vor.u32 %v3448_v26, %v2929_v24  ;;  %v3385_v36 = vld [vmem:[%s5874_s1 + $0x390] sm:$0xf]  ;;  %v2934_v37 = vor.u32 %v3440_v27, %v2931_v28 }
  0x24   : > { %v3562_v30 = vld [vmem:[%s5874_s1 + $0x3d4] sm:$0xf0]  ;;  %v3395_v33 = vld [vmem:[%s5874_s1 + $0x3d8] sm:$0xf0]  ;;  %v3561_v39 = vld [vmem:[%s5874_s1 + $0x3cc] sm:$0xf0] }
  0x25   : > { %1220 = vmatpush.bf16.msra.mxu0 %v3050_v5  ;;  %1249 = vmatpush.bf16.msra.mxu1 %v3054_v7  ;;  %v3394_v38 = vor.u32 %v3562_v30, %v3393_v29  ;;  %v3553_v40 = vld [vmem:[%s5874_s1 + $0x394] sm:$0xf]  ;;  %v3924_v42 = vld [vmem:[%s3903_s23] sm:$0xff]  ;;  %v3398_v43 = vor.u32 %v3554_v32, %v3395_v33  ;;  %v3329_v44 = vld [vmem:[%s5874_s1 + $0x318] sm:$0xf]  ;;  %v3386_v48 = vor.u32 %v3561_v39, %v3385_v36  ;;  %vm2051_vm2 = vcmask 1041408  }
  0x26   : > { %1278 = vmatpush.bf16.msra.mxu2 %v3058_v8  ;;  %v3387_v41 = vld [vmem:[%s5874_s1 + $0x3d0] sm:$0xf0]  ;;  %v3546_v45 = vld [vmem:[%s5874_s1 + $0x354] sm:$0xf0]  ;;  %v3538_v46 = vld [vmem:[%s5874_s1 + $0x31c] sm:$0xf] }
  0x27   : > { %1307 = vmatpush.bf16.msra.mxu3 %v3062_v12  ;;  %v3331_v47 = vld [vmem:[%s5874_s1 + $0x358] sm:$0xf0]  ;;  %v3321_v49 = vld [vmem:[%s5874_s1 + $0x310] sm:$0xf]  ;;  %v3390_v50 = vor.u32 %v3553_v40, %v3387_v41  ;;  %v3330_v51 = vor.u32 %v3546_v45, %v3329_v44  ;;  %v3537_v53 = vld [vmem:[%s5874_s1 + $0x314] sm:$0xf] }
  0x28   : > { %v3545_v52 = vld [vmem:[%s5874_s1 + $0x34c] sm:$0xf0]  ;;  %v3323_v54 = vld [vmem:[%s5874_s1 + $0x350] sm:$0xf0]  ;;  %v3334_v55 = vor.u32 %v3538_v46, %v3331_v47  ;;  %v3265_v56 = vld [vmem:[%s5874_s1 + $0x298] sm:$0xf] }
  0x29   : > { %1221 = vmatpush.bf16.msra.mxu0 %v2986_v17  ;;  %1250 = vmatpush.bf16.msra.mxu1 %v2990_v20  ;;  %v3530_v57 = vld [vmem:[%s5874_s1 + $0x2d4] sm:$0xf0]  ;;  %v3522_v58 = vld [vmem:[%s5874_s1 + $0x29c] sm:$0xf]  ;;  %v3322_v60 = vor.u32 %v3545_v52, %v3321_v49  ;;  %v3326_v61 = vor.u32 %v3537_v53, %v3323_v54  ;;  %v3257_v63 = vld [vmem:[%s5874_s1 + $0x290] sm:$0xf] }
  0x2a   : > { %1279 = vmatpush.bf16.msra.mxu2 %v2994_v21  ;;  %v3267_v59 = vld [vmem:[%s5874_s1 + $0x2d8] sm:$0xf0]  ;;  %v3266_v62 = vor.u32 %v3530_v57, %v3265_v56  ;;  %v3529_v0 = vld [vmem:[%s5874_s1 + $0x2cc] sm:$0xf0]  ;;  %v3521_v1 = vld [vmem:[%s5874_s1 + $0x294] sm:$0xf] }
  0x2b   : > { %1308 = vmatpush.bf16.msra.mxu3 %v2998_v25  ;;  %v3270_v2 = vor.u32 %v3522_v58, %v3267_v59  ;;  %v3259_v3 = vld [vmem:[%s5874_s1 + $0x2d0] sm:$0xf0]  ;;  %v3201_v4 = vld [vmem:[%s5874_s1 + $0x218] sm:$0xf]  ;;  %v3506_v6 = vld [vmem:[%s5874_s1 + $0x21c] sm:$0xf]  ;;  %v3258_v8 = vor.u32 %v3529_v0, %v3257_v63 }
  0x2c   : > { %v3514_v5 = vld [vmem:[%s5874_s1 + $0x254] sm:$0xf0]  ;;  %v3203_v7 = vld [vmem:[%s5874_s1 + $0x258] sm:$0xf0]  ;;  %v3262_v9 = vor.u32 %v3521_v1, %v3259_v3  ;;  %v3193_v11 = vld [vmem:[%s5874_s1 + $0x210] sm:$0xf] }
  0x2d   : > { %1222 = vmatpush.bf16.msra.mxu0 %v2922_v31  ;;  %1251 = vmatpush.bf16.msra.mxu1 %v2926_v34  ;;  %v3202_v10 = vor.u32 %v3514_v5, %v3201_v4  ;;  %v3513_v12 = vld [vmem:[%s5874_s1 + $0x24c] sm:$0xf0]  ;;  %v3505_v13 = vld [vmem:[%s5874_s1 + $0x214] sm:$0xf]  ;;  %v3206_v14 = vor.u32 %v3506_v6, %v3203_v7  ;;  %v3137_v16 = vld [vmem:[%s5874_s1 + $0x198] sm:$0xf] }
  0x2e   : > { %1280 = vmatpush.bf16.msra.mxu2 %v2930_v35  ;;  %v3195_v15 = vld [vmem:[%s5874_s1 + $0x250] sm:$0xf0]  ;;  %v3498_v17 = vld [vmem:[%s5874_s1 + $0x1d4] sm:$0xf0]  ;;  %v3490_v18 = vld [vmem:[%s5874_s1 + $0x19c] sm:$0xf]  ;;  %v3194_v21 = vor.u32 %v3513_v12, %v3193_v11 }
  0x2f   : > { %1309 = vmatpush.bf16.msra.mxu3 %v2934_v37  ;;  %v3139_v19 = vld [vmem:[%s5874_s1 + $0x1d8] sm:$0xf0]  ;;  %v4015_v20 = vld [vmem:[%s3903_s23 + $0x8] sm:$0xff]  ;;  %v3198_v22 = vor.u32 %v3505_v13, %v3195_v15  ;;  %v3138_v23 = vor.u32 %v3498_v17, %v3137_v16  ;;  %v3129_v24 = vld [vmem:[%s5874_s1 + $0x190] sm:$0xf]  ;;  %vm2053_vm3 = vcmask 1044484  }
  0x30   : > { %1223 = vmatmul.bf16.vlgmr.msra.gmra.mxu0 %v3924_v42  ;;  %1252 = vmatmul.bf16.vlgmr.msra.gmra.mxu1 %v3924_v42  ;;  %v3497_v25 = vld [vmem:[%s5874_s1 + $0x1cc] sm:$0xf0]  ;;  %v3489_v26 = vld [vmem:[%s5874_s1 + $0x194] sm:$0xf]  ;;  %v3142_v27 = vor.u32 %v3490_v18, %v3139_v19  ;;  %v3073_v29 = vld [vmem:[%s5874_s1 + $0x118] sm:$0xf] }
  0x31   : > { %1281 = vmatmul.bf16.vlgmr.msra.gmra.mxu2 %v3924_v42  ;;  %1331 = vmatpush.bf16.msrb.mxu0 %v3386_v48  ;;  %v3131_v28 = vld [vmem:[%s5874_s1 + $0x1d0] sm:$0xf0]  ;;  %v3482_v30 = vld [vmem:[%s5874_s1 + $0x154] sm:$0xf0]  ;;  %v3474_v31 = vld [vmem:[%s5874_s1 + $0x11c] sm:$0xf]  ;;  %v3130_v33 = vor.u32 %v3497_v25, %v3129_v24 }
  0x32   : > { %1389 = vmatpush.bf16.msrb.mxu2 %v3394_v38  ;;  %1310 = vmatmul.bf16.vlgmr.msra.gmra.mxu3 %v3924_v42  ;;  %v3075_v32 = vld [vmem:[%s5874_s1 + $0x158] sm:$0xf0]  ;;  %v3134_v34 = vor.u32 %v3489_v26, %v3131_v28  ;;  %v3074_v35 = vor.u32 %v3482_v30, %v3073_v29  ;;  %v3065_v36 = vld [vmem:[%s5874_s1 + $0x110] sm:$0xf]  ;;  %v3473_v39 = vld [vmem:[%s5874_s1 + $0x114] sm:$0xf] }
  0x33   : > { %1418 = vmatpush.bf16.msrb.mxu3 %v3398_v43  ;;  %1360 = vmatpush.bf16.msrb.mxu1 %v3390_v50  ;;  %v3481_v37 = vld [vmem:[%s5874_s1 + $0x14c] sm:$0xf0]  ;;  %v3078_v38 = vor.u32 %v3474_v31, %v3075_v32  ;;  %v3067_v40 = vld [vmem:[%s5874_s1 + $0x150] sm:$0xf0]  ;;  %v3009_v43 = vld [vmem:[%s5874_s1 + $0x98] sm:$0xf] }
  0x34   : > { %v3066_v41 = vor.u32 %v3481_v37, %v3065_v36  ;;  %v3466_v44 = vld [vmem:[%s5874_s1 + $0xd4] sm:$0xf0]  ;;  %v3458_v45 = vld [vmem:[%s5874_s1 + $0x9c] sm:$0xf]  ;;  %v3070_v46 = vor.u32 %v3473_v39, %v3067_v40  ;;  %v3001_v49 = vld [vmem:[%s5874_s1 + $0x90] sm:$0xf] }
  0x35   : > { %1332 = vmatpush.bf16.msrb.mxu0 %v3322_v60  ;;  %v3010_v47 = vor.u32 %v3466_v44, %v3009_v43  ;;  %v3011_v48 = vld [vmem:[%s5874_s1 + $0xd8] sm:$0xf0]  ;;  %v3465_v50 = vld [vmem:[%s5874_s1 + $0xcc] sm:$0xf0]  ;;  %v3457_v52 = vld [vmem:[%s5874_s1 + $0x94] sm:$0xf] }
  0x36   : > { %1390 = vmatpush.bf16.msrb.mxu2 %v3330_v51  ;;  %v3014_v51 = vor.u32 %v3458_v45, %v3011_v48  ;;  %v3003_v53 = vld [vmem:[%s5874_s1 + $0xd0] sm:$0xf0]  ;;  %v2945_v54 = vld [vmem:[%s5874_s1 + $0x18] sm:$0xf]  ;;  %v3442_v56 = vld [vmem:[%s5874_s1 + $0x1c] sm:$0xf]  ;;  %v3002_v58 = vor.u32 %v3465_v50, %v3001_v49 }
  0x37   : > { %1419 = vmatpush.bf16.msrb.mxu3 %v3334_v55  ;;  %1361 = vmatpush.bf16.msrb.mxu1 %v3326_v61  ;;  %v3450_v55 = vld [vmem:[%s5874_s1 + $0x54] sm:$0xf0]  ;;  %v2947_v57 = vld [vmem:[%s5874_s1 + $0x58] sm:$0xf0]  ;;  %v3006_v59 = vor.u32 %v3457_v52, %v3003_v53  ;;  %v2937_v61 = vld [vmem:[%s5874_s1 + $0x10] sm:$0xf] }
  0x38   : > { %v2946_v60 = vor.u32 %v3450_v55, %v2945_v54  ;;  %v2950_v63 = vor.u32 %v3442_v56, %v2947_v57  ;;  %v3441_v0 = vld [vmem:[%s5874_s1 + $0x14] sm:$0xf]  ;;  %v3409_v5 = vld [vmem:[%s5874_s1 + $0x3a8] sm:$0xf]  ;;  %v3556_v7 = vld [vmem:[%s5874_s1 + $0x3ac] sm:$0xf] }
  0x39   : > { %1333 = vmatpush.bf16.msrb.mxu0 %v3258_v8  ;;  %v2939_v1 = vld [vmem:[%s5874_s1 + $0x50] sm:$0xf0]  ;;  %v3564_v6 = vld [vmem:[%s5874_s1 + $0x3e4] sm:$0xf0]  ;;  %v3563_v11 = vld [vmem:[%s5874_s1 + $0x3dc] sm:$0xf0] }
  0x3a   : > { %1391 = vmatpush.bf16.msrb.mxu2 %v3266_v62  ;;  %v3449_v62 = vld [vmem:[%s5874_s1 + $0x4c] sm:$0xf0]  ;;  %v2942_v3 = vor.u32 %v3441_v0, %v2939_v1  ;;  %v3410_v8 = vor.u32 %v3564_v6, %v3409_v5  ;;  %v3403_v15 = vld [vmem:[%s5874_s1 + $0x3e0] sm:$0xf0]  ;;  %v3345_v16 = vld [vmem:[%s5874_s1 + $0x328] sm:$0xf] }
  0x3b   : > { %1420 = vmatpush.bf16.msrb.mxu3 %v3270_v2  ;;  %1362 = vmatpush.bf16.msrb.mxu1 %v3262_v9  ;;  %v2938_v2 = vor.u32 %v3449_v62, %v2937_v61  ;;  %v4106_v4 = vld [vmem:[%s3903_s23 + $0x10] sm:$0xff]  ;;  %v3411_v9 = vld [vmem:[%s5874_s1 + $0x3e8] sm:$0xf0]  ;;  %v3548_v18 = vld [vmem:[%s5874_s1 + $0x364] sm:$0xf0]  ;;  %vm2055_vm4 = vcmask 1046534  }
  0x3c   : > { %v3414_v12 = vor.u32 %v3556_v7, %v3411_v9  ;;  %v3540_v19 = vld [vmem:[%s5874_s1 + $0x32c] sm:$0xf]  ;;  %v3337_v24 = vld [vmem:[%s5874_s1 + $0x320] sm:$0xf]  ;;  %v3539_v26 = vld [vmem:[%s5874_s1 + $0x324] sm:$0xf] }
  0x3d   : > { %1334 = vmatpush.bf16.msrb.mxu0 %v3194_v21  ;;  %v3347_v21 = vld [vmem:[%s5874_s1 + $0x368] sm:$0xf0]  ;;  %v3547_v25 = vld [vmem:[%s5874_s1 + $0x35c] sm:$0xf0]  ;;  %v3339_v28 = vld [vmem:[%s5874_s1 + $0x360] sm:$0xf0] }
  0x3e   : > { %1392 = vmatpush.bf16.msrb.mxu2 %v3202_v10  ;;  %v3401_v10 = vld [vmem:[%s5874_s1 + $0x3a0] sm:$0xf]  ;;  %v3342_v29 = vor.u32 %v3539_v26, %v3339_v28  ;;  %v4161_v30 = vld [vmem:[%s3903_s23 + $0x18] sm:$0xff]  ;;  %v3281_v31 = vld [vmem:[%s5874_s1 + $0x2a8] sm:$0xf]  ;;  %vm2057_vm5 = vcmask 1045508  }
  0x3f   : > { %1421 = vmatpush.bf16.msrb.mxu3 %v3206_v14  ;;  %1363 = vmatpush.bf16.msrb.mxu1 %v3198_v22  ;;  %v3402_v13 = vor.u32 %v3563_v11, %v3401_v10  ;;  %v3555_v14 = vld [vmem:[%s5874_s1 + $0x3a4] sm:$0xf]  ;;  %v3346_v22 = vor.u32 %v3548_v18, %v3345_v16  ;;  %v3532_v32 = vld [vmem:[%s5874_s1 + $0x2e4] sm:$0xf0]  ;;  %v3273_v36 = vld [vmem:[%s5874_s1 + $0x2a0] sm:$0xf] }
  0x40   : > { %1228 = vmatmul.bf16.gmra.mxu0 %v4015_v20  ;;  %1257 = vmatmul.bf16.gmra.mxu1 %v4015_v20  ;;  %v3406_v17 = vor.u32 %v3555_v14, %v3403_v15  ;;  %v3531_v37 = vld [vmem:[%s5874_s1 + $0x2dc] sm:$0xf0]  ;;  %v3523_v40 = vld [vmem:[%s5874_s1 + $0x2a4] sm:$0xf]  ;;  %v3217_v43 = vld [vmem:[%s5874_s1 + $0x228] sm:$0xf] }
  0x41   : > { %1286 = vmatmul.bf16.gmra.mxu2 %v4015_v20  ;;  %1335 = vmatpush.bf16.msrb.mxu0 %v3130_v33  ;;  %v3524_v33 = vld [vmem:[%s5874_s1 + $0x2ac] sm:$0xf]  ;;  %v3274_v39 = vor.u32 %v3531_v37, %v3273_v36  ;;  %v3516_v45 = vld [vmem:[%s5874_s1 + $0x264] sm:$0xf0]  ;;  %v3209_v50 = vld [vmem:[%s5874_s1 + $0x220] sm:$0xf] }
  0x42   : > { %1393 = vmatpush.bf16.msrb.mxu2 %v3138_v23  ;;  %1315 = vmatmul.bf16.gmra.mxu3 %v4015_v20  ;;  %v3350_v23 = vor.u32 %v3540_v19, %v3347_v21  ;;  %v3218_v48 = vor.u32 %v3516_v45, %v3217_v43  ;;  %v3507_v52 = vld [vmem:[%s5874_s1 + $0x224] sm:$0xf]  ;;  %v3153_v56 = vld [vmem:[%s5874_s1 + $0x1a8] sm:$0xf]  ;;  %v3145_v61 = vld [vmem:[%s5874_s1 + $0x1a0] sm:$0xf] }
  0x43   : > { %1422 = vmatpush.bf16.msrb.mxu3 %v3142_v27  ;;  %1364 = vmatpush.bf16.msrb.mxu1 %v3134_v34  ;;  %v3338_v27 = vor.u32 %v3547_v25, %v3337_v24  ;;  %v3282_v34 = vor.u32 %v3532_v32, %v3281_v31  ;;  %v3211_v54 = vld [vmem:[%s5874_s1 + $0x260] sm:$0xf0]  ;;  %v3500_v57 = vld [vmem:[%s5874_s1 + $0x1e4] sm:$0xf0]  ;;  %v3499_v62 = vld [vmem:[%s5874_s1 + $0x1dc] sm:$0xf0] }
  0x44   : > { %v3214_v55 = vor.u32 %v3507_v52, %v3211_v54  ;;  %v3146_v0 = vor.u32 %v3499_v62, %v3145_v61  ;;  %v3491_v1 = vld [vmem:[%s5874_s1 + $0x1a4] sm:$0xf]  ;;  %v3484_v6 = vld [vmem:[%s5874_s1 + $0x164] sm:$0xf0]  ;;  %v3476_v7 = vld [vmem:[%s5874_s1 + $0x12c] sm:$0xf] }
  0x45   : > { %1336 = vmatpush.bf16.msrb.mxu0 %v3066_v41  ;;  %v3275_v41 = vld [vmem:[%s5874_s1 + $0x2e0] sm:$0xf0]  ;;  %v3081_v11 = vld [vmem:[%s5874_s1 + $0x120] sm:$0xf]  ;;  %v3468_v18 = vld [vmem:[%s5874_s1 + $0xe4] sm:$0xf0] }
  0x46   : > { %1394 = vmatpush.bf16.msrb.mxu2 %v3074_v35  ;;  %v3283_v35 = vld [vmem:[%s5874_s1 + $0x2e8] sm:$0xf0]  ;;  %v3278_v44 = vor.u32 %v3523_v40, %v3275_v41  ;;  %v3083_v15 = vld [vmem:[%s5874_s1 + $0x160] sm:$0xf0]  ;;  %v3467_v24 = vld [vmem:[%s5874_s1 + $0xdc] sm:$0xf0] }
  0x47   : > { %1423 = vmatpush.bf16.msrb.mxu3 %v3078_v38  ;;  %1365 = vmatpush.bf16.msrb.mxu1 %v3070_v46  ;;  %v3286_v38 = vor.u32 %v3524_v33, %v3283_v35  ;;  %v3508_v46 = vld [vmem:[%s5874_s1 + $0x22c] sm:$0xf]  ;;  %v3019_v28 = vld [vmem:[%s5874_s1 + $0xe0] sm:$0xf0]  ;;  %v3452_v32 = vld [vmem:[%s5874_s1 + $0x64] sm:$0xf0] }
  0x48   : > { %v3460_v19 = vld [vmem:[%s5874_s1 + $0xac] sm:$0xf]  ;;  %v2953_v37 = vld [vmem:[%s5874_s1 + $0x20] sm:$0xf]  ;;  %v2955_v41 = vld [vmem:[%s5874_s1 + $0x60] sm:$0xf0] }
  0x49   : > { %1337 = vmatpush.bf16.msrb.mxu0 %v3002_v58  ;;  %v3492_v58 = vld [vmem:[%s5874_s1 + $0x1ac] sm:$0xf]  ;;  %v3566_v45 = vld [vmem:[%s5874_s1 + $0x3f4] sm:$0xf0]  ;;  %v3557_v52 = vld [vmem:[%s5874_s1 + $0x3b4] sm:$0xf] }
  0x4a   : > { %1395 = vmatpush.bf16.msrb.mxu2 %v3010_v47  ;;  %v3219_v47 = vld [vmem:[%s5874_s1 + $0x268] sm:$0xf0]  ;;  %v3419_v54 = vld [vmem:[%s5874_s1 + $0x3f0] sm:$0xf0]  ;;  %v3353_v62 = vld [vmem:[%s5874_s1 + $0x330] sm:$0xf] }
  0x4b   : > { %1424 = vmatpush.bf16.msrb.mxu3 %v3014_v51  ;;  %1366 = vmatpush.bf16.msrb.mxu1 %v3006_v59  ;;  %v3222_v49 = vor.u32 %v3508_v46, %v3219_v47  ;;  %v3515_v51 = vld [vmem:[%s5874_s1 + $0x25c] sm:$0xf0]  ;;  %v3154_v59 = vor.u32 %v3500_v57, %v3153_v56  ;;  %v3444_v33 = vld [vmem:[%s5874_s1 + $0x2c] sm:$0xf]  ;;  %v3558_v46 = vld [vmem:[%s5874_s1 + $0x3bc] sm:$0xf]  ;;  %v3422_v57 = vor.u32 %v3557_v52, %v3419_v54 }
  0x4c   : > { %v3210_v53 = vor.u32 %v3515_v51, %v3209_v50  ;;  %v3417_v50 = vld [vmem:[%s5874_s1 + $0x3b0] sm:$0xf]  ;;  %v3550_v56 = vld [vmem:[%s5874_s1 + $0x374] sm:$0xf0]  ;;  %vm2059_vm6 = vcmask 1043456   ;;  %vm2727_vm7 = vcmask 516096  }
  0x4d   : > { %1338 = vmatpush.bf16.msrb.mxu0 %v2938_v2  ;;  %v3147_v2 = vld [vmem:[%s5874_s1 + $0x1e0] sm:$0xf0]  ;;  %v3565_v51 = vld [vmem:[%s5874_s1 + $0x3ec] sm:$0xf0]  ;;  %vm2700_vm8 = vcmask 523264   ;;  %vm2806_vm9 = vcmask 57344  }
  0x4e   : > { %1396 = vmatpush.bf16.msrb.mxu2 %v2946_v60  ;;  %v3155_v60 = vld [vmem:[%s5874_s1 + $0x1e8] sm:$0xf0]  ;;  %v3150_v5 = vor.u32 %v3491_v1, %v3147_v2  ;;  %v3355_v2 = vld [vmem:[%s5874_s1 + $0x370] sm:$0xf0]  ;;  %vm2824_vm10 = vcmask 0  }
  0x4f   : > { %1425 = vmatpush.bf16.msrb.mxu3 %v2950_v63  ;;  %1367 = vmatpush.bf16.msrb.mxu1 %v2942_v3  ;;  %v3158_v63 = vor.u32 %v3492_v58, %v3155_v60  ;;  %v3089_v3 = vld [vmem:[%s5874_s1 + $0x128] sm:$0xf]  ;;  %v3363_v60 = vld [vmem:[%s5874_s1 + $0x378] sm:$0xf0] }
  0x50   : > { %1233 = vmatmul.bf16.gmra.mxu0 %v4106_v4  ;;  %1262 = vmatmul.bf16.gmra.mxu1 %v4106_v4  ;;  %v3090_v9 = vor.u32 %v3484_v6, %v3089_v3  ;;  %v3297_v3 = vld [vmem:[%s5874_s1 + $0x2b8] sm:$0xf] }
  0x51   : > { %1291 = vmatmul.bf16.gmra.mxu2 %v4106_v4  ;;  %1447 = vmatpush.bf16.msra.mxu0 %v3402_v13  ;;  %v3475_v13 = vld [vmem:[%s5874_s1 + $0x124] sm:$0xf] }
  0x52   : > { %1320 = vmatmul.bf16.gmra.mxu3 %v4106_v4  ;;  %1505 = vmatpush.bf16.msra.mxu2 %v3410_v8  ;;  %v3091_v8 = vld [vmem:[%s5874_s1 + $0x168] sm:$0xf0]  ;;  %v3086_v16 = vor.u32 %v3475_v13, %v3083_v15  ;;  %v3525_v13 = vld [vmem:[%s5874_s1 + $0x2b4] sm:$0xf] }
  0x53   : > { %1534 = vmatpush.bf16.msra.mxu3 %v3414_v12  ;;  %1476 = vmatpush.bf16.msra.mxu1 %v3406_v17  ;;  %v3094_v10 = vor.u32 %v3476_v7, %v3091_v8  ;;  %v3483_v12 = vld [vmem:[%s5874_s1 + $0x15c] sm:$0xf0]  ;;  %v3025_v17 = vld [vmem:[%s5874_s1 + $0xa8] sm:$0xf]  ;;  %v3526_v8 = vld [vmem:[%s5874_s1 + $0x2bc] sm:$0xf] }
  0x54   : > { %v3082_v14 = vor.u32 %v3483_v12, %v3081_v11  ;;  %v3026_v21 = vor.u32 %v3468_v18, %v3025_v17  ;;  %v3289_v11 = vld [vmem:[%s5874_s1 + $0x2b0] sm:$0xf]  ;;  %v3291_v15 = vld [vmem:[%s5874_s1 + $0x2f0] sm:$0xf0]  ;;  %v3518_v17 = vld [vmem:[%s5874_s1 + $0x274] sm:$0xf0] }
  0x55   : > { %1448 = vmatpush.bf16.msra.mxu0 %v3338_v27  ;;  %v3459_v27 = vld [vmem:[%s5874_s1 + $0xa4] sm:$0xf]  ;;  %v3533_v12 = vld [vmem:[%s5874_s1 + $0x2ec] sm:$0xf0] }
  0x56   : > { %1506 = vmatpush.bf16.msra.mxu2 %v3346_v22  ;;  %v3027_v22 = vld [vmem:[%s5874_s1 + $0xe8] sm:$0xf0]  ;;  %v3022_v31 = vor.u32 %v3459_v27, %v3019_v28  ;;  %v4408_v18 = vld [vmem:[%s5875_s2] sm:$0xff] }
  0x57   : > { %1535 = vmatpush.bf16.msra.mxu3 %v3350_v23  ;;  %1477 = vmatpush.bf16.msra.mxu1 %v3342_v29  ;;  %v3017_v23 = vld [vmem:[%s5874_s1 + $0xa0] sm:$0xf]  ;;  %v3030_v25 = vor.u32 %v3460_v19, %v3027_v22  ;;  %v2961_v29 = vld [vmem:[%s5874_s1 + $0x28] sm:$0xf]  ;;  %v4417_v27 = vperm.slane %v4408_v18, 0  ;;  %v4421_v28 = vperm.slane %v4408_v18, 1 }
  0x58   : > { %v3018_v26 = vor.u32 %v3467_v24, %v3017_v23  ;;  %v2962_v35 = vor.u32 %v3452_v32, %v2961_v29  ;;  %v3510_v23 = vld [vmem:[%s5874_s1 + $0x23c] sm:$0xf]  ;;  %v3225_v29 = vld [vmem:[%s5874_s1 + $0x230] sm:$0xf]  ;;  %v3509_v32 = vld [vmem:[%s5874_s1 + $0x234] sm:$0xf] }
  0x59   : > { %1449 = vmatpush.bf16.msra.mxu0 %v3274_v39  ;;  %v3443_v39 = vld [vmem:[%s5874_s1 + $0x24] sm:$0xf]  ;;  %v3235_v24 = vld [vmem:[%s5874_s1 + $0x278] sm:$0xf0]  ;;  %v4458_v52 = vperm.slane %v4408_v18, 3 }
  0x5a   : > { %1507 = vmatpush.bf16.msra.mxu2 %v3282_v34  ;;  %v2963_v34 = vld [vmem:[%s5874_s1 + $0x68] sm:$0xf0]  ;;  %v2958_v43 = vor.u32 %v3443_v39, %v2955_v41 }
  0x5b   : > { %1536 = vmatpush.bf16.msra.mxu3 %v3286_v38  ;;  %1478 = vmatpush.bf16.msra.mxu1 %v3278_v44  ;;  %v2966_v36 = vor.u32 %v3444_v33, %v2963_v34  ;;  %v3451_v38 = vld [vmem:[%s5874_s1 + $0x5c] sm:$0xf0]  ;;  %v3425_v44 = vld [vmem:[%s5874_s1 + $0x3b8] sm:$0xf] }
  0x5c   : > { %v2954_v40 = vor.u32 %v3451_v38, %v2953_v37  ;;  %v3426_v47 = vor.u32 %v3566_v45, %v3425_v44  ;;  %v3502_v37 = vld [vmem:[%s5874_s1 + $0x1f4] sm:$0xf0]  ;;  %v3494_v44 = vld [vmem:[%s5874_s1 + $0x1bc] sm:$0xf] }
  0x5d   : > { %1450 = vmatpush.bf16.msra.mxu0 %v3210_v53  ;;  %v3418_v53 = vor.u32 %v3565_v51, %v3417_v50  ;;  %v3171_v45 = vld [vmem:[%s5874_s1 + $0x1f8] sm:$0xf0] }
  0x5e   : > { %1508 = vmatpush.bf16.msra.mxu2 %v3218_v48  ;;  %v3427_v48 = vld [vmem:[%s5874_s1 + $0x3f8] sm:$0xf0] }
  0x5f   : > { %1537 = vmatpush.bf16.msra.mxu3 %v3222_v49  ;;  %1479 = vmatpush.bf16.msra.mxu1 %v3214_v55  ;;  %v3430_v49 = vor.u32 %v3558_v46, %v3427_v48  ;;  %v3361_v55 = vld [vmem:[%s5874_s1 + $0x338] sm:$0xf]  ;;  %v3174_v48 = vor.u32 %v3494_v44, %v3171_v45  ;;  %v3462_v44 = vld [vmem:[%s5874_s1 + $0xbc] sm:$0xf] }
  0x60   : > { %1238 = vmatmul.bf16.gmra.mxu0 %v4161_v30  ;;  %1267 = vmatmul.bf16.gmra.mxu1 %v4161_v30  ;;  %v3362_v58 = vor.u32 %v3550_v56, %v3361_v55  ;;  %v3043_v45 = vld [vmem:[%s5874_s1 + $0xf8] sm:$0xf0] }
  0x61   : > { %1296 = vmatmul.bf16.gmra.mxu2 %v4161_v30  ;;  %1451 = vmatpush.bf16.msra.mxu0 %v3146_v0  ;;  %v3541_v0 = vld [vmem:[%s5874_s1 + $0x334] sm:$0xf] }
  0x62   : > { %1325 = vmatmul.bf16.gmra.mxu3 %v4161_v30  ;;  %1509 = vmatpush.bf16.msra.mxu2 %v3154_v59  ;;  %v3542_v59 = vld [vmem:[%s5874_s1 + $0x33c] sm:$0xf]  ;;  %v3358_v6 = vor.u32 %v3541_v0, %v3355_v2  ;;  %v3105_v2 = vld [vmem:[%s5874_s1 + $0x138] sm:$0xf] }
  0x63   : > { %1538 = vmatpush.bf16.msra.mxu3 %v3158_v63  ;;  %1480 = vmatpush.bf16.msra.mxu1 %v3150_v5  ;;  %v3366_v61 = vor.u32 %v3542_v59, %v3363_v60  ;;  %v3549_v63 = vld [vmem:[%s5874_s1 + $0x36c] sm:$0xf0]  ;;  %v3534_v5 = vld [vmem:[%s5874_s1 + $0x2f4] sm:$0xf0] }
  0x64   : > { %v3354_v1 = vor.u32 %v3549_v63, %v3353_v62  ;;  %v3298_v7 = vor.u32 %v3534_v5, %v3297_v3  ;;  %v3161_v59 = vld [vmem:[%s5874_s1 + $0x1b0] sm:$0xf]  ;;  %v3486_v3 = vld [vmem:[%s5874_s1 + $0x174] sm:$0xf0] }
  0x65   : > { %1452 = vmatpush.bf16.msra.mxu0 %v3082_v14  ;;  %v3290_v14 = vor.u32 %v3533_v12, %v3289_v11  ;;  %v3501_v60 = vld [vmem:[%s5874_s1 + $0x1ec] sm:$0xf0]  ;;  %v3107_v11 = vld [vmem:[%s5874_s1 + $0x178] sm:$0xf0] }
  0x66   : > { %1510 = vmatpush.bf16.msra.mxu2 %v3090_v9  ;;  %v3299_v9 = vld [vmem:[%s5874_s1 + $0x2f8] sm:$0xf0]  ;;  %v3162_v0 = vor.u32 %v3501_v60, %v3161_v59 }
  0x67   : > { %1539 = vmatpush.bf16.msra.mxu3 %v3094_v10  ;;  %1481 = vmatpush.bf16.msra.mxu1 %v3086_v16  ;;  %v3302_v10 = vor.u32 %v3526_v8, %v3299_v9  ;;  %v3233_v16 = vld [vmem:[%s5874_s1 + $0x238] sm:$0xf]  ;;  %v3106_v9 = vor.u32 %v3486_v3, %v3105_v2 }
  0x68   : > { %v3234_v22 = vor.u32 %v3518_v17, %v3233_v16 }
  0x69   : > { %1453 = vmatpush.bf16.msra.mxu0 %v3018_v26  ;;  %v3238_v26 = vor.u32 %v3510_v23, %v3235_v24 }
  0x6a   : > { %1511 = vmatpush.bf16.msra.mxu2 %v3026_v21  ;;  %v3294_v21 = vor.u32 %v3525_v13, %v3291_v15 }
  0x6b   : > { %1540 = vmatpush.bf16.msra.mxu3 %v3030_v25  ;;  %1482 = vmatpush.bf16.msra.mxu1 %v3022_v31  ;;  %v3517_v31 = vld [vmem:[%s5874_s1 + $0x26c] sm:$0xf0] }
  0x6d   : > { %1454 = vmatpush.bf16.msra.mxu0 %v2954_v40 }
  0x6e   : > { %1512 = vmatpush.bf16.msra.mxu2 %v2962_v35  ;;  %v3226_v35 = vor.u32 %v3517_v31, %v3225_v29 }
  0x6f   : > { %1541 = vmatpush.bf16.msra.mxu3 %v2966_v36  ;;  %1483 = vmatpush.bf16.msra.mxu1 %v2958_v43  ;;  %v3169_v36 = vld [vmem:[%s5874_s1 + $0x1b8] sm:$0xf] }
  0x70   : > { %1339 = vmatmul.bf16.vlgmr.msrb.gmra.mxu0 %v3924_v42  ;;  %1368 = vmatmul.bf16.vlgmr.msrb.gmra.mxu1 %v3924_v42  ;;  %v3170_v43 = vor.u32 %v3502_v37, %v3169_v36  ;;  %v3099_v36 = vld [vmem:[%s5874_s1 + $0x170] sm:$0xf0]  ;;  %v3470_v37 = vld [vmem:[%s5874_s1 + $0xf4] sm:$0xf0] }
  0x71   : > { %1397 = vmatmul.bf16.vlgmr.msrb.gmra.mxu2 %v3924_v42  ;;  %1563 = vmatpush.bf16.msrb.mxu0 %v3418_v53 }
  0x72   : > { %1426 = vmatmul.bf16.vlgmr.msrb.gmra.mxu3 %v3924_v42  ;;  %1621 = vmatpush.bf16.msrb.mxu2 %v3426_v47 }
  0x73   : > { %1650 = vmatpush.bf16.msrb.mxu3 %v3430_v49  ;;  %1592 = vmatpush.bf16.msrb.mxu1 %v3422_v57  ;;  %v4454_v49 = vperm.slane %v4408_v18, 2 }
  0x75   : > { %1564 = vmatpush.bf16.msrb.mxu0 %v3354_v1  ;;  %v3163_v1 = vld [vmem:[%s5874_s1 + $0x1f0] sm:$0xf0] }
  0x76   : > { %1622 = vmatpush.bf16.msrb.mxu2 %v3362_v58 }
  0x77   : > { %1651 = vmatpush.bf16.msrb.mxu3 %v3366_v61  ;;  %1593 = vmatpush.bf16.msrb.mxu1 %v3358_v6  ;;  %v3493_v61 = vld [vmem:[%s5874_s1 + $0x1b4] sm:$0xf] }
  0x78   : > { %v3166_v8 = vor.u32 %v3493_v61, %v3163_v1  ;;  %v3461_v61 = vld [vmem:[%s5874_s1 + $0xb4] sm:$0xf] }
  0x79   : > { %1565 = vmatpush.bf16.msrb.mxu0 %v3290_v14 }
  0x7a   : > { %1623 = vmatpush.bf16.msrb.mxu2 %v3298_v7 }
  0x7b   : > { %1652 = vmatpush.bf16.msrb.mxu3 %v3302_v10  ;;  %1594 = vmatpush.bf16.msrb.mxu1 %v3294_v21  ;;  %v3478_v10 = vld [vmem:[%s5874_s1 + $0x13c] sm:$0xf] }
  0x7c   : > { %v3110_v15 = vor.u32 %v3478_v10, %v3107_v11 }
  0x7d   : > { %1566 = vmatpush.bf16.msrb.mxu0 %v3226_v35 }
  0x7e   : > { %1624 = vmatpush.bf16.msrb.mxu2 %v3234_v22 }
  0x7f   : > { %1653 = vmatpush.bf16.msrb.mxu3 %v3238_v26 }
  0x80   : > { %1344 = vmatmul.bf16.gmra.mxu0 %v4015_v20  ;;  %1373 = vmatmul.bf16.gmra.mxu1 %v4015_v20 }
  0x81   : > { %1402 = vmatmul.bf16.gmra.mxu2 %v4015_v20  ;;  %1567 = vmatpush.bf16.msrb.mxu0 %v3162_v0 }
  0x82   : > { %1431 = vmatmul.bf16.gmra.mxu3 %v4015_v20  ;;  %1625 = vmatpush.bf16.msrb.mxu2 %v3170_v43 }
  0x83   : > { %1654 = vmatpush.bf16.msrb.mxu3 %v3174_v48 }
  0x86   : > { %1626 = vmatpush.bf16.msrb.mxu2 %v3106_v9 }
  0x87   : > { %1655 = vmatpush.bf16.msrb.mxu3 %v3110_v15 }
  0x90   : > { %1349 = vmatmul.bf16.gmra.mxu0 %v4106_v4  ;;  %1378 = vmatmul.bf16.gmra.mxu1 %v4106_v4 }
  0x91   : > { %1407 = vmatmul.bf16.gmra.mxu2 %v4106_v4 }
  0x92   : > { %1436 = vmatmul.bf16.gmra.mxu3 %v4106_v4 }
  0xa0   : > { %1354 = vmatmul.bf16.gmra.mxu0 %v4161_v30  ;;  %1383 = vmatmul.bf16.gmra.mxu1 %v4161_v30 }
  0xa1   : > { %1412 = vmatmul.bf16.gmra.mxu2 %v4161_v30 }
  0xa2   : > { %1441 = vmatmul.bf16.gmra.mxu3 %v4161_v30 }
  0xad   : > { %v1224_v19 = vpop.f32.mrf.mxu0  ;;  %v1253_v25 = vpop.f32.mrf.mxu1 }
  0xae   : > { %v1225_v33 = vadd.f32 %v1224_v19, %v4417_v27  ;;  %v1254_v38 = vadd.f32 %v1253_v25, %v4421_v28 }
  0xb0   : > { %1455 = vmatmul.bf16.vlgmr.msra.gmra.mxu0 %v3924_v42  ;;  %1484 = vmatmul.bf16.vlgmr.msra.gmra.mxu1 %v3924_v42  ;;  %v1679_v51 = vmax.f32 %v1225_v33, 0.0  ;;  %v1680_v54 = vmax.f32 %v1254_v38, 0.0  ;;  %v3485_v33 = vld [vmem:[%s5874_s1 + $0x16c] sm:$0xf0] }
  0xb1   : > { %1513 = vmatmul.bf16.vlgmr.msra.gmra.mxu2 %v3924_v42 }
  0xb2   : > { %1542 = vmatmul.bf16.vlgmr.msra.gmra.mxu3 %v3924_v42  ;;  %v3227_v42 = vld [vmem:[%s5874_s1 + $0x270] sm:$0xf0] }
  0xb3   : > { %v3230_v41 = vor.u32 %v3509_v32, %v3227_v42  ;;  %v3097_v32 = vld [vmem:[%s5874_s1 + $0x130] sm:$0xf] }
  0xb4   : > { %v1282_v34 = vpop.f32.mrf.mxu2  ;;  %v3098_v42 = vor.u32 %v3485_v33, %v3097_v32 }
  0xb5   : > { %v1311_v39 = vpop.f32.mrf.mxu3  ;;  %v1226_v40 = vpop.f32.mrf.mxu0  ;;  %1595 = vmatpush.bf16.msrb.mxu1 %v3230_v41  ;;  %v1283_v57 = vadd.f32 %v1282_v34, %v4454_v49  ;;  %v3477_v34 = vld [vmem:[%s5874_s1 + $0x134] sm:$0xf] }
  0xb6   : > { %v1227_v46 = vadd.f32 %v1226_v40, %v4417_v27  ;;  %v1255_v47 = vpop.f32.mrf.mxu1  ;;  %v1312_v62 = vadd.f32 %v1311_v39, %v4458_v52  ;;  %v3102_v41 = vor.u32 %v3477_v34, %v3099_v36  ;;  %1568 = vmatpush.bf16.msrb.mxu0 %v3098_v42 }
  0xb7   : > { %v1256_v50 = vadd.f32 %v1255_v47, %v4421_v28  ;;  %v1681_v16 = vmax.f32 %v1283_v57, 0.0  ;;  %v3469_v57 = vld [vmem:[%s5874_s1 + $0xec] sm:$0xf0] }
  0xb8   : > { %v1695_v53 = vmax.f32 %v1227_v46, 0.0  ;;  %v1682_v21 = vmax.f32 %v1312_v62, 0.0  ;;  %v3035_v62 = vld [vmem:[%s5874_s1 + $0xf0] sm:$0xf0] }
  0xb9   : > { %v1696_v55 = vmax.f32 %v1256_v50, 0.0  ;;  %1596 = vmatpush.bf16.msrb.mxu1 %v3166_v8  ;;  %v3046_v50 = vor.u32 %v3462_v44, %v3043_v45  ;;  %v3038_v1 = vor.u32 %v3461_v61, %v3035_v62 }
  0xba   : > { %v1809_v56 = vadd.f32 %v1695_v53, %v1679_v51 }
  0xbb   : > { %v1822_v58 = vadd.f32 %v1696_v55, %v1680_v54  ;;  %1656 = vmatpush.bf16.msrb.mxu3 %v3046_v50 }
  0xbc   : > { %v1284_v63 = vpop.f32.mrf.mxu2 }
  0xbd   : > { %v1285_v5 = vadd.f32 %v1284_v63, %v4454_v49  ;;  %v1313_v6 = vpop.f32.mrf.mxu3  ;;  %v1229_v7 = vpop.f32.mrf.mxu0  ;;  %1597 = vmatpush.bf16.msrb.mxu1 %v3102_v41 }
  0xbe   : > { %v1314_v12 = vadd.f32 %v1313_v6, %v4458_v52  ;;  %v1230_v13 = vadd.f32 %v1229_v7, %v4417_v27  ;;  %v1258_v14 = vpop.f32.mrf.mxu1  ;;  %v3454_v6 = vld [vmem:[%s5874_s1 + $0x74] sm:$0xf0]  ;;  %v3446_v7 = vld [vmem:[%s5874_s1 + $0x3c] sm:$0xf] }
  0xbf   : > { %v1697_v17 = vmax.f32 %v1285_v5, 0.0  ;;  %v1259_v19 = vadd.f32 %v1258_v14, %v4421_v28  ;;  %v2977_v5 = vld [vmem:[%s5874_s1 + $0x38] sm:$0xf]  ;;  %v3453_v14 = vld [vmem:[%s5874_s1 + $0x6c] sm:$0xf0] }
  0xc0   : > { %v1698_v22 = vmax.f32 %v1314_v12, 0.0  ;;  %v1711_v23 = vmax.f32 %v1230_v13, 0.0  ;;  %1460 = vmatmul.bf16.gmra.mxu0 %v4015_v20  ;;  %1489 = vmatmul.bf16.gmra.mxu1 %v4015_v20  ;;  %v2978_v11 = vor.u32 %v3454_v6, %v2977_v5  ;;  %v2979_v12 = vld [vmem:[%s5874_s1 + $0x78] sm:$0xf0]  ;;  %v2969_v13 = vld [vmem:[%s5874_s1 + $0x30] sm:$0xf] }
  0xc1   : > { %v1835_v24 = vadd.f32 %v1697_v17, %v1681_v16  ;;  %v1712_v25 = vmax.f32 %v1259_v19, 0.0  ;;  %1518 = vmatmul.bf16.gmra.mxu2 %v4015_v20  ;;  %1598 = vmatpush.bf16.msrb.mxu1 %v3038_v1  ;;  %v2982_v19 = vor.u32 %v3446_v7, %v2979_v12 }
  0xc2   : > { %v1848_v26 = vadd.f32 %v1698_v22, %v1682_v21  ;;  %v1810_v29 = vadd.f32 %v1809_v56, %v1711_v23  ;;  %1547 = vmatmul.bf16.gmra.mxu3 %v4015_v20  ;;  %v3041_v20 = vld [vmem:[%s5874_s1 + $0xb8] sm:$0xf]  ;;  %v3033_v56 = vld [vmem:[%s5874_s1 + $0xb0] sm:$0xf]  ;;  %v2970_v21 = vor.u32 %v3453_v14, %v2969_v13  ;;  %v3445_v22 = vld [vmem:[%s5874_s1 + $0x34] sm:$0xf] }
  0xc3   : > { %v1823_v31 = vadd.f32 %v1822_v58, %v1712_v25  ;;  %v3042_v43 = vor.u32 %v3470_v37, %v3041_v20  ;;  %v3034_v60 = vor.u32 %v3469_v57, %v3033_v56  ;;  %v2971_v23 = vld [vmem:[%s5874_s1 + $0x70] sm:$0xf0]  ;;  %1657 = vmatpush.bf16.msrb.mxu3 %v2982_v19 }
  0xc4   : > { %v1287_v35 = vpop.f32.mrf.mxu2 }
  0xc5   : > { %v1288_v38 = vadd.f32 %v1287_v35, %v4454_v49  ;;  %v1316_v39 = vpop.f32.mrf.mxu3  ;;  %v1231_v40 = vpop.f32.mrf.mxu0  ;;  %1627 = vmatpush.bf16.msrb.mxu2 %v3042_v43  ;;  %1569 = vmatpush.bf16.msrb.mxu0 %v3034_v60 }
  0xc6   : > { %v1317_v46 = vadd.f32 %v1316_v39, %v4458_v52  ;;  %v1232_v47 = vadd.f32 %v1231_v40, %v4417_v27  ;;  %v1260_v48 = vpop.f32.mrf.mxu1 }
  0xc7   : > { %v1713_v51 = vmax.f32 %v1288_v38, 0.0  ;;  %v1261_v53 = vadd.f32 %v1260_v48, %v4421_v28 }
  0xc8   : > { %v1714_v54 = vmax.f32 %v1317_v46, 0.0  ;;  %v1727_v55 = vmax.f32 %v1232_v47, 0.0 }
  0xc9   : > { %v1836_v58 = vadd.f32 %v1835_v24, %v1713_v51  ;;  %v1728_v59 = vmax.f32 %v1261_v53, 0.0  ;;  %1628 = vmatpush.bf16.msrb.mxu2 %v2978_v11  ;;  %1570 = vmatpush.bf16.msrb.mxu0 %v2970_v21 }
  0xca   : > { %v1849_v63 = vadd.f32 %v1848_v26, %v1714_v54  ;;  %v1811_v0 = vadd.f32 %v1810_v29, %v1727_v55  ;;  %v2974_v26 = vor.u32 %v3445_v22, %v2971_v23 }
  0xcb   : > { %v1824_v2 = vadd.f32 %v1823_v31, %v1728_v59 }
  0xcc   : > { %v1289_v3 = vpop.f32.mrf.mxu2  ;;  %1599 = vmatpush.bf16.msrb.mxu1 %v2974_v26 }
  0xcd   : > { %v1290_v8 = vadd.f32 %v1289_v3, %v4454_v49  ;;  %v1318_v9 = vpop.f32.mrf.mxu3  ;;  %v1234_v10 = vpop.f32.mrf.mxu0 }
  0xce   : > { %v1319_v15 = vadd.f32 %v1318_v9, %v4458_v52  ;;  %v1235_v16 = vadd.f32 %v1234_v10, %v4417_v27  ;;  %v1263_v17 = vpop.f32.mrf.mxu1 }
  0xcf   : > { %v1729_v24 = vmax.f32 %v1290_v8, 0.0  ;;  %v1264_v25 = vadd.f32 %v1263_v17, %v4421_v28 }
  0xd0   : > { %v1730_v29 = vmax.f32 %v1319_v15, 0.0  ;;  %v1743_v31 = vmax.f32 %v1235_v16, 0.0  ;;  %1465 = vmatmul.bf16.gmra.mxu0 %v4106_v4  ;;  %1494 = vmatmul.bf16.gmra.mxu1 %v4106_v4 }
  0xd1   : > { %v1837_v32 = vadd.f32 %v1836_v58, %v1729_v24  ;;  %v1744_v33 = vmax.f32 %v1264_v25, 0.0  ;;  %1523 = vmatmul.bf16.gmra.mxu2 %v4106_v4 }
  0xd2   : > { %v1850_v34 = vadd.f32 %v1849_v63, %v1730_v29  ;;  %v1812_v35 = vadd.f32 %v1811_v0, %v1743_v31  ;;  %1552 = vmatmul.bf16.gmra.mxu3 %v4106_v4 }
  0xd3   : > { %v1825_v42 = vadd.f32 %v1824_v2, %v1744_v33 }
  0xd4   : > { %v1292_v36 = vpop.f32.mrf.mxu2 }
  0xd5   : > { %v1293_v20 = vadd.f32 %v1292_v36, %v4454_v49  ;;  %v1321_v37 = vpop.f32.mrf.mxu3  ;;  %v1236_v38 = vpop.f32.mrf.mxu0  ;;  %v3594_v36 = vld [vmem:[%s3903_s23] sm:$0xff] }
  0xd6   : > { %v1322_v39 = vadd.f32 %v1321_v37, %v4458_v52  ;;  %v1237_v40 = vadd.f32 %v1236_v38, %v4417_v27  ;;  %v1265_v41 = vpop.f32.mrf.mxu1 }
  0xd7   : > { %v1745_v43 = vmax.f32 %v1293_v20, 0.0  ;;  %v1266_v44 = vadd.f32 %v1265_v41, %v4421_v28 }
  0xd8   : > { %v1746_v45 = vmax.f32 %v1322_v39, 0.0  ;;  %v1759_v46 = vmax.f32 %v1237_v40, 0.0  ;;  %v2105_v39 = vld [vmem:[%s5879_s6 + $0x78] sm:$0xff] }
  0xd9   : > { %v1838_v47 = vadd.f32 %v1837_v32, %v1745_v43  ;;  %v1760_v4 = vmax.f32 %v1266_v44, 0.0  ;;  %v2137_v40 = vld [vmem:[%s5879_s6 + $0x178] sm:$0xff]  ;;  %2380 = vmatpush.msra.mxu0 %v2105_v39 }
  0xda   : > { %v1851_v48 = vadd.f32 %v1850_v34, %v1746_v45  ;;  %v1813_v50 = vadd.f32 %v1812_v35, %v1759_v46  ;;  %v2153_v44 = vld [vmem:[%s5879_s6 + $0x1f8] sm:$0xff]  ;;  %2420 = vmatpush.msra.mxu2 %v2137_v40 }
  0xdb   : > { %v1826_v51 = vadd.f32 %v1825_v42, %v1760_v4  ;;  %2440 = vmatpush.msra.mxu3 %v2153_v44  ;;  %v2120_v4 = vld [vmem:[%s5879_s6 + $0xf0] sm:$0xff]  ;;  %v2097_v40 = vld [vmem:[%s5879_s6 + $0x38] sm:$0xff] }
  0xdc   : > { %v1294_v53 = vpop.f32.mrf.mxu2  ;;  %v2129_v44 = vld [vmem:[%s5879_s6 + $0x138] sm:$0xff] }
  0xdd   : > { %v1295_v54 = vadd.f32 %v1294_v53, %v4454_v49  ;;  %v1323_v55 = vpop.f32.mrf.mxu3  ;;  %v1239_v56 = vpop.f32.mrf.mxu0 }
  0xde   : > { %v1324_v57 = vadd.f32 %v1323_v55, %v4458_v52  ;;  %v1240_v58 = vadd.f32 %v1239_v56, %v4417_v27  ;;  %v1268_v59 = vpop.f32.mrf.mxu1  ;;  %v2152_v56 = vld [vmem:[%s5879_s6 + $0x1f0] sm:$0xff] }
  0xdf   : > { %v1761_v60 = vmax.f32 %v1295_v54, 0.0  ;;  %v1269_v61 = vadd.f32 %v1268_v59, %v4421_v28  ;;  %v2103_v59 = vld [vmem:[%s5879_s6 + $0x68] sm:$0xff]  ;;  %2441 = vmatpush.msra.mxu3 %v2152_v56 }
  0xe0   : > { %v1762_v62 = vmax.f32 %v1324_v57, 0.0  ;;  %v1775_v63 = vmax.f32 %v1240_v58, 0.0  ;;  %1470 = vmatmul.bf16.gmra.mxu0 %v4161_v30  ;;  %1499 = vmatmul.bf16.gmra.mxu1 %v4161_v30 }
  0xe1   : > { %v1839_v0 = vadd.f32 %v1838_v47, %v1761_v60  ;;  %v1776_v1 = vmax.f32 %v1269_v61, 0.0  ;;  %1528 = vmatmul.bf16.gmra.mxu2 %v4161_v30  ;;  %v2104_v47 = vld [vmem:[%s5879_s6 + $0x70] sm:$0xff]  ;;  %v2119_v60 = vld [vmem:[%s5879_s6 + $0xe8] sm:$0xff] }
  0xe2   : > { %v1852_v2 = vadd.f32 %v1851_v48, %v1762_v62  ;;  %v1814_v3 = vadd.f32 %v1813_v50, %v1775_v63  ;;  %1557 = vmatmul.bf16.gmra.mxu3 %v4161_v30  ;;  %v2136_v48 = vld [vmem:[%s5879_s6 + $0x170] sm:$0xff]  ;;  %2381 = vmatpush.msra.mxu0 %v2104_v47  ;;  %v2135_v61 = vld [vmem:[%s5879_s6 + $0x168] sm:$0xff]  ;;  %v2145_v47 = vld [vmem:[%s5879_s6 + $0x1b8] sm:$0xff] }
  0xe3   : > { %v1827_v5 = vadd.f32 %v1826_v51, %v1776_v1  ;;  %2421 = vmatpush.msra.mxu2 %v2136_v48 }
  0xe4   : > { %v1297_v6 = vpop.f32.mrf.mxu2  ;;  %2382 = vmatpush.msra.mxu0 %v2103_v59  ;;  %v2095_v59 = vld [vmem:[%s5879_s6 + $0x28] sm:$0xff] }
  0xe5   : > { %v1298_v7 = vadd.f32 %v1297_v6, %v4454_v49  ;;  %v1326_v8 = vpop.f32.mrf.mxu3  ;;  %v1241_v9 = vpop.f32.mrf.mxu0  ;;  %2422 = vmatpush.msra.mxu2 %v2135_v61  ;;  %v2127_v61 = vld [vmem:[%s5879_s6 + $0x128] sm:$0xff] }
  0xe6   : > { %v1327_v10 = vadd.f32 %v1326_v8, %v4458_v52  ;;  %v1242_v11 = vadd.f32 %v1241_v9, %v4417_v27  ;;  %v1270_v12 = vpop.f32.mrf.mxu1  ;;  %v2150_v9 = vld [vmem:[%s5879_s6 + $0x1e0] sm:$0xff] }
  0xe7   : > { %v1777_v13 = vmax.f32 %v1298_v7, 0.0  ;;  %v1271_v14 = vadd.f32 %v1270_v12, %v4421_v28  ;;  %v2117_v12 = vld [vmem:[%s5879_s6 + $0xd8] sm:$0xff] }
  0xe8   : > { %v1778_v15 = vmax.f32 %v1327_v10, 0.0  ;;  %v1791_v16 = vmax.f32 %v1242_v11, 0.0  ;;  %v2101_v11 = vld [vmem:[%s5879_s6 + $0x58] sm:$0xff] }
  0xe9   : > { %v1840_v17 = vadd.f32 %v1839_v0, %v1777_v13  ;;  %v1792_v19 = vmax.f32 %v1271_v14, 0.0  ;;  %v2151_v0 = vld [vmem:[%s5879_s6 + $0x1e8] sm:$0xff]  ;;  %v2133_v13 = vld [vmem:[%s5879_s6 + $0x158] sm:$0xff] }
  0xea   : > { %v1853_v21 = vadd.f32 %v1852_v2, %v1778_v15  ;;  %v1815_v30 = vadd.f32 %v1814_v3, %v1791_v16  ;;  %v2102_v2 = vld [vmem:[%s5879_s6 + $0x60] sm:$0xff]  ;;  %2442 = vmatpush.msra.mxu3 %v2151_v0  ;;  %v2149_v16 = vld [vmem:[%s5879_s6 + $0x1d8] sm:$0xff] }
  0xeb   : > { %v1828_v22 = vadd.f32 %v1827_v5, %v1792_v19  ;;  %v2118_v3 = vld [vmem:[%s5879_s6 + $0xe0] sm:$0xff]  ;;  %2383 = vmatpush.msra.mxu0 %v2102_v2 }
  0xec   : > { %v1816_v23 = vrot.slane %v1815_v30, 4  ;;  %v1299_v24 = vpop.f32.mrf.mxu2  ;;  %v2134_v5 = vld [vmem:[%s5879_s6 + $0x160] sm:$0xff]  ;;  %2443 = vmatpush.msra.mxu3 %v2150_v9  ;;  %v2092_v9 = vld [vmem:[%s5879_s6 + $0x10] sm:$0xff] }
  0xed   : > { %v1829_v25 = vrot.slane %v1828_v22, 4  ;;  %v1300_v26 = vadd.f32 %v1299_v24, %v4454_v49  ;;  %v1328_v29 = vpop.f32.mrf.mxu3  ;;  %v4583_v31 = vpop.f32.mrf.mxu0  ;;  %2423 = vmatpush.msra.mxu2 %v2134_v5  ;;  %2384 = vmatpush.msra.mxu0 %v2101_v11  ;;  %v2110_v0 = vld [vmem:[%s5879_s6 + $0xa0] sm:$0xff]  ;;  %v2109_v5 = vld [vmem:[%s5879_s6 + $0x98] sm:$0xff] }
  0xee   : > { %v1817_v27 = vadd.f32 %v1816_v23, %v1815_v30  ;;  %v1329_v32 = vadd.f32 %v1328_v29, %v4458_v52  ;;  %v4586_v28 = vpop.f32.mrf.mxu1  ;;  %v2121_v52 = vld [vmem:[%s5879_s6 + $0xf8] sm:$0xff]  ;;  %v2116_v30 = vld [vmem:[%s5879_s6 + $0xd0] sm:$0xff]  ;;  %2444 = vmatpush.msra.mxu3 %v2149_v16  ;;  %v2142_v2 = vld [vmem:[%s5879_s6 + $0x1a0] sm:$0xff] }
  0xef   : > { %v1830_v33 = vadd.f32 %v1829_v25, %v1828_v22  ;;  %v1793_v34 = vmax.f32 %v1300_v26, 0.0  ;;  %2400 = vmatpush.msra.mxu1 %v2121_v52  ;;  %2424 = vmatpush.msra.mxu2 %v2133_v13  ;;  %v2132_v22 = vld [vmem:[%s5879_s6 + $0x150] sm:$0xff]  ;;  %v2146_v52 = vld [vmem:[%s5879_s6 + $0x1c0] sm:$0xff] }
  0xf0   : > { %v1818_v35 = vrot.slane %v1817_v27, 2  ;;  %v1794_v42 = vmax.f32 %v1329_v32, 0.0  ;;  %1571 = vmatmul.bf16.vlgmr.msrb.gmra.mxu0 %v3594_v36  ;;  %1600 = vmatmul.bf16.vlgmr.msrb.gmra.mxu1 %v3594_v36  ;;  %v2148_v26 = vld [vmem:[%s5879_s6 + $0x1d0] sm:$0xff]  ;;  %v2099_v32 = vld [vmem:[%s5879_s6 + $0x48] sm:$0xff] }
  0xf1   : > { %v1831_v20 = vrot.slane %v1830_v33, 2  ;;  %v1841_v37 = vadd.f32 %v1840_v17, %v1793_v34  ;;  %1629 = vmatmul.bf16.vlgmr.msrb.gmra.mxu2 %v3594_v36  ;;  %2401 = vmatpush.msra.mxu1 %v2120_v4  ;;  %v2096_v4 = vld [vmem:[%s5879_s6 + $0x30] sm:$0xff] }
  0xf2   : > { %v1819_v38 = vadd.f32 %v1818_v35, %v1817_v27  ;;  %v1854_v49 = vadd.f32 %v1853_v21, %v1794_v42  ;;  %1658 = vmatmul.bf16.vlgmr.msrb.gmra.mxu3 %v3594_v36  ;;  %v2100_v21 = vld [vmem:[%s5879_s6 + $0x50] sm:$0xff]  ;;  %2425 = vmatpush.msra.mxu2 %v2132_v22  ;;  %v2131_v35 = vld [vmem:[%s5879_s6 + $0x148] sm:$0xff]  ;;  %v4806_v22 = vperm.slane %v4408_v18, 4 }
  0xf3   : > { %v1832_v41 = vadd.f32 %v1831_v20, %v1830_v33  ;;  %v1842_v43 = vrot.slane %v1841_v37, 4  ;;  %2402 = vmatpush.msra.mxu1 %v2119_v60  ;;  %2385 = vmatpush.msra.mxu0 %v2100_v21  ;;  %v2115_v33 = vld [vmem:[%s5879_s6 + $0xc8] sm:$0xff]  ;;  %v2140_v16 = vld [vmem:[%s5879_s6 + $0x190] sm:$0xff] }
  0xf4   : > { %v1855_v45 = vrot.slane %v1854_v49, 4  ;;  %v4601_v46 = vpop.f32.mrf.mxu2  ;;  %v1820_v50 = vrot.slane %v1819_v38, 1  ;;  %2445 = vmatpush.msra.mxu3 %v2148_v26  ;;  %v3595_v36 = vld [vmem:[%s3903_s23 + $0x8] sm:$0xff]  ;;  %2426 = vmatpush.msra.mxu2 %v2131_v35  ;;  %v2090_v26 = vld [vmem:[%s5879_s6] sm:$0xff] }
  0xf5   : > { %v1833_v51 = vrot.slane %v1832_v41, 1  ;;  %v1843_v53 = vadd.f32 %v1842_v43, %v1841_v37  ;;  %v4612_v54 = vpop.f32.mrf.mxu3  ;;  %v4614_v55 = vpop.f32.mrf.mxu0  ;;  %2403 = vmatpush.msra.mxu1 %v2118_v3  ;;  %2386 = vmatpush.msra.mxu0 %v2099_v32  ;;  %v2147_v20 = vld [vmem:[%s5879_s6 + $0x1c8] sm:$0xff]  ;;  %v2098_v37 = vld [vmem:[%s5879_s6 + $0x40] sm:$0xff]  ;;  %v2113_v43 = vld [vmem:[%s5879_s6 + $0xb8] sm:$0xff] }
  0xf6   : > { %v1856_v57 = vadd.f32 %v1855_v45, %v1854_v49  ;;  %v4619_v58 = vpop.f32.mrf.mxu1  ;;  %v1821_v6 = vadd.f32 %v1820_v50, %v1819_v38  ;;  %v2114_v38 = vld [vmem:[%s5879_s6 + $0xc0] sm:$0xff]  ;;  %2446 = vmatpush.msra.mxu3 %v2147_v20  ;;  %v2111_v60 = vld [vmem:[%s5879_s6 + $0xa8] sm:$0xff]  ;;  %v2093_v3 = vld [vmem:[%s5879_s6 + $0x18] sm:$0xff]  ;;  %v4835_v20 = vperm.slane %v4408_v18, 7 }
  0xf7   : > { %v1834_v62 = vadd.f32 %v1833_v51, %v1832_v41  ;;  %v1844_v63 = vrot.slane %v1843_v53, 2  ;;  %2404 = vmatpush.msra.mxu1 %v2117_v12  ;;  %v2130_v49 = vld [vmem:[%s5879_s6 + $0x140] sm:$0xff]  ;;  %2387 = vmatpush.msra.mxu0 %v2098_v37  ;;  %v2112_v51 = vld [vmem:[%s5879_s6 + $0xb0] sm:$0xff]  ;;  %v2107_v21 = vld [vmem:[%s5879_s6 + $0x88] sm:$0xff]  ;;  %v1343_v37 = vadd.f32 %v4614_v55, %v4806_v22 }
  0xf8   : > { %v1857_v1 = vrot.slane %v1856_v57, 2  ;;  %2427 = vmatpush.msra.mxu2 %v2130_v49  ;;  %2447 = vmatpush.msra.mxu3 %v2146_v52  ;;  %v2108_v12 = vld [vmem:[%s5879_s6 + $0x90] sm:$0xff]  ;;  %v2106_v32 = vld [vmem:[%s5879_s6 + $0x80] sm:$0xff]  ;;  %v2201_v52 = vld [vmem:[%s5879_s6 + $0x378] sm:$0xff] }
  0xf9   : > { %v2033_v7 = vrot.slane %v1834_v62, 7  ;;  %v1845_v8 = vadd.f32 %v1844_v63, %v1843_v53  ;;  %2405 = vmatpush.msra.mxu1 %v2116_v30  ;;  %2388 = vmatpush.msra.mxu0 %v2097_v40  ;;  %v2128_v53 = vld [vmem:[%s5879_s6 + $0x130] sm:$0xff]  ;;  %v2143_v62 = vld [vmem:[%s5879_s6 + $0x1a8] sm:$0xff]  ;;  %v2094_v63 = vld [vmem:[%s5879_s6 + $0x20] sm:$0xff] }
  0xfa   : > { %v1858_v10 = vadd.f32 %v1857_v1, %v1856_v57  ;;  %2428 = vmatpush.msra.mxu2 %v2129_v44  ;;  %v2144_v57 = vld [vmem:[%s5879_s6 + $0x1b0] sm:$0xff]  ;;  %2448 = vmatpush.msra.mxu3 %v2145_v47  ;;  %v2126_v1 = vld [vmem:[%s5879_s6 + $0x120] sm:$0xff]  ;;  %v2123_v30 = vld [vmem:[%s5879_s6 + $0x108] sm:$0xff] }
  0xfb   : > { %v2048_v14 = vsel %vm2047_vm0, %v1821_v6, %v2033_v7  ;;  %v1846_v15 = vrot.slane %v1845_v8, 1  ;;  %2406 = vmatpush.msra.mxu1 %v2115_v33  ;;  %2389 = vmatpush.msra.mxu0 %v2096_v4  ;;  %v2125_v6 = vld [vmem:[%s5879_s6 + $0x118] sm:$0xff]  ;;  %v2122_v33 = vld [vmem:[%s5879_s6 + $0x100] sm:$0xff]  ;;  %v2168_v44 = vld [vmem:[%s5879_s6 + $0x270] sm:$0xff] }
  0xfc   : > { %v1859_v17 = vrot.slane %v1858_v10, 1  ;;  %v4658_v19 = vpop.f32.mrf.mxu2  ;;  %2429 = vmatpush.msra.mxu2 %v2128_v53  ;;  %2449 = vmatpush.msra.mxu3 %v2144_v57  ;;  %v2200_v4 = vld [vmem:[%s5879_s6 + $0x370] sm:$0xff]  ;;  %v4883_v57 = vadd.f32 %v4612_v54, %v4835_v20 }
  0xfd   : > { %v1847_v23 = vadd.f32 %v1846_v15, %v1845_v8  ;;  %v4669_v24 = vpop.f32.mrf.mxu3  ;;  %v4671_v25 = vpop.f32.mrf.mxu0  ;;  %2407 = vmatpush.msra.mxu1 %v2114_v38  ;;  %2390 = vmatpush.msra.mxu0 %v2095_v59  ;;  %v2141_v8 = vld [vmem:[%s5879_s6 + $0x198] sm:$0xff]  ;;  %v3596_v15 = vld [vmem:[%s3903_s23 + $0x10] sm:$0xff]  ;;  %v1699_v59 = vmax.f32 %v1343_v37, 0.0 }
  0xfe   : > { %v1860_v29 = vadd.f32 %v1859_v17, %v1858_v10  ;;  %v4676_v27 = vpop.f32.mrf.mxu1  ;;  %2430 = vmatpush.msra.mxu2 %v2127_v61  ;;  %2450 = vmatpush.msra.mxu3 %v2143_v62  ;;  %v2091_v17 = vld [vmem:[%s5879_s6 + $0x8] sm:$0xff]  ;;  %v1346_v53 = vadd.f32 %v4671_v25, %v4806_v22  ;;  %v4897_v54 = vadd.f32 %v4669_v24, %v4835_v20 }
  0xff   : > { %v2034_v34 = vrot.slane %v1847_v23, 6  ;;  %2408 = vmatpush.msra.mxu1 %v2113_v43  ;;  %2391 = vmatpush.msra.mxu0 %v2094_v63  ;;  %v2139_v23 = vld [vmem:[%s5879_s6 + $0x188] sm:$0xff]  ;;  %v2217_v43 = vld [vmem:[%s5879_s6 + $0x3f8] sm:$0xff] }
 0x100   : > { %v2035_v42 = vrot.slane %v1860_v29, 5  ;;  %1576 = vmatmul.bf16.gmra.mxu0 %v3595_v36  ;;  %1605 = vmatmul.bf16.gmra.mxu1 %v3595_v36  ;;  %v4815_v29 = vperm.slane %v4408_v18, 5  ;;  %v2183_v25 = vld [vmem:[%s5879_s6 + $0x2e8] sm:$0xff] }
 0x101   : > { %1634 = vmatmul.bf16.gmra.mxu2 %v3595_v36  ;;  %2409 = vmatpush.msra.mxu1 %v2112_v51  ;;  %v2215_v63 = vld [vmem:[%s5879_s6 + $0x3e8] sm:$0xff] }
 0x102   : > { %v2050_v39 = vsel %vm2049_vm1, %v2034_v34, %v2035_v42  ;;  %1663 = vmatmul.bf16.gmra.mxu3 %v3595_v36  ;;  %2431 = vmatpush.msra.mxu2 %v2126_v1  ;;  %v4824_v34 = vperm.slane %v4408_v18, 6  ;;  %v2138_v42 = vld [vmem:[%s5879_s6 + $0x180] sm:$0xff]  ;;  %v2169_v36 = vld [vmem:[%s5879_s6 + $0x278] sm:$0xff]  ;;  %v1341_v18 = vadd.f32 %v4583_v31, %v4806_v22  ;;  %v1372_v55 = vadd.f32 %v4619_v58, %v4815_v29  ;;  %v2184_v58 = vld [vmem:[%s5879_s6 + $0x2f0] sm:$0xff] }
 0x103   : > { %v4708_v41 = vsel %vm2051_vm2, %v2048_v14, %v2050_v39  ;;  %2410 = vmatpush.msra.mxu1 %v2111_v60  ;;  %2451 = vmatpush.msra.mxu3 %v2142_v2  ;;  %v2124_v14 = vld [vmem:[%s5879_s6 + $0x110] sm:$0xff]  ;;  %v2185_v39 = vld [vmem:[%s5879_s6 + $0x2f8] sm:$0xff]  ;;  %v1370_v47 = vadd.f32 %v4586_v28, %v4815_v29  ;;  %v2199_v60 = vld [vmem:[%s5879_s6 + $0x368] sm:$0xff] }
 0x104   : > { %v4716_v45 = vpop.f32.mrf.mxu2  ;;  %2392 = vmatpush.msra.mxu0 %v2093_v3  ;;  %2432 = vmatpush.msra.mxu2 %v2125_v6  ;;  %v1401_v31 = vadd.f32 %v4658_v19, %v4824_v34  ;;  %v1399_v51 = vadd.f32 %v4601_v46, %v4824_v34  ;;  %v2216_v28 = vld [vmem:[%s5879_s6 + $0x3f0] sm:$0xff]  ;;  %v2167_v19 = vld [vmem:[%s5879_s6 + $0x268] sm:$0xff]  ;;  %v4887_v46 = vadd.f32 %v4676_v27, %v4815_v29  ;;  %v1683_v61 = vmax.f32 %v1341_v18, 0.0  ;;  %v2182_v3 = vld [vmem:[%s5879_s6 + $0x2e0] sm:$0xff] }
 0x105   : > { %v4724_v48 = vpop.f32.mrf.mxu3  ;;  %v4726_v50 = vpop.f32.mrf.mxu0  ;;  %2411 = vmatpush.msra.mxu1 %v2110_v0  ;;  %2452 = vmatpush.msra.mxu3 %v2141_v8  ;;  %v1700_v62 = vmax.f32 %v1372_v55, 0.0  ;;  %v2166_v0 = vld [vmem:[%s5879_s6 + $0x260] sm:$0xff]  ;;  %v1684_v1 = vmax.f32 %v1370_v47, 0.0  ;;  %v4911_v24 = vadd.f32 %v4716_v45, %v4824_v34  ;;  %v1715_v8 = vmax.f32 %v1346_v53, 0.0  ;;  %v2164_v47 = vld [vmem:[%s5879_s6 + $0x250] sm:$0xff] }
 0x106   : > { %v4734_v56 = vpop.f32.mrf.mxu1  ;;  %2393 = vmatpush.msra.mxu0 %v2092_v9  ;;  %2433 = vmatpush.msra.mxu2 %v2124_v14  ;;  %v4901_v27 = vadd.f32 %v4726_v50, %v4806_v22  ;;  %v1701_v2 = vmax.f32 %v1401_v31, 0.0  ;;  %v1685_v6 = vmax.f32 %v1399_v51, 0.0  ;;  %v4925_v45 = vadd.f32 %v4724_v48, %v4835_v20  ;;  %v2165_v14 = vld [vmem:[%s5879_s6 + $0x258] sm:$0xff]  ;;  %v2180_v53 = vld [vmem:[%s5879_s6 + $0x2d0] sm:$0xff] }
 0x107   : > { %2412 = vmatpush.msra.mxu1 %v2109_v5  ;;  %2453 = vmatpush.msra.mxu3 %v2140_v16  ;;  %v4915_v50 = vadd.f32 %v4734_v56, %v4815_v29  ;;  %v2198_v5 = vld [vmem:[%s5879_s6 + $0x360] sm:$0xff]  ;;  %v1861_v48 = vadd.f32 %v1699_v59, %v1683_v61  ;;  %v1716_v16 = vmax.f32 %v4887_v46, 0.0  ;;  %v2212_v46 = vld [vmem:[%s5879_s6 + $0x3d0] sm:$0xff] }
 0x108   : > { %2394 = vmatpush.msra.mxu0 %v2091_v17  ;;  %2434 = vmatpush.msra.mxu2 %v2123_v30  ;;  %v2181_v30 = vld [vmem:[%s5879_s6 + $0x2d8] sm:$0xff]  ;;  %v1718_v18 = vmax.f32 %v4925_v45, 0.0 }
 0x109   : > { %2413 = vmatpush.msra.mxu1 %v2108_v12  ;;  %2454 = vmatpush.msra.mxu3 %v2139_v23  ;;  %v2214_v12 = vld [vmem:[%s5879_s6 + $0x3e0] sm:$0xff]  ;;  %v1874_v23 = vadd.f32 %v1700_v62, %v1684_v1  ;;  %v1732_v37 = vmax.f32 %v4915_v50, 0.0 }
 0x10a   : > { %2395 = vmatpush.msra.mxu0 %v2090_v26  ;;  %2435 = vmatpush.msra.mxu2 %v2122_v33  ;;  %v1702_v26 = vmax.f32 %v4897_v54, 0.0  ;;  %v2179_v54 = vld [vmem:[%s5879_s6 + $0x2c8] sm:$0xff]  ;;  %v2162_v50 = vld [vmem:[%s5879_s6 + $0x240] sm:$0xff] }
 0x10b   : > { %2414 = vmatpush.msra.mxu1 %v2107_v21  ;;  %2455 = vmatpush.msra.mxu3 %v2138_v42  ;;  %v1887_v42 = vadd.f32 %v1701_v2, %v1685_v6  ;;  %v1875_v31 = vadd.f32 %v1874_v23, %v1716_v16 }
 0x10c   : > { %v4772_v7 = vpop.f32.mrf.mxu2  ;;  %2460 = vmatpush.msrb.mxu0 %v2169_v36  ;;  %2500 = vmatpush.msrb.mxu2 %v2201_v52  ;;  %v1717_v36 = vmax.f32 %v4911_v24, 0.0  ;;  %v2197_v52 = vld [vmem:[%s5879_s6 + $0x358] sm:$0xff]  ;;  %v2211_v24 = vld [vmem:[%s5879_s6 + $0x3c8] sm:$0xff] }
 0x10d   : > { %v4780_v10 = vpop.f32.mrf.mxu3  ;;  %v4782_v11 = vpop.f32.mrf.mxu0  ;;  %2415 = vmatpush.msra.mxu1 %v2106_v32  ;;  %2520 = vmatpush.msrb.mxu3 %v2217_v43  ;;  %v1731_v32 = vmax.f32 %v4901_v27, 0.0  ;;  %v1876_v61 = vadd.f32 %v1875_v31, %v1732_v37  ;;  %v2195_v27 = vld [vmem:[%s5879_s6 + $0x348] sm:$0xff]  ;;  %v2160_v37 = vld [vmem:[%s5879_s6 + $0x230] sm:$0xff] }
 0x10e   : > { %v4787_v13 = vpop.f32.mrf.mxu1  ;;  %2461 = vmatpush.msrb.mxu0 %v2168_v44  ;;  %2501 = vmatpush.msrb.mxu2 %v2200_v4  ;;  %v4929_v56 = vadd.f32 %v4782_v11, %v4806_v22  ;;  %v3597_v44 = vld [vmem:[%s3903_s23 + $0x18] sm:$0xff]  ;;  %v2208_v31 = vld [vmem:[%s5879_s6 + $0x3b0] sm:$0xff]  ;;  %s369_s23 = scalar_lea.vmem %s5876_s3, %s5888_s11 }
 0x10f   : > { %2480 = vmatpush.msrb.mxu1 %v2185_v39  ;;  %2521 = vmatpush.msrb.mxu3 %v2216_v28  ;;  %v4943_v11 = vadd.f32 %v4787_v13, %v4815_v29  ;;  %v2196_v28 = vld [vmem:[%s5879_s6 + $0x350] sm:$0xff] }
 0x110   : > { %1581 = vmatmul.bf16.gmra.mxu0 %v3596_v15  ;;  %1610 = vmatmul.bf16.gmra.mxu1 %v3596_v15  ;;  %v1747_v55 = vmax.f32 %v4929_v56, 0.0  ;;  %v2178_v56 = vld [vmem:[%s5879_s6 + $0x2c0] sm:$0xff] }
 0x111   : > { %1639 = vmatmul.bf16.gmra.mxu2 %v3596_v15  ;;  %2481 = vmatpush.msrb.mxu1 %v2184_v58  ;;  %v4979_v58 = vadd.f32 %v4772_v7, %v4824_v34  ;;  %v1748_v4 = vmax.f32 %v4943_v11, 0.0  ;;  %v4993_v7 = vadd.f32 %v4780_v10, %v4835_v20  ;;  %v2210_v11 = vld [vmem:[%s5879_s6 + $0x3c0] sm:$0xff] }
 0x112   : > { %1668 = vmatmul.bf16.gmra.mxu3 %v3596_v15  ;;  %2462 = vmatpush.msrb.mxu0 %v2167_v19  ;;  %v1686_v15 = vmax.f32 %v4883_v57, 0.0 }
 0x113   : > { %2482 = vmatpush.msrb.mxu1 %v2183_v25  ;;  %2502 = vmatpush.msrb.mxu2 %v2199_v60  ;;  %v2163_v25 = vld [vmem:[%s5879_s6 + $0x248] sm:$0xff]  ;;  %v1888_v60 = vadd.f32 %v1887_v42, %v1717_v36 }
 0x114   : > { %v4826_v35 = vpop.f32.mrf.mxu2  ;;  %2522 = vmatpush.msrb.mxu3 %v2215_v63  ;;  %2463 = vmatpush.msrb.mxu0 %v2166_v0  ;;  %v1900_v19 = vadd.f32 %v1702_v26, %v1686_v15 }
 0x115   : > { %v4839_v38 = vpop.f32.mrf.mxu3  ;;  %v4841_v49 = vpop.f32.mrf.mxu0  ;;  %2483 = vmatpush.msrb.mxu1 %v2182_v3  ;;  %2503 = vmatpush.msrb.mxu2 %v2198_v5  ;;  %v5004_v62 = vadd.f32 %v4826_v35, %v4824_v34  ;;  %v1733_v3 = vmax.f32 %v4979_v58, 0.0  ;;  %v1877_v5 = vadd.f32 %v1876_v61, %v1748_v4  ;;  %v2159_v58 = vld [vmem:[%s5879_s6 + $0x228] sm:$0xff] }
 0x116   : > { %v4853_v40 = vpop.f32.mrf.mxu1  ;;  %v4954_v33 = vadd.f32 %v4841_v49, %v4806_v22  ;;  %2523 = vmatpush.msrb.mxu3 %v2214_v12  ;;  %2464 = vmatpush.msrb.mxu0 %v2165_v14  ;;  %v1862_v49 = vadd.f32 %v1861_v48, %v1715_v8  ;;  %v1901_v63 = vadd.f32 %v1900_v19, %v1718_v18  ;;  %v2194_v12 = vld [vmem:[%s5879_s6 + $0x340] sm:$0xff]  ;;  %v1734_v14 = vmax.f32 %v4993_v7, 0.0  ;;  %v2191_v19 = vld [vmem:[%s5879_s6 + $0x328] sm:$0xff] }
 0x117   : > { %v4960_v39 = vadd.f32 %v4853_v40, %v4815_v29  ;;  %2484 = vmatpush.msrb.mxu1 %v2181_v30  ;;  %v2213_v40 = vld [vmem:[%s5879_s6 + $0x3d8] sm:$0xff]  ;;  %2504 = vmatpush.msrb.mxu2 %v2197_v52  ;;  %v5015_v1 = vadd.f32 %v4839_v38, %v4835_v20  ;;  %v1749_v30 = vmax.f32 %v5004_v62, 0.0 }
 0x118   : > { %v1863_v57 = vadd.f32 %v1862_v49, %v1731_v32  ;;  %v1763_v59 = vmax.f32 %v4954_v33, 0.0  ;;  %2524 = vmatpush.msrb.mxu3 %v2213_v40  ;;  %2465 = vmatpush.msrb.mxu0 %v2164_v47  ;;  %v2193_v32 = vld [vmem:[%s5879_s6 + $0x338] sm:$0xff] }
 0x119   : > { %v1764_v10 = vmax.f32 %v4960_v39, 0.0  ;;  %2485 = vmatpush.msrb.mxu1 %v2180_v53  ;;  %2505 = vmatpush.msrb.mxu2 %v2196_v28  ;;  %v1750_v33 = vmax.f32 %v5015_v1, 0.0  ;;  %v1889_v39 = vadd.f32 %v1888_v60, %v1733_v3  ;;  %v2175_v28 = vld [vmem:[%s5879_s6 + $0x2a8] sm:$0xff]  ;;  %v2158_v60 = vld [vmem:[%s5879_s6 + $0x220] sm:$0xff]  ;;  %v2157_v3 = vld [vmem:[%s5879_s6 + $0x218] sm:$0xff] }
 0x11a   : > { %v1864_v0 = vadd.f32 %v1863_v57, %v1747_v55  ;;  %2525 = vmatpush.msrb.mxu3 %v2212_v46  ;;  %2466 = vmatpush.msrb.mxu0 %v2163_v25  ;;  %v2176_v55 = vld [vmem:[%s5879_s6 + $0x2b0] sm:$0xff]  ;;  %v2207_v25 = vld [vmem:[%s5879_s6 + $0x3a8] sm:$0xff]  ;;  %v2190_v1 = vld [vmem:[%s5879_s6 + $0x320] sm:$0xff] }
 0x11b   : > { %2486 = vmatpush.msrb.mxu1 %v2179_v54  ;;  %2506 = vmatpush.msrb.mxu2 %v2195_v27  ;;  %v1878_v23 = vadd.f32 %v1877_v5, %v1764_v10  ;;  %v1890_v4 = vadd.f32 %v1889_v39, %v1749_v30  ;;  %v5098_v27 = vld [vmem:[%s5875_s2 + $0x8] sm:$0xff]  ;;  %v2188_v30 = vld [vmem:[%s5879_s6 + $0x310] sm:$0xff] }
 0x11c   : > { %v4931_v9 = vpop.f32.mrf.mxu2  ;;  %v1865_v15 = vadd.f32 %v1864_v0, %v1763_v59  ;;  %2526 = vmatpush.msrb.mxu3 %v2211_v24  ;;  %2467 = vmatpush.msrb.mxu0 %v2162_v50  ;;  %v2174_v0 = vld [vmem:[%s5879_s6 + $0x2a0] sm:$0xff]  ;;  %v2203_v39 = vld [vmem:[%s5879_s6 + $0x388] sm:$0xff] }
 0x11d   : > { %v4945_v17 = vpop.f32.mrf.mxu3  ;;  %v1355_v21 = vpop.f32.mrf.mxu0  ;;  %v5027_v38 = vadd.f32 %v4931_v9, %v4824_v34  ;;  %2487 = vmatpush.msrb.mxu1 %v2178_v56  ;;  %2507 = vmatpush.msrb.mxu2 %v2194_v12  ;;  %v2206_v50 = vld [vmem:[%s5879_s6 + $0x3a0] sm:$0xff] }
 0x11e   : > { %v1384_v13 = vpop.f32.mrf.mxu1  ;;  %v4968_v43 = vadd.f32 %v1355_v21, %v4806_v22  ;;  %v5039_v9 = vadd.f32 %v4945_v17, %v4835_v20  ;;  %v2161_v21 = vld [vmem:[%s5879_s6 + $0x238] sm:$0xff]  ;;  %2527 = vmatpush.msrb.mxu3 %v2210_v11  ;;  %v5129_v11 = vperm.slane %v5098_v27, 1 }
 0x11f   : > { %v4983_v51 = vadd.f32 %v1384_v13, %v4815_v29  ;;  %v1765_v52 = vmax.f32 %v5027_v38, 0.0  ;;  %2468 = vmatpush.msrb.mxu0 %v2161_v21  ;;  %2508 = vmatpush.msrb.mxu2 %v2193_v32  ;;  %v2172_v21 = vld [vmem:[%s5879_s6 + $0x290] sm:$0xff] }
 0x120   : > { %1586 = vmatmul.bf16.gmra.mxu0 %v3597_v44  ;;  %1615 = vmatmul.bf16.gmra.mxu1 %v3597_v44  ;;  %v1779_v35 = vmax.f32 %v4968_v43, 0.0  ;;  %v2192_v43 = vld [vmem:[%s5879_s6 + $0x330] sm:$0xff]  ;;  %v1766_v40 = vmax.f32 %v5039_v9, 0.0 }
 0x121   : > { %1644 = vmatmul.bf16.gmra.mxu2 %v3597_v44  ;;  %v1780_v6 = vmax.f32 %v4983_v51, 0.0  ;;  %2469 = vmatpush.msrb.mxu0 %v2160_v37  ;;  %v1891_v61 = vadd.f32 %v1890_v4, %v1765_v52  ;;  %v2156_v9 = vld [vmem:[%s5879_s6 + $0x210] sm:$0xff]  ;;  %v2187_v37 = vld [vmem:[%s5879_s6 + $0x308] sm:$0xff] }
 0x122   : > { %1673 = vmatmul.bf16.gmra.mxu3 %v3597_v44  ;;  %v1866_v13 = vadd.f32 %v1865_v15, %v1779_v35  ;;  %v1902_v44 = vadd.f32 %v1901_v63, %v1734_v14  ;;  %2509 = vmatpush.msrb.mxu2 %v2192_v43  ;;  %v5120_v14 = vperm.slane %v5098_v27, 0  ;;  %v2205_v15 = vld [vmem:[%s5879_s6 + $0x398] sm:$0xff] }
 0x123   : > { %v1879_v49 = vadd.f32 %v1878_v23, %v1780_v6  ;;  %2470 = vmatpush.msrb.mxu0 %v2159_v58 }
 0x124   : > { %v1413_v2 = vpop.f32.mrf.mxu2  ;;  %v1903_v57 = vadd.f32 %v1902_v44, %v1750_v33  ;;  %2510 = vmatpush.msrb.mxu2 %v2191_v19  ;;  %v2154_v44 = vld [vmem:[%s5879_s6 + $0x200] sm:$0xff]  ;;  %v5168_v19 = vperm.slane %v5098_v27, 2 }
 0x125   : > { %v1442_v8 = vpop.f32.mrf.mxu3  ;;  %v1357_v45 = vpop.f32.mrf.mxu0  ;;  %v5050_v26 = vadd.f32 %v1413_v2, %v4824_v34  ;;  %2471 = vmatpush.msrb.mxu0 %v2158_v60 }
 0x126   : > { %v1358_v48 = vadd.f32 %v1357_v45, %v4806_v22  ;;  %v1386_v16 = vpop.f32.mrf.mxu1  ;;  %v2177_v22 = vld [vmem:[%s5879_s6 + $0x2b8] sm:$0xff]  ;;  %v1443_v42 = vadd.f32 %v1442_v8, %v4835_v20  ;;  %v1904_v35 = vadd.f32 %v1903_v57, %v1766_v40  ;;  %2511 = vmatpush.msrb.mxu2 %v2190_v1  ;;  %v2170_v40 = vld [vmem:[%s5879_s6 + $0x280] sm:$0xff] }
 0x127   : > { %v1387_v17 = vadd.f32 %v1386_v16, %v4815_v29  ;;  %v2209_v29 = vld [vmem:[%s5879_s6 + $0x3b8] sm:$0xff]  ;;  %2488 = vmatpush.msrb.mxu1 %v2177_v22  ;;  %v1781_v51 = vmax.f32 %v5050_v26, 0.0  ;;  %2472 = vmatpush.msrb.mxu0 %v2157_v3  ;;  %v2155_v22 = vld [vmem:[%s5879_s6 + $0x208] sm:$0xff] }
 0x128   : > { %v1795_v36 = vmax.f32 %v1358_v48, 0.0  ;;  %2528 = vmatpush.msrb.mxu3 %v2209_v29  ;;  %v1782_v7 = vmax.f32 %v1443_v42, 0.0  ;;  %v2189_v8 = vld [vmem:[%s5879_s6 + $0x318] sm:$0xff] }
 0x129   : > { %v1796_v18 = vmax.f32 %v1387_v17, 0.0  ;;  %2489 = vmatpush.msrb.mxu1 %v2176_v55  ;;  %v1892_v5 = vadd.f32 %v1891_v61, %v1781_v51  ;;  %2512 = vmatpush.msrb.mxu2 %v2189_v8  ;;  %v2204_v17 = vld [vmem:[%s5879_s6 + $0x390] sm:$0xff]  ;;  %v2186_v51 = vld [vmem:[%s5879_s6 + $0x300] sm:$0xff] }
 0x12a   : > { %v1867_v47 = vadd.f32 %v1866_v13, %v1795_v36  ;;  %2529 = vmatpush.msrb.mxu3 %v2208_v31  ;;  %v1905_v45 = vadd.f32 %v1904_v35, %v1782_v7  ;;  %2473 = vmatpush.msrb.mxu0 %v2156_v9  ;;  %v2171_v13 = vld [vmem:[%s5879_s6 + $0x288] sm:$0xff] }
 0x12b   : > { %v1880_v53 = vadd.f32 %v1879_v49, %v1796_v18  ;;  %2490 = vmatpush.msrb.mxu1 %v2175_v28  ;;  %2513 = vmatpush.msrb.mxu2 %v2188_v30 }
 0x12c   : > { %v1868_v59 = vrot.slane %v1867_v47, 4  ;;  %v1415_v46 = vpop.f32.mrf.mxu2  ;;  %2530 = vmatpush.msrb.mxu3 %v2207_v25  ;;  %2474 = vmatpush.msrb.mxu0 %v2155_v22 }
 0x12d   : > { %v1881_v62 = vrot.slane %v1880_v53, 4  ;;  %v1416_v10 = vadd.f32 %v1415_v46, %v4824_v34  ;;  %v1444_v54 = vpop.f32.mrf.mxu3  ;;  %v1456_v63 = vpop.f32.mrf.mxu0  ;;  %2491 = vmatpush.msrb.mxu1 %v2174_v0  ;;  %2514 = vmatpush.msrb.mxu2 %v2187_v37  ;;  %v5172_v46 = vperm.slane %v5098_v27, 3 }
 0x12e   : > { %v1869_v2 = vadd.f32 %v1868_v59, %v1867_v47  ;;  %v1445_v34 = vadd.f32 %v1444_v54, %v4835_v20  ;;  %v1485_v24 = vpop.f32.mrf.mxu1  ;;  %v2173_v20 = vld [vmem:[%s5879_s6 + $0x298] sm:$0xff]  ;;  %2531 = vmatpush.msrb.mxu3 %v2206_v50  ;;  %v1457_v36 = vadd.f32 %v1456_v63, %v5120_v14  ;;  %2475 = vmatpush.msrb.mxu0 %v2154_v44 }
 0x12f   : > { %v1882_v38 = vadd.f32 %v1881_v62, %v1880_v53  ;;  %v1797_v6 = vmax.f32 %v1416_v10, 0.0  ;;  %2492 = vmatpush.msrb.mxu1 %v2173_v20  ;;  %v1486_v18 = vadd.f32 %v1485_v24, %v5129_v11  ;;  %v2202_v53 = vld [vmem:[%s5879_s6 + $0x380] sm:$0xff]  ;;  %2515 = vmatpush.msrb.mxu2 %v2186_v51 }
 0x130   : > { %v1870_v56 = vrot.slane %v1869_v2, 2  ;;  %v1798_v12 = vmax.f32 %v1445_v34, 0.0  ;;  %2532 = vmatpush.msrb.mxu3 %v2205_v15  ;;  %v1687_v59 = vmax.f32 %v1457_v36, 0.0 }
 0x131   : > { %v1883_v48 = vrot.slane %v1882_v38, 2  ;;  %v1893_v16 = vadd.f32 %v1892_v5, %v1797_v6  ;;  %2493 = vmatpush.msrb.mxu1 %v2172_v21  ;;  %v1688_v62 = vmax.f32 %v1486_v18, 0.0 }
 0x132   : > { %v1871_v23 = vadd.f32 %v1870_v56, %v1869_v2  ;;  %v1906_v26 = vadd.f32 %v1905_v45, %v1798_v12  ;;  %2533 = vmatpush.msrb.mxu3 %v2204_v17 }
 0x133   : > { %v1884_v32 = vadd.f32 %v1883_v48, %v1882_v38  ;;  %v1894_v33 = vrot.slane %v1893_v16, 4  ;;  %2494 = vmatpush.msrb.mxu1 %v2171_v13 }
 0x134   : > { %v1907_v42 = vrot.slane %v1906_v26, 4  ;;  %v1514_v29 = vpop.f32.mrf.mxu2  ;;  %v1872_v52 = vrot.slane %v1871_v23, 1  ;;  %2534 = vmatpush.msrb.mxu3 %v2203_v39 }
 0x135   : > { %v1895_v49 = vadd.f32 %v1894_v33, %v1893_v16  ;;  %v1543_v55 = vpop.f32.mrf.mxu3  ;;  %v1458_v43 = vpop.f32.mrf.mxu0  ;;  %v1885_v47 = vrot.slane %v1884_v32, 1  ;;  %2495 = vmatpush.msrb.mxu1 %v2170_v40  ;;  %v1515_v35 = vadd.f32 %v1514_v29, %v5168_v19 }
 0x136   : > { %v1908_v31 = vadd.f32 %v1907_v42, %v1906_v26  ;;  %v1459_v58 = vadd.f32 %v1458_v43, %v5120_v14  ;;  %v1487_v4 = vpop.f32.mrf.mxu1  ;;  %v1873_v60 = vadd.f32 %v1872_v52, %v1871_v23  ;;  %2535 = vmatpush.msrb.mxu3 %v2202_v53  ;;  %v1544_v24 = vadd.f32 %v1543_v55, %v5172_v46 }
 0x137   : > { %v1896_v28 = vrot.slane %v1895_v49, 2  ;;  %v1488_v57 = vadd.f32 %v1487_v4, %v5129_v11  ;;  %v1886_v54 = vadd.f32 %v1885_v47, %v1884_v32  ;;  %v1689_v48 = vmax.f32 %v1515_v35, 0.0 }
 0x138   : > { %v1909_v7 = vrot.slane %v1908_v31, 2  ;;  %v1703_v25 = vmax.f32 %v1459_v58, 0.0  ;;  %v2036_v3 = vrot.slane %v1873_v60, 4  ;;  %v1690_v23 = vmax.f32 %v1544_v24, 0.0 }
 0x139   : > { %v1897_v61 = vadd.f32 %v1896_v28, %v1895_v49  ;;  %v1704_v10 = vmax.f32 %v1488_v57, 0.0  ;;  %v2037_v8 = vrot.slane %v1886_v54, 3 }
 0x13a   : > { %v1910_v63 = vadd.f32 %v1909_v7, %v1908_v31  ;;  %v1913_v0 = vadd.f32 %v1703_v25, %v1687_v59 }
 0x13b   : > { %v1898_v1 = vrot.slane %v1897_v61, 1  ;;  %v1926_v2 = vadd.f32 %v1704_v10, %v1688_v62  ;;  %v2054_v33 = vsel %vm2053_vm3, %v2036_v3, %v2037_v8 }
 0x13c   : > { %v1911_v34 = vrot.slane %v1910_v63, 1  ;;  %v1516_v50 = vpop.f32.mrf.mxu2 }
 0x13d   : > { %v1899_v5 = vadd.f32 %v1898_v1, %v1897_v61  ;;  %v1517_v38 = vadd.f32 %v1516_v50, %v5168_v19  ;;  %v1545_v6 = vpop.f32.mrf.mxu3  ;;  %v1461_v20 = vpop.f32.mrf.mxu0 }
 0x13e   : > { %v1912_v45 = vadd.f32 %v1911_v34, %v1910_v63  ;;  %v1546_v56 = vadd.f32 %v1545_v6, %v5172_v46  ;;  %v1462_v12 = vadd.f32 %v1461_v20, %v5120_v14  ;;  %v1490_v15 = vpop.f32.mrf.mxu1 }
 0x13f   : > { %v2038_v9 = vrot.slane %v1899_v5, 2  ;;  %v1705_v16 = vmax.f32 %v1517_v38, 0.0  ;;  %v1491_v21 = vadd.f32 %v1490_v15, %v5129_v11 }
 0x140   : > { %v2039_v30 = vrot.slane %v1912_v45, 1  ;;  %v1706_v26 = vmax.f32 %v1546_v56, 0.0  ;;  %v1719_v17 = vmax.f32 %v1462_v12, 0.0 }
 0x141   : > { %v1939_v22 = vadd.f32 %v1705_v16, %v1689_v48  ;;  %v1720_v32 = vmax.f32 %v1491_v21, 0.0 }
 0x142   : > { %v2056_v13 = vsel %vm2055_vm4, %v2038_v9, %v2039_v30  ;;  %v1952_v42 = vadd.f32 %v1706_v26, %v1690_v23  ;;  %v1914_v36 = vadd.f32 %v1913_v0, %v1719_v17 }
 0x143   : > { %v2058_v29 = vsel %vm2057_vm5, %v2054_v33, %v2056_v13  ;;  %v1927_v37 = vadd.f32 %v1926_v2, %v1720_v32 }
 0x144   : > { %v2060_v39 = vsel %vm2059_vm6, %v4708_v41, %v2058_v29  ;;  %v1519_v52 = vpop.f32.mrf.mxu2 }
 0x145   : > { %v5185_v49 = vmul.f32 0.015625, %v2060_v39  ;;  %v1520_v18 = vadd.f32 %v1519_v52, %v5168_v19  ;;  %v1548_v55 = vpop.f32.mrf.mxu3  ;;  %v1463_v43 = vpop.f32.mrf.mxu0 }
 0x146   : > { %v1549_v44 = vadd.f32 %v1548_v55, %v5172_v46  ;;  %v1464_v40 = vadd.f32 %v1463_v43, %v5120_v14  ;;  %v1492_v47 = vpop.f32.mrf.mxu1 }
 0x147   : > { %v1721_v31 = vmax.f32 %v1520_v18, 0.0  ;;  %v1493_v58 = vadd.f32 %v1492_v47, %v5129_v11  ;;  %v2348_v4 = vperm.slane %v5185_v49, 0  ;;  %v2349_v51 = vperm.slane %v5185_v49, 1 }
 0x148   : > { %v1722_v41 = vmax.f32 %v1549_v44, 0.0  ;;  %v1735_v53 = vmax.f32 %v1464_v40, 0.0  ;;  %v2350_v28 = vperm.slane %v5185_v49, 2  ;;  %v2351_v57 = vperm.slane %v5185_v49, 3 }
 0x149   : > { %v1940_v7 = vadd.f32 %v1939_v22, %v1721_v31  ;;  %v1736_v59 = vmax.f32 %v1493_v58, 0.0  ;;  %2396 = vmatmul.f32.vlgmr.msra.gmra.mxu0 %v2348_v4  ;;  %2416 = vmatmul.f32.vlgmr.msra.gmra.mxu1 %v2349_v51  ;;  %v2352_v24 = vperm.slane %v5185_v49, 4  ;;  %v2353_v50 = vperm.slane %v5185_v49, 5 }
 0x14a   : > { %v1953_v25 = vadd.f32 %v1952_v42, %v1722_v41  ;;  %v1915_v60 = vadd.f32 %v1914_v36, %v1735_v53  ;;  %2436 = vmatmul.f32.vlgmr.msra.gmra.mxu2 %v2350_v28  ;;  %2456 = vmatmul.f32.vlgmr.msra.gmra.mxu3 %v2351_v57  ;;  %v2354_v38 = vperm.slane %v5185_v49, 6  ;;  %v2355_v6 = vperm.slane %v5185_v49, 7 }
 0x14b   : > { %v1928_v61 = vadd.f32 %v1927_v37, %v1736_v59 }
 0x14c   : > { %v1521_v62 = vpop.f32.mrf.mxu2 }
 0x14d   : > { %v1522_v10 = vadd.f32 %v1521_v62, %v5168_v19  ;;  %v1550_v54 = vpop.f32.mrf.mxu3  ;;  %v1466_v63 = vpop.f32.mrf.mxu0 }
 0x14e   : > { %v1551_v0 = vadd.f32 %v1550_v54, %v5172_v46  ;;  %v1467_v1 = vadd.f32 %v1466_v63, %v5120_v14  ;;  %v1495_v35 = vpop.f32.mrf.mxu1 }
 0x14f   : > { %v1737_v2 = vmax.f32 %v1522_v10, 0.0  ;;  %v1496_v34 = vadd.f32 %v1495_v35, %v5129_v11 }
 0x150   : > { %v1738_v3 = vmax.f32 %v1551_v0, 0.0  ;;  %v1751_v5 = vmax.f32 %v1467_v1, 0.0 }
 0x151   : > { %v1941_v20 = vadd.f32 %v1940_v7, %v1737_v2  ;;  %v1752_v8 = vmax.f32 %v1496_v34, 0.0  ;;  %2476 = vmatmul.f32.vlgmr.msrb.gmra.mxu0 %v2352_v24  ;;  %2496 = vmatmul.f32.vlgmr.msrb.gmra.mxu1 %v2353_v50 }
 0x152   : > { %v1954_v45 = vadd.f32 %v1953_v25, %v1738_v3  ;;  %v1916_v56 = vadd.f32 %v1915_v60, %v1751_v5  ;;  %2516 = vmatmul.f32.vlgmr.msrb.gmra.mxu2 %v2354_v38  ;;  %2536 = vmatmul.f32.vlgmr.msrb.gmra.mxu3 %v2355_v6 }
 0x153   : > { %v1929_v12 = vadd.f32 %v1928_v61, %v1752_v8 }
 0x154   : > { %v1524_v15 = vpop.f32.mrf.mxu2 }
 0x155   : > { %v1525_v9 = vadd.f32 %v1524_v15, %v5168_v19  ;;  %v1553_v48 = vpop.f32.mrf.mxu3  ;;  %v1468_v16 = vpop.f32.mrf.mxu0 }
 0x156   : > { %v1554_v21 = vadd.f32 %v1553_v48, %v5172_v46  ;;  %v1469_v30 = vadd.f32 %v1468_v16, %v5120_v14  ;;  %v1497_v23 = vpop.f32.mrf.mxu1 }
 0x157   : > { %v1753_v26 = vmax.f32 %v1525_v9, 0.0  ;;  %v1498_v17 = vadd.f32 %v1497_v23, %v5129_v11  ;;  %v2233_v9 = vld [vmem:[%s5879_s6 + $0x478] sm:$0xff] }
 0x158   : > { %v1754_v22 = vmax.f32 %v1554_v21, 0.0  ;;  %v1767_v32 = vmax.f32 %v1469_v30, 0.0  ;;  %2540 = vmatpush.msra.mxu0 %v2233_v9  ;;  %v2232_v30 = vld [vmem:[%s5879_s6 + $0x470] sm:$0xff]  ;;  %v2243_v9 = vld [vmem:[%s5879_s6 + $0x4c8] sm:$0xff] }
 0x159   : > { %v1942_v33 = vadd.f32 %v1941_v20, %v1753_v26  ;;  %v1768_v13 = vmax.f32 %v1498_v17, 0.0  ;;  %v2231_v26 = vld [vmem:[%s5879_s6 + $0x468] sm:$0xff]  ;;  %v2249_v17 = vld [vmem:[%s5879_s6 + $0x4f8] sm:$0xff] }
 0x15a   : > { %v1955_v42 = vadd.f32 %v1954_v45, %v1754_v22  ;;  %v1917_v36 = vadd.f32 %v1916_v56, %v1767_v32  ;;  %2541 = vmatpush.msra.mxu0 %v2232_v30  ;;  %v2265_v22 = vld [vmem:[%s5879_s6 + $0x578] sm:$0xff]  ;;  %2560 = vmatpush.msra.mxu1 %v2249_v17 }
 0x15b   : > { %v1930_v29 = vadd.f32 %v1929_v12, %v1768_v13  ;;  %2580 = vmatpush.msra.mxu2 %v2265_v22  ;;  %v2281_v13 = vld [vmem:[%s5879_s6 + $0x5f8] sm:$0xff]  ;;  %v2223_v22 = vld [vmem:[%s5879_s6 + $0x428] sm:$0xff] }
 0x15c   : > { %v1526_v37 = vpop.f32.mrf.mxu2  ;;  %2542 = vmatpush.msra.mxu0 %v2231_v26  ;;  %2600 = vmatpush.msra.mxu3 %v2281_v13  ;;  %v2274_v26 = vld [vmem:[%s5879_s6 + $0x5c0] sm:$0xff]  ;;  %v2257_v13 = vld [vmem:[%s5879_s6 + $0x538] sm:$0xff] }
 0x15d   : > { %v1527_v39 = vadd.f32 %v1526_v37, %v5168_v19  ;;  %v1555_v52 = vpop.f32.mrf.mxu3  ;;  %v1471_v18 = vpop.f32.mrf.mxu0 }
 0x15e   : > { %v1556_v55 = vadd.f32 %v1555_v52, %v5172_v46  ;;  %v1472_v43 = vadd.f32 %v1471_v18, %v5120_v14  ;;  %v1500_v44 = vpop.f32.mrf.mxu1 }
 0x15f   : > { %v1769_v40 = vmax.f32 %v1527_v39, 0.0  ;;  %v1501_v47 = vadd.f32 %v1500_v44, %v5129_v11 }
 0x160   : > { %v1770_v31 = vmax.f32 %v1556_v55, 0.0  ;;  %v1783_v58 = vmax.f32 %v1472_v43, 0.0 }
 0x161   : > { %v1943_v4 = vadd.f32 %v1942_v33, %v1769_v40  ;;  %v1784_v51 = vmax.f32 %v1501_v47, 0.0  ;;  %v2248_v40 = vld [vmem:[%s5879_s6 + $0x4f0] sm:$0xff] }
 0x162   : > { %v1956_v41 = vadd.f32 %v1955_v42, %v1770_v31  ;;  %v1918_v53 = vadd.f32 %v1917_v36, %v1783_v58  ;;  %v2230_v42 = vld [vmem:[%s5879_s6 + $0x460] sm:$0xff]  ;;  %v2264_v47 = vld [vmem:[%s5879_s6 + $0x570] sm:$0xff]  ;;  %2561 = vmatpush.msra.mxu1 %v2248_v40 }
 0x163   : > { %v1931_v28 = vadd.f32 %v1930_v29, %v1784_v51  ;;  %2543 = vmatpush.msra.mxu0 %v2230_v42  ;;  %v2280_v31 = vld [vmem:[%s5879_s6 + $0x5f0] sm:$0xff]  ;;  %2581 = vmatpush.msra.mxu2 %v2264_v47  ;;  %v2221_v47 = vld [vmem:[%s5879_s6 + $0x418] sm:$0xff] }
 0x164   : > { %v1529_v57 = vpop.f32.mrf.mxu2  ;;  %2601 = vmatpush.msra.mxu3 %v2280_v31  ;;  %v2272_v40 = vld [vmem:[%s5879_s6 + $0x5b0] sm:$0xff]  ;;  %v2239_v31 = vld [vmem:[%s5879_s6 + $0x4a8] sm:$0xff] }
 0x165   : > { %v1530_v7 = vadd.f32 %v1529_v57, %v5168_v19  ;;  %v1558_v59 = vpop.f32.mrf.mxu3  ;;  %v1473_v25 = vpop.f32.mrf.mxu0  ;;  %v2263_v57 = vld [vmem:[%s5879_s6 + $0x568] sm:$0xff] }
 0x166   : > { %v1559_v60 = vadd.f32 %v1558_v59, %v5172_v46  ;;  %v1474_v61 = vadd.f32 %v1473_v25, %v5120_v14  ;;  %v1502_v62 = vpop.f32.mrf.mxu1  ;;  %2582 = vmatpush.msra.mxu2 %v2263_v57  ;;  %v2228_v25 = vld [vmem:[%s5879_s6 + $0x450] sm:$0xff] }
 0x167   : > { %v1785_v10 = vmax.f32 %v1530_v7, 0.0  ;;  %v1503_v54 = vadd.f32 %v1502_v62, %v5129_v11  ;;  %v2279_v7 = vld [vmem:[%s5879_s6 + $0x5e8] sm:$0xff]  ;;  %v2246_v62 = vld [vmem:[%s5879_s6 + $0x4e0] sm:$0xff] }
 0x168   : > { %v1786_v63 = vmax.f32 %v1559_v60, 0.0  ;;  %v1799_v0 = vmax.f32 %v1474_v61, 0.0  ;;  %2602 = vmatpush.msra.mxu3 %v2279_v7  ;;  %v2219_v7 = vld [vmem:[%s5879_s6 + $0x408] sm:$0xff] }
 0x169   : > { %v1944_v1 = vadd.f32 %v1943_v4, %v1785_v10  ;;  %v1800_v35 = vmax.f32 %v1503_v54, 0.0  ;;  %v2229_v4 = vld [vmem:[%s5879_s6 + $0x458] sm:$0xff]  ;;  %v2262_v10 = vld [vmem:[%s5879_s6 + $0x560] sm:$0xff] }
 0x16a   : > { %v1957_v2 = vadd.f32 %v1956_v41, %v1786_v63  ;;  %v1919_v34 = vadd.f32 %v1918_v53, %v1799_v0  ;;  %2544 = vmatpush.msra.mxu0 %v2229_v4  ;;  %v2278_v54 = vld [vmem:[%s5879_s6 + $0x5e0] sm:$0xff]  ;;  %2583 = vmatpush.msra.mxu2 %v2262_v10  ;;  %v2271_v4 = vld [vmem:[%s5879_s6 + $0x5a8] sm:$0xff] }
 0x16b   : > { %v1932_v24 = vadd.f32 %v1931_v28, %v1800_v35  ;;  %v2247_v28 = vld [vmem:[%s5879_s6 + $0x4e8] sm:$0xff]  ;;  %v2245_v35 = vld [vmem:[%s5879_s6 + $0x4d8] sm:$0xff]  ;;  %2603 = vmatpush.msra.mxu3 %v2278_v54  ;;  %v2218_v54 = vld [vmem:[%s5879_s6 + $0x400] sm:$0xff] }
 0x16c   : > { %v1920_v50 = vrot.slane %v1919_v34, 4  ;;  %v1531_v3 = vpop.f32.mrf.mxu2  ;;  %2562 = vmatpush.msra.mxu1 %v2247_v28  ;;  %2545 = vmatpush.msra.mxu0 %v2228_v25  ;;  %v2270_v28 = vld [vmem:[%s5879_s6 + $0x5a0] sm:$0xff] }
 0x16d   : > { %v1933_v5 = vrot.slane %v1932_v24, 4  ;;  %v1532_v38 = vadd.f32 %v1531_v3, %v5168_v19  ;;  %v1560_v6 = vpop.f32.mrf.mxu3  ;;  %v5216_v20 = vpop.f32.mrf.mxu0  ;;  %v2277_v3 = vld [vmem:[%s5879_s6 + $0x5d8] sm:$0xff] }
 0x16e   : > { %v1921_v14 = vadd.f32 %v1920_v50, %v1919_v34  ;;  %v1561_v8 = vadd.f32 %v1560_v6, %v5172_v46  ;;  %v5219_v45 = vpop.f32.mrf.mxu1  ;;  %2563 = vmatpush.msra.mxu1 %v2246_v62  ;;  %2604 = vmatpush.msra.mxu3 %v2277_v3  ;;  %v2269_v62 = vld [vmem:[%s5879_s6 + $0x598] sm:$0xff]  ;;  %v2251_v3 = vld [vmem:[%s5879_s6 + $0x508] sm:$0xff] }
 0x16f   : > { %v1934_v11 = vadd.f32 %v1933_v5, %v1932_v24  ;;  %v1801_v56 = vmax.f32 %v1532_v38, 0.0  ;;  %v2226_v5 = vld [vmem:[%s5879_s6 + $0x440] sm:$0xff] }
 0x170   : > { %v1922_v12 = vrot.slane %v1921_v14, 2  ;;  %v1802_v15 = vmax.f32 %v1561_v8, 0.0  ;;  %2564 = vmatpush.msra.mxu1 %v2245_v35  ;;  %v2244_v8 = vld [vmem:[%s5879_s6 + $0x4d0] sm:$0xff] }
 0x171   : > { %v1935_v48 = vrot.slane %v1934_v11, 2  ;;  %v1945_v16 = vadd.f32 %v1944_v1, %v1801_v56  ;;  %v2227_v1 = vld [vmem:[%s5879_s6 + $0x448] sm:$0xff]  ;;  %v2276_v56 = vld [vmem:[%s5879_s6 + $0x5d0] sm:$0xff] }
 0x172   : > { %v1923_v19 = vadd.f32 %v1922_v12, %v1921_v14  ;;  %v1958_v21 = vadd.f32 %v1957_v2, %v1802_v15  ;;  %v2261_v2 = vld [vmem:[%s5879_s6 + $0x558] sm:$0xff]  ;;  %2546 = vmatpush.msra.mxu0 %v2227_v1  ;;  %2565 = vmatpush.msra.mxu1 %v2244_v8  ;;  %v2252_v1 = vld [vmem:[%s5879_s6 + $0x510] sm:$0xff]  ;;  %v5451_v8 = vperm.slane %v5098_v27, 5 }
 0x173   : > { %v1936_v46 = vadd.f32 %v1935_v48, %v1934_v11  ;;  %v1946_v23 = vrot.slane %v1945_v16, 4  ;;  %2584 = vmatpush.msra.mxu2 %v2261_v2  ;;  %v2260_v11 = vld [vmem:[%s5879_s6 + $0x550] sm:$0xff]  ;;  %v2225_v15 = vld [vmem:[%s5879_s6 + $0x438] sm:$0xff]  ;;  %2605 = vmatpush.msra.mxu3 %v2276_v56  ;;  %v2259_v48 = vld [vmem:[%s5879_s6 + $0x548] sm:$0xff] }
 0x174   : > { %v1959_v32 = vrot.slane %v1958_v21, 4  ;;  %v5236_v33 = vpop.f32.mrf.mxu2  ;;  %v1924_v36 = vrot.slane %v1923_v19, 1  ;;  %2547 = vmatpush.msra.mxu0 %v2226_v5  ;;  %2566 = vmatpush.msra.mxu1 %v2243_v9  ;;  %v2268_v35 = vld [vmem:[%s5879_s6 + $0x590] sm:$0xff]  ;;  %v2297_v2 = vld [vmem:[%s5879_s6 + $0x678] sm:$0xff]  ;;  %v2267_v5 = vld [vmem:[%s5879_s6 + $0x588] sm:$0xff] }
 0x175   : > { %v1937_v29 = vrot.slane %v1936_v46, 1  ;;  %v1947_v37 = vadd.f32 %v1946_v23, %v1945_v16  ;;  %v5244_v39 = vpop.f32.mrf.mxu3  ;;  %v5246_v52 = vpop.f32.mrf.mxu0  ;;  %2585 = vmatpush.msra.mxu2 %v2260_v11  ;;  %v2275_v16 = vld [vmem:[%s5879_s6 + $0x5c8] sm:$0xff]  ;;  %v2258_v23 = vld [vmem:[%s5879_s6 + $0x540] sm:$0xff] }
 0x176   : > { %v1960_v18 = vadd.f32 %v1959_v32, %v1958_v21  ;;  %v5248_v55 = vpop.f32.mrf.mxu1  ;;  %v1925_v51 = vadd.f32 %v1924_v36, %v1923_v19  ;;  %2548 = vmatpush.msra.mxu0 %v2225_v15  ;;  %v2224_v21 = vld [vmem:[%s5879_s6 + $0x430] sm:$0xff]  ;;  %2606 = vmatpush.msra.mxu3 %v2275_v16  ;;  %v2241_v32 = vld [vmem:[%s5879_s6 + $0x4b8] sm:$0xff]  ;;  %v2234_v11 = vld [vmem:[%s5879_s6 + $0x480] sm:$0xff]  ;;  %v5463_v15 = vperm.slane %v5098_v27, 6 }
 0x177   : > { %v1938_v43 = vadd.f32 %v1937_v29, %v1936_v46  ;;  %v1948_v44 = vrot.slane %v1947_v37, 2  ;;  %2586 = vmatpush.msra.mxu2 %v2259_v48  ;;  %v2242_v46 = vld [vmem:[%s5879_s6 + $0x4c0] sm:$0xff]  ;;  %v2273_v29 = vld [vmem:[%s5879_s6 + $0x5b8] sm:$0xff]  ;;  %v2295_v48 = vld [vmem:[%s5879_s6 + $0x668] sm:$0xff] }
 0x178   : > { %v1961_v58 = vrot.slane %v1960_v18, 2  ;;  %2549 = vmatpush.msra.mxu0 %v2224_v21  ;;  %2567 = vmatpush.msra.mxu1 %v2242_v46  ;;  %v2250_v56 = vld [vmem:[%s5879_s6 + $0x500] sm:$0xff]  ;;  %v2313_v16 = vld [vmem:[%s5879_s6 + $0x6f8] sm:$0xff]  ;;  %v5477_v21 = vperm.slane %v5098_v27, 7 }
 0x179   : > { %v2040_v41 = vrot.slane %v1938_v43, 7  ;;  %v1949_v53 = vadd.f32 %v1948_v44, %v1947_v37  ;;  %2587 = vmatpush.msra.mxu2 %v2258_v23  ;;  %2607 = vmatpush.msra.mxu3 %v2274_v26  ;;  %v2222_v37 = vld [vmem:[%s5879_s6 + $0x420] sm:$0xff]  ;;  %v2240_v43 = vld [vmem:[%s5879_s6 + $0x4b0] sm:$0xff] }
 0x17a   : > { %v1962_v59 = vadd.f32 %v1961_v58, %v1960_v18  ;;  %2550 = vmatpush.msra.mxu0 %v2223_v22  ;;  %2568 = vmatpush.msra.mxu1 %v2241_v32  ;;  %v2256_v44 = vld [vmem:[%s5879_s6 + $0x530] sm:$0xff]  ;;  %v2255_v58 = vld [vmem:[%s5879_s6 + $0x528] sm:$0xff]  ;;  %v2345_v22 = vld [vmem:[%s5879_s6 + $0x7f8] sm:$0xff] }
 0x17b   : > { %v2061_v60 = vsel %vm2047_vm0, %v1925_v51, %v2040_v41  ;;  %v1950_v61 = vrot.slane %v1949_v53, 1  ;;  %2588 = vmatpush.msra.mxu2 %v2257_v13  ;;  %2608 = vmatpush.msra.mxu3 %v2273_v29  ;;  %v2220_v51 = vld [vmem:[%s5879_s6 + $0x410] sm:$0xff]  ;;  %v2238_v41 = vld [vmem:[%s5879_s6 + $0x4a0] sm:$0xff]  ;;  %v1604_v29 = vadd.f32 %v5248_v55, %v5451_v8 }
 0x17c   : > { %v1963_v63 = vrot.slane %v1962_v59, 1  ;;  %v5284_v0 = vpop.f32.mrf.mxu2  ;;  %2551 = vmatpush.msra.mxu0 %v2222_v37  ;;  %2569 = vmatpush.msra.mxu1 %v2240_v43  ;;  %v2294_v32 = vld [vmem:[%s5879_s6 + $0x660] sm:$0xff]  ;;  %v2312_v43 = vld [vmem:[%s5879_s6 + $0x6f0] sm:$0xff] }
 0x17d   : > { %v1951_v34 = vadd.f32 %v1950_v61, %v1949_v53  ;;  %v5295_v24 = vpop.f32.mrf.mxu3  ;;  %v5297_v50 = vpop.f32.mrf.mxu0  ;;  %2589 = vmatpush.msra.mxu2 %v2256_v44  ;;  %2609 = vmatpush.msra.mxu3 %v2272_v40  ;;  %v2254_v53 = vld [vmem:[%s5879_s6 + $0x520] sm:$0xff]  ;;  %v2253_v61 = vld [vmem:[%s5879_s6 + $0x518] sm:$0xff]  ;;  %v2344_v44 = vld [vmem:[%s5879_s6 + $0x7f0] sm:$0xff]  ;;  %v5517_v55 = vadd.f32 %v5284_v0, %v5463_v15 }
 0x17e   : > { %v1964_v38 = vadd.f32 %v1963_v63, %v1962_v59  ;;  %v5305_v6 = vpop.f32.mrf.mxu1  ;;  %2552 = vmatpush.msra.mxu0 %v2221_v47  ;;  %2570 = vmatpush.msra.mxu1 %v2239_v31  ;;  %v2236_v63 = vld [vmem:[%s5879_s6 + $0x490] sm:$0xff]  ;;  %v2293_v40 = vld [vmem:[%s5879_s6 + $0x658] sm:$0xff]  ;;  %v1631_v47 = vadd.f32 %v5236_v33, %v5463_v15  ;;  %v2327_v0 = vld [vmem:[%s5879_s6 + $0x768] sm:$0xff]  ;;  %v5539_v33 = vadd.f32 %v5244_v39, %v5477_v21 }
 0x17f   : > { %v2041_v14 = vrot.slane %v1951_v34, 6  ;;  %2590 = vmatpush.msra.mxu2 %v2255_v58  ;;  %2610 = vmatpush.msra.mxu3 %v2271_v4  ;;  %v2235_v34 = vld [vmem:[%s5879_s6 + $0x488] sm:$0xff]  ;;  %v5544_v4 = vadd.f32 %v5305_v6, %v5451_v8  ;;  %v5553_v39 = vadd.f32 %v5295_v24, %v5477_v21  ;;  %v2310_v6 = vld [vmem:[%s5879_s6 + $0x6e0] sm:$0xff] }
 0x180   : > { %v2042_v12 = vrot.slane %v1964_v38, 5  ;;  %2553 = vmatpush.msra.mxu0 %v2220_v51  ;;  %2571 = vmatpush.msra.mxu1 %v2238_v41  ;;  %v5445_v38 = vperm.slane %v5098_v27, 4  ;;  %v2731_v27 = vmul.f32 %v5185_v49, %v5185_v49  ;;  %v2328_v49 = vld [vmem:[%s5879_s6 + $0x770] sm:$0xff]  ;;  %v2343_v58 = vld [vmem:[%s5879_s6 + $0x7e8] sm:$0xff] }
 0x181   : > { %2591 = vmatpush.msra.mxu2 %v2254_v53  ;;  %2611 = vmatpush.msra.mxu3 %v2270_v28  ;;  %v2292_v51 = vld [vmem:[%s5879_s6 + $0x650] sm:$0xff]  ;;  %v1708_v28 = vmax.f32 %v1604_v29, 0.0 }
 0x182   : > { %v2062_v19 = vsel %vm2049_vm1, %v2041_v14, %v2042_v12  ;;  %2554 = vmatpush.msra.mxu0 %v2219_v7  ;;  %v2296_v14 = vld [vmem:[%s5879_s6 + $0x670] sm:$0xff]  ;;  %v2266_v12 = vld [vmem:[%s5879_s6 + $0x580] sm:$0xff]  ;;  %v5481_v46 = vadd.f32 %v5246_v52, %v5445_v38  ;;  %v1573_v13 = vadd.f32 %v5216_v20, %v5445_v38  ;;  %v1602_v20 = vadd.f32 %v5219_v45, %v5451_v8  ;;  %v2311_v45 = vld [vmem:[%s5879_s6 + $0x6e8] sm:$0xff] }
 0x183   : > { %v5333_v30 = vsel %vm2051_vm2, %v2061_v60, %v2062_v19  ;;  %v2237_v60 = vld [vmem:[%s5879_s6 + $0x498] sm:$0xff]  ;;  %2592 = vmatpush.msra.mxu2 %v2253_v61  ;;  %2612 = vmatpush.msra.mxu3 %v2269_v62  ;;  %v2733_v52 = vld [vmem:[%s5880_s7] sm:$0xff]  ;;  %v5526_v31 = vadd.f32 %v5297_v50, %v5445_v38  ;;  %v1709_v62 = vmax.f32 %v5517_v55, 0.0 }
 0x184   : > { %v5344_v17 = vpop.f32.mrf.mxu2  ;;  %2572 = vmatpush.msra.mxu1 %v2237_v60  ;;  %2555 = vmatpush.msra.mxu0 %v2218_v54  ;;  %v2329_v19 = vld [vmem:[%s5879_s6 + $0x778] sm:$0xff]  ;;  %v1707_v50 = vmax.f32 %v5481_v46, 0.0  ;;  %v5549_v41 = vmul.f32 %v2733_v52, %v2731_v27  ;;  %v1691_v53 = vmax.f32 %v1573_v13, 0.0  ;;  %v2326_v60 = vld [vmem:[%s5879_s6 + $0x760] sm:$0xff]  ;;  %v1692_v24 = vmax.f32 %v1602_v20, 0.0  ;;  %v2324_v27 = vld [vmem:[%s5879_s6 + $0x750] sm:$0xff] }
 0x185   : > { %v5355_v42 = vpop.f32.mrf.mxu3  ;;  %v5357_v36 = vpop.f32.mrf.mxu0  ;;  %2593 = vmatpush.msra.mxu2 %v2252_v1  ;;  %2613 = vmatpush.msra.mxu3 %v2268_v35  ;;  %v2342_v61 = vld [vmem:[%s5879_s6 + $0x7e0] sm:$0xff]  ;;  %v1693_v1 = vmax.f32 %v1631_v47, 0.0  ;;  %v1723_v35 = vmax.f32 %v5526_v31, 0.0  ;;  %v2340_v52 = vld [vmem:[%s5879_s6 + $0x7d0] sm:$0xff]  ;;  %v2323_v47 = vld [vmem:[%s5879_s6 + $0x748] sm:$0xff] }
 0x186   : > { %v5365_v18 = vpop.f32.mrf.mxu1  ;;  %2573 = vmatpush.msra.mxu1 %v2236_v63  ;;  %2620 = vmatpush.msrb.mxu0 %v2297_v2  ;;  %v5557_v7 = vadd.f32 %v5357_v36, %v5445_v38  ;;  %v5571_v36 = vadd.f32 %v5344_v17, %v5463_v15  ;;  %v2291_v63 = vld [vmem:[%s5879_s6 + $0x648] sm:$0xff]  ;;  %v5583_v2 = vadd.f32 %v5355_v42, %v5477_v21  ;;  %v2341_v42 = vld [vmem:[%s5879_s6 + $0x7d8] sm:$0xff] }
 0x187   : > { %2594 = vmatpush.msra.mxu2 %v2251_v3  ;;  %2614 = vmatpush.msra.mxu3 %v2267_v5  ;;  %v5575_v54 = vadd.f32 %v5365_v18, %v5451_v8  ;;  %v2309_v18 = vld [vmem:[%s5879_s6 + $0x6d8] sm:$0xff]  ;;  %v1694_v5 = vmax.f32 %v5539_v33, 0.0  ;;  %v1991_v13 = vadd.f32 %v1709_v62, %v1693_v1  ;;  %v2339_v31 = vld [vmem:[%s5879_s6 + $0x7c8] sm:$0xff] }
 0x188   : > { %2574 = vmatpush.msra.mxu1 %v2235_v34  ;;  %2621 = vmatpush.msrb.mxu0 %v2296_v14  ;;  %v2325_v3 = vld [vmem:[%s5879_s6 + $0x758] sm:$0xff]  ;;  %v1724_v14 = vmax.f32 %v5544_v4, 0.0  ;;  %v1739_v46 = vmax.f32 %v5557_v7, 0.0  ;;  %v1725_v29 = vmax.f32 %v5571_v36, 0.0  ;;  %v1726_v20 = vmax.f32 %v5583_v2, 0.0  ;;  %v2338_v7 = vld [vmem:[%s5879_s6 + $0x7c0] sm:$0xff] }
 0x189   : > { %2595 = vmatpush.msra.mxu2 %v2250_v56  ;;  %2615 = vmatpush.msra.mxu3 %v2266_v12  ;;  %v2337_v2 = vld [vmem:[%s5879_s6 + $0x7b8] sm:$0xff] }
 0x18a   : > { %2575 = vmatpush.msra.mxu1 %v2234_v11  ;;  %2622 = vmatpush.msrb.mxu0 %v2295_v48  ;;  %v2290_v48 = vld [vmem:[%s5879_s6 + $0x640] sm:$0xff] }
 0x18b   : > { %2660 = vmatpush.msrb.mxu2 %v2329_v19  ;;  %2680 = vmatpush.msrb.mxu3 %v2345_v22  ;;  %v1710_v19 = vmax.f32 %v5553_v39, 0.0  ;;  %v2322_v39 = vld [vmem:[%s5879_s6 + $0x740] sm:$0xff] }
 0x18c   : > { %v5400_v57 = vpop.f32.mrf.mxu2  ;;  %2640 = vmatpush.msrb.mxu1 %v2313_v16  ;;  %2623 = vmatpush.msrb.mxu0 %v2294_v32  ;;  %v1978_v16 = vadd.f32 %v1708_v28, %v1692_v24  ;;  %v2308_v32 = vld [vmem:[%s5879_s6 + $0x6d0] sm:$0xff]  ;;  %v2306_v28 = vld [vmem:[%s5879_s6 + $0x6c0] sm:$0xff]  ;;  %v2287_v24 = vld [vmem:[%s5879_s6 + $0x628] sm:$0xff] }
 0x18d   : > { %v5405_v59 = vpop.f32.mrf.mxu3  ;;  %v5407_v25 = vpop.f32.mrf.mxu0  ;;  %2661 = vmatpush.msrb.mxu2 %v2328_v49  ;;  %2681 = vmatpush.msrb.mxu3 %v2344_v44  ;;  %v2289_v49 = vld [vmem:[%s5879_s6 + $0x638] sm:$0xff]  ;;  %v2004_v4 = vadd.f32 %v1710_v19, %v1694_v5 }
 0x18e   : > { %v5418_v10 = vpop.f32.mrf.mxu1  ;;  %2641 = vmatpush.msrb.mxu1 %v2312_v43  ;;  %2624 = vmatpush.msrb.mxu0 %v2293_v40  ;;  %v5587_v17 = vadd.f32 %v5407_v25, %v5445_v38  ;;  %v1965_v25 = vadd.f32 %v1707_v50, %v1691_v53  ;;  %v2288_v50 = vld [vmem:[%s5879_s6 + $0x630] sm:$0xff]  ;;  %v5662_v53 = vadd.f32 %v5405_v59, %v5477_v21 }
 0x18f   : > { %2662 = vmatpush.msrb.mxu2 %v2327_v0  ;;  %2682 = vmatpush.msrb.mxu3 %v2343_v58  ;;  %v5604_v11 = vadd.f32 %v5418_v10, %v5451_v8  ;;  %v5651_v0 = vadd.f32 %v5400_v57, %v5463_v15  ;;  %v2005_v62 = vadd.f32 %v2004_v4, %v1726_v20 }
 0x190   : > { %2642 = vmatpush.msrb.mxu1 %v2311_v45  ;;  %2625 = vmatpush.msrb.mxu0 %v2292_v51  ;;  %v1966_v44 = vadd.f32 %v1965_v25, %v1723_v35  ;;  %v1755_v55 = vmax.f32 %v5587_v17, 0.0  ;;  %v1979_v45 = vadd.f32 %v1978_v16, %v1724_v14  ;;  %v2321_v35 = vld [vmem:[%s5879_s6 + $0x738] sm:$0xff]  ;;  %v2286_v25 = vld [vmem:[%s5879_s6 + $0x620] sm:$0xff]  ;;  %v2304_v14 = vld [vmem:[%s5879_s6 + $0x6b0] sm:$0xff] }
 0x191   : > { %2663 = vmatpush.msrb.mxu2 %v2326_v60  ;;  %2683 = vmatpush.msrb.mxu3 %v2342_v61  ;;  %v1756_v58 = vmax.f32 %v5604_v11, 0.0  ;;  %v2320_v11 = vld [vmem:[%s5879_s6 + $0x730] sm:$0xff] }
 0x192   : > { %2643 = vmatpush.msrb.mxu1 %v2310_v6  ;;  %2626 = vmatpush.msrb.mxu0 %v2291_v63  ;;  %v1967_v51 = vadd.f32 %v1966_v44, %v1739_v46  ;;  %v1992_v6 = vadd.f32 %v1991_v13, %v1725_v29  ;;  %v2336_v46 = vld [vmem:[%s5879_s6 + $0x7b0] sm:$0xff] }
 0x193   : > { %2664 = vmatpush.msrb.mxu2 %v2325_v3  ;;  %2684 = vmatpush.msrb.mxu3 %v2341_v42 }
 0x194   : > { %v5465_v9 = vpop.f32.mrf.mxu2  ;;  %2644 = vmatpush.msrb.mxu1 %v2309_v18  ;;  %2627 = vmatpush.msrb.mxu0 %v2290_v48  ;;  %v1968_v36 = vadd.f32 %v1967_v51, %v1755_v55 }
 0x195   : > { %v5483_v23 = vpop.f32.mrf.mxu3  ;;  %v5485_v26 = vpop.f32.mrf.mxu0  ;;  %2665 = vmatpush.msrb.mxu2 %v2324_v27  ;;  %2685 = vmatpush.msrb.mxu3 %v2340_v52  ;;  %v5676_v59 = vadd.f32 %v5465_v9, %v5463_v15  ;;  %v2305_v9 = vld [vmem:[%s5879_s6 + $0x6b8] sm:$0xff]  ;;  %v2319_v52 = vld [vmem:[%s5879_s6 + $0x728] sm:$0xff] }
 0x196   : > { %v5502_v37 = vpop.f32.mrf.mxu1  ;;  %v5615_v22 = vadd.f32 %v5485_v26, %v5445_v38  ;;  %v1740_v26 = vmax.f32 %v5575_v54, 0.0  ;;  %2645 = vmatpush.msrb.mxu1 %v2308_v32  ;;  %2628 = vmatpush.msrb.mxu0 %v2289_v49  ;;  %v5684_v54 = vadd.f32 %v5483_v23, %v5477_v21  ;;  %v1741_v23 = vmax.f32 %v5651_v0, 0.0  ;;  %v2284_v49 = vld [vmem:[%s5879_s6 + $0x610] sm:$0xff] }
 0x197   : > { %v5630_v43 = vadd.f32 %v5502_v37, %v5451_v8  ;;  %v2307_v37 = vld [vmem:[%s5879_s6 + $0x6c8] sm:$0xff]  ;;  %2666 = vmatpush.msrb.mxu2 %v2323_v47  ;;  %2686 = vmatpush.msrb.mxu3 %v2339_v31  ;;  %v2318_v47 = vld [vmem:[%s5879_s6 + $0x720] sm:$0xff] }
 0x198   : > { %v1771_v57 = vmax.f32 %v5615_v22, 0.0  ;;  %2646 = vmatpush.msrb.mxu1 %v2307_v37  ;;  %v1980_v60 = vadd.f32 %v1979_v45, %v1740_v26  ;;  %2629 = vmatpush.msrb.mxu0 %v2288_v50  ;;  %v2285_v22 = vld [vmem:[%s5879_s6 + $0x618] sm:$0xff]  ;;  %v1758_v13 = vmax.f32 %v5684_v54, 0.0  ;;  %v1993_v44 = vadd.f32 %v1992_v6, %v1741_v23  ;;  %v2302_v37 = vld [vmem:[%s5879_s6 + $0x6a0] sm:$0xff] }
 0x199   : > { %v1772_v61 = vmax.f32 %v5630_v43, 0.0  ;;  %2667 = vmatpush.msrb.mxu2 %v2322_v39  ;;  %2687 = vmatpush.msrb.mxu3 %v2338_v7  ;;  %v2739_v54 = vperm.slane %v5549_v41, 0  ;;  %v2740_v23 = vperm.slane %v5549_v41, 1 }
 0x19a   : > { %2647 = vmatpush.msrb.mxu1 %v2306_v28  ;;  %v1981_v17 = vadd.f32 %v1980_v60, %v1756_v58  ;;  %2630 = vmatpush.msrb.mxu0 %v2287_v24  ;;  %v2334_v58 = vld [vmem:[%s5879_s6 + $0x7a0] sm:$0xff]  ;;  %v2333_v60 = vld [vmem:[%s5879_s6 + $0x798] sm:$0xff] }
 0x19b   : > { %2668 = vmatpush.msrb.mxu2 %v2321_v35  ;;  %2688 = vmatpush.msrb.mxu3 %v2337_v2  ;;  %v2300_v35 = vld [vmem:[%s5879_s6 + $0x690] sm:$0xff] }
 0x19c   : > { %v5589_v34 = vpop.f32.mrf.mxu2  ;;  %2648 = vmatpush.msrb.mxu1 %v2305_v9  ;;  %v1982_v32 = vadd.f32 %v1981_v17, %v1772_v61  ;;  %2631 = vmatpush.msrb.mxu0 %v2286_v25  ;;  %v2316_v2 = vld [vmem:[%s5879_s6 + $0x710] sm:$0xff]  ;;  %v2299_v25 = vld [vmem:[%s5879_s6 + $0x688] sm:$0xff] }
 0x19d   : > { %v5606_v56 = vpop.f32.mrf.mxu3  ;;  %v1587_v12 = vpop.f32.mrf.mxu0  ;;  %v5699_v18 = vadd.f32 %v5589_v34, %v5463_v15  ;;  %v1742_v34 = vmax.f32 %v5662_v53, 0.0  ;;  %2669 = vmatpush.msrb.mxu2 %v2320_v11  ;;  %2689 = vmatpush.msrb.mxu3 %v2336_v46  ;;  %v2301_v53 = vld [vmem:[%s5879_s6 + $0x698] sm:$0xff]  ;;  %v2331_v11 = vld [vmem:[%s5879_s6 + $0x788] sm:$0xff]  ;;  %v2314_v46 = vld [vmem:[%s5879_s6 + $0x700] sm:$0xff] }
 0x19e   : > { %v1616_v10 = vpop.f32.mrf.mxu1  ;;  %v5638_v40 = vadd.f32 %v1587_v12, %v5445_v38  ;;  %v1969_v12 = vadd.f32 %v1968_v36, %v1771_v57  ;;  %v1672_v48 = vadd.f32 %v5606_v56, %v5477_v21  ;;  %2649 = vmatpush.msrb.mxu1 %v2304_v14  ;;  %2632 = vmatpush.msrb.mxu0 %v2285_v22  ;;  %v2317_v57 = vld [vmem:[%s5879_s6 + $0x718] sm:$0xff]  ;;  %v2315_v14 = vld [vmem:[%s5879_s6 + $0x708] sm:$0xff]  ;;  %v2330_v22 = vld [vmem:[%s5879_s6 + $0x780] sm:$0xff] }
 0x19f   : > { %v5655_v33 = vadd.f32 %v1616_v10, %v5451_v8  ;;  %v1757_v10 = vmax.f32 %v5676_v59, 0.0  ;;  %v1773_v20 = vmax.f32 %v5699_v18, 0.0  ;;  %v2006_v31 = vadd.f32 %v2005_v62, %v1742_v34  ;;  %2670 = vmatpush.msrb.mxu2 %v2319_v52  ;;  %v2282_v59 = vld [vmem:[%s5879_s6 + $0x600] sm:$0xff] }
 0x1a0   : > { %v1787_v63 = vmax.f32 %v5638_v40, 0.0  ;;  %v1774_v45 = vmax.f32 %v1672_v48, 0.0  ;;  %2633 = vmatpush.msrb.mxu0 %v2284_v49 }
 0x1a1   : > { %v1788_v3 = vmax.f32 %v5655_v33, 0.0  ;;  %v2283_v33 = vld [vmem:[%s5879_s6 + $0x608] sm:$0xff]  ;;  %v1994_v50 = vadd.f32 %v1993_v44, %v1757_v10  ;;  %v2007_v28 = vadd.f32 %v2006_v31, %v1758_v13  ;;  %2671 = vmatpush.msrb.mxu2 %v2318_v47  ;;  %v2771_v10 = vsel %vm2047_vm0, %v2739_v54, 0.0 }
 0x1a2   : > { %v1970_v29 = vadd.f32 %v1969_v12, %v1787_v63  ;;  %2634 = vmatpush.msrb.mxu0 %v2283_v33 }
 0x1a3   : > { %v1983_v55 = vadd.f32 %v1982_v32, %v1788_v3  ;;  %v1995_v61 = vadd.f32 %v1994_v50, %v1773_v20  ;;  %v2008_v63 = vadd.f32 %v2007_v28, %v1774_v45  ;;  %2672 = vmatpush.msrb.mxu2 %v2317_v57  ;;  %v2772_v32 = vsel %vm2047_vm0, %v2740_v23, 0.0 }
 0x1a4   : > { %v1645_v1 = vpop.f32.mrf.mxu2  ;;  %2635 = vmatpush.msrb.mxu0 %v2282_v59  ;;  %v2742_v45 = vperm.slane %v5549_v41, 3  ;;  %v2743_v28 = vperm.slane %v5549_v41, 4 }
 0x1a5   : > { %v1674_v42 = vpop.f32.mrf.mxu3  ;;  %v1589_v5 = vpop.f32.mrf.mxu0  ;;  %v1646_v27 = vadd.f32 %v1645_v1, %v5463_v15  ;;  %2673 = vmatpush.msrb.mxu2 %v2316_v2 }
 0x1a6   : > { %v1590_v16 = vadd.f32 %v1589_v5, %v5445_v38  ;;  %v1618_v19 = vpop.f32.mrf.mxu1  ;;  %v2303_v38 = vld [vmem:[%s5879_s6 + $0x6a8] sm:$0xff]  ;;  %v1675_v26 = vadd.f32 %v1674_v42, %v5477_v21 }
 0x1a7   : > { %v1619_v56 = vadd.f32 %v1618_v19, %v5451_v8  ;;  %v2335_v8 = vld [vmem:[%s5879_s6 + $0x7a8] sm:$0xff]  ;;  %2650 = vmatpush.msrb.mxu1 %v2303_v38  ;;  %v1789_v4 = vmax.f32 %v1646_v27, 0.0  ;;  %2674 = vmatpush.msrb.mxu2 %v2315_v14  ;;  %v2298_v19 = vld [vmem:[%s5879_s6 + $0x680] sm:$0xff]  ;;  %v2746_v14 = vperm.slane %v5549_v41, 7 }
 0x1a8   : > { %v1803_v43 = vmax.f32 %v1590_v16, 0.0  ;;  %2690 = vmatpush.msrb.mxu3 %v2335_v8  ;;  %v1790_v39 = vmax.f32 %v1675_v26, 0.0  ;;  %v5800_v38 = vld [vmem:[%s369_s23] sm:$0x1]  ;;  %v2773_v8 = vadd.f32 %v2772_v32, %v2771_v10 }
 0x1a9   : > { %v1804_v40 = vmax.f32 %v1619_v56, 0.0  ;;  %2651 = vmatpush.msrb.mxu1 %v2302_v37  ;;  %v1996_v17 = vadd.f32 %v1995_v61, %v1789_v4  ;;  %2675 = vmatpush.msrb.mxu2 %v2314_v46  ;;  %v2724_v13 = vmul.f32 %v5800_v38, %v5800_v38  ;;  %v2725_v26 = vld [vmem:[%s5878_s5] sm:$0x1] }
 0x1aa   : > { %v1971_v0 = vadd.f32 %v1970_v29, %v1803_v43  ;;  %2691 = vmatpush.msrb.mxu3 %v2334_v58  ;;  %v2009_v3 = vadd.f32 %v2008_v63, %v1790_v39  ;;  %v2741_v43 = vperm.slane %v5549_v41, 2  ;;  %v2776_v39 = vsel %vm2047_vm0, %v2742_v45, 0.0  ;;  %v2083_v45 = vld [vmem:[%s5877_s4 + $0x8] sm:$0xff] }
 0x1ab   : > { %v1984_v51 = vadd.f32 %v1983_v55, %v1804_v40  ;;  %2652 = vmatpush.msrb.mxu1 %v2301_v53  ;;  %v2726_v55 = vmul.f32 %v2725_v26, %v2724_v13 }
 0x1ac   : > { %v1972_v7 = vrot.slane %v1971_v0, 4  ;;  %v1647_v6 = vpop.f32.mrf.mxu2  ;;  %2692 = vmatpush.msrb.mxu3 %v2333_v60 }
 0x1ad   : > { %v1985_v24 = vrot.slane %v1984_v51, 4  ;;  %v1648_v62 = vadd.f32 %v1647_v6, %v5463_v15  ;;  %v1676_v36 = vpop.f32.mrf.mxu3  ;;  %v2332_v15 = vld [vmem:[%s5879_s6 + $0x790] sm:$0xff]  ;;  %2653 = vmatpush.msrb.mxu1 %v2300_v35  ;;  %v2728_v47 = vsel %vm2727_vm7, %v2726_v55, 0.0 }
 0x1ae   : > { %v1973_v1 = vadd.f32 %v1972_v7, %v1971_v0  ;;  %v1677_v9 = vadd.f32 %v1676_v36, %v5477_v21  ;;  %2693 = vmatpush.msrb.mxu3 %v2332_v15  ;;  %2729 = vadd.xlane.f32.xlu0 %v2728_v47  ;;  %v2774_v0 = vsel %vm2047_vm0, %v2741_v43, 0.0  ;;  %v2778_v36 = vsel %vm2047_vm0, %v2743_v28, 0.0 }
 0x1af   : > { %v1986_v18 = vadd.f32 %v1985_v24, %v1984_v51  ;;  %v1805_v21 = vmax.f32 %v1648_v62, 0.0  ;;  %2654 = vmatpush.msrb.mxu1 %v2299_v25  ;;  %v2775_v4 = vadd.f32 %v2774_v0, %v2773_v8  ;;  %v2744_v62 = vperm.slane %v5549_v41, 5  ;;  %v2734_v25 = vld [vmem:[%s5880_s7 + $0x8] sm:$0xff] }
 0x1b0   : > { %v1974_v42 = vrot.slane %v1973_v1, 2  ;;  %v1806_v5 = vmax.f32 %v1677_v9, 0.0  ;;  %2694 = vmatpush.msrb.mxu3 %v2331_v11  ;;  %v2745_v15 = vperm.slane %v5549_v41, 6  ;;  %v2784_v41 = vsel %vm2047_vm0, %v2746_v14, 0.0 }
 0x1b1   : > { %v1987_v34 = vrot.slane %v1986_v18, 2  ;;  %v1997_v12 = vadd.f32 %v1996_v17, %v1805_v21  ;;  %2655 = vmatpush.msrb.mxu1 %v2298_v19  ;;  %v2777_v59 = vadd.f32 %v2776_v39, %v2775_v4  ;;  %v2780_v23 = vsel %vm2047_vm0, %v2744_v62, 0.0 }
 0x1b2   : > { %v1975_v48 = vadd.f32 %v1974_v42, %v1973_v1  ;;  %v2010_v16 = vadd.f32 %v2009_v3, %v1806_v5  ;;  %2695 = vmatpush.msrb.mxu3 %v2330_v22  ;;  %v2089_v5 = vld [vmem:[%s5877_s4 + $0x38] sm:$0xff]  ;;  %v2782_v11 = vsel %vm2047_vm0, %v2745_v15, 0.0 }
 0x1b3   : > { %v1988_v27 = vadd.f32 %v1987_v34, %v1986_v18  ;;  %v1998_v56 = vrot.slane %v1997_v12, 4  ;;  %v2779_v1 = vadd.f32 %v2778_v36, %v2777_v59  ;;  %v2088_v34 = vld [vmem:[%s5877_s4 + $0x30] sm:$0xff] }
 0x1b4   : > { %v2011_v52 = vrot.slane %v2010_v16, 4  ;;  %v1976_v49 = vrot.slane %v1975_v48, 1 }
 0x1b5   : > { %v1999_v29 = vadd.f32 %v1998_v56, %v1997_v12  ;;  %v1989_v44 = vrot.slane %v1988_v27, 1  ;;  %v2781_v17 = vadd.f32 %v2780_v23, %v2779_v1 }
 0x1b6   : > { %v2012_v20 = vadd.f32 %v2011_v52, %v2010_v16  ;;  %v1977_v58 = vadd.f32 %v1976_v49, %v1975_v48  ;;  %v2087_v16 = vld [vmem:[%s5877_s4 + $0x28] sm:$0xff]  ;;  %v2085_v49 = vld [vmem:[%s5877_s4 + $0x18] sm:$0xff] }
 0x1b7   : > { %v2000_v40 = vrot.slane %v1999_v29, 2  ;;  %v1990_v33 = vadd.f32 %v1989_v44, %v1988_v27  ;;  %v2783_v12 = vadd.f32 %v2782_v11, %v2781_v17 }
 0x1b8   : > { %v2013_v37 = vrot.slane %v2012_v20, 2  ;;  %v2043_v7 = vrot.slane %v1977_v58, 4 }
 0x1b9   : > { %v2001_v31 = vadd.f32 %v2000_v40, %v1999_v29  ;;  %v2044_v6 = vrot.slane %v1990_v33, 3  ;;  %v2785_v22 = vadd.f32 %v2784_v41, %v2783_v12  ;;  %v2086_v29 = vld [vmem:[%s5877_s4 + $0x20] sm:$0xff]  ;;  %v2084_v40 = vld [vmem:[%s5877_s4 + $0x10] sm:$0xff] }
 0x1ba   : > { %v2014_v50 = vadd.f32 %v2013_v37, %v2012_v20 }
 0x1bb   : > { %v2002_v51 = vrot.slane %v2001_v31, 1  ;;  %v2064_v54 = vsel %vm2053_vm3, %v2043_v7, %v2044_v6 }
 0x1bc   : > { %v2015_v53 = vrot.slane %v2014_v50, 1 }
 0x1bd   : > { %v2003_v57 = vadd.f32 %v2002_v51, %v2001_v31 }
 0x1be   : > { %v2016_v60 = vadd.f32 %v2015_v53, %v2014_v50  ;;  %v2082_v50 = vld [vmem:[%s5877_s4] sm:$0xff] }
 0x1bf   : > { %v2045_v61 = vrot.slane %v2003_v57, 2 }
 0x1c0   : > { %v2046_v24 = vrot.slane %v2016_v60, 1 }
 0x1c2   : > { %v2065_v63 = vsel %vm2055_vm4, %v2045_v61, %v2046_v24 }
 0x1c3   : > { %v2066_v9 = vsel %vm2057_vm5, %v2064_v54, %v2065_v63 }
 0x1c4   : > { %v2067_v35 = vsel %vm2059_vm6, %v5333_v30, %v2066_v9 }
 0x1c5   : > { %v2080_v2 = vmul.f32 0.015625, %v2067_v35 }
 0x1c6   : > { %v2397_v60 = vpop.f32.mrf.mxu0  ;;  %v2417_v59 = vpop.f32.mrf.mxu1 }
 0x1c7   : > { %v2356_v18 = vperm.slane %v2080_v2, 0  ;;  %v2357_v21 = vperm.slane %v2080_v2, 1  ;;  %v2358_v3 = vperm.slane %v2080_v2, 2  ;;  %v2359_v42 = vperm.slane %v2080_v2, 3 }
 0x1c8   : > { %v2732_v30 = vmul.f32 %v2080_v2, %v2080_v2  ;;  %v2360_v10 = vperm.slane %v2080_v2, 4  ;;  %v2361_v32 = vperm.slane %v2080_v2, 5  ;;  %v2362_v52 = vperm.slane %v2080_v2, 6 }
 0x1c9   : > { %2556 = vmatmul.f32.vlgmr.msra.gmra.mxu0 %v2356_v18  ;;  %2576 = vmatmul.f32.vlgmr.msra.gmra.mxu1 %v2357_v21  ;;  %v2363_v13 = vperm.slane %v2080_v2, 7  ;;  %v2418_v24 = vadd.f32 %v2417_v59, %v2397_v60 }
 0x1ca   : > { %2596 = vmatmul.f32.vlgmr.msra.gmra.mxu2 %v2358_v3  ;;  %2616 = vmatmul.f32.vlgmr.msra.gmra.mxu3 %v2359_v42  ;;  %v2736_v48 = vmul.f32 %v2734_v25, %v2732_v30 }
 0x1cb   : > { %2712 = vmatpush.msra.mxu0 %v2089_v5 }
 0x1cc   : > { %v2747_v19 = vperm.slane %v2736_v48, 0  ;;  %v2748_v46 = vperm.slane %v2736_v48, 1  ;;  %v2749_v27 = vperm.slane %v2736_v48, 2  ;;  %v2750_v43 = vperm.slane %v2736_v48, 3 }
 0x1cd   : > { %2713 = vmatpush.msra.mxu0 %v2088_v34  ;;  %v2751_v20 = vperm.slane %v2736_v48, 4  ;;  %v2752_v47 = vperm.slane %v2736_v48, 5  ;;  %v2753_v58 = vperm.slane %v2736_v48, 6  ;;  %v2754_v51 = vperm.slane %v2736_v48, 7  ;;  %v2437_v61 = vpop.f32.mrf.mxu2  ;;  %v2457_v36 = vpop.f32.mrf.mxu3 }
 0x1ce   : > { %v2786_v56 = vsel %vm2047_vm0, %v2747_v19, 0.0  ;;  %v2788_v8 = vsel %vm2047_vm0, %v2748_v46, 0.0  ;;  %v2790_v55 = vsel %vm2047_vm0, %v2749_v27, 0.0  ;;  %v2792_v31 = vsel %vm2047_vm0, %v2750_v43, 0.0  ;;  %v2477_v63 = vpop.f32.mrf.mxu0  ;;  %v2497_v9 = vpop.f32.mrf.mxu1  ;;  %v3593_v27 = vld [vmem:[#allocation3] ss:$0 sm:$0xff] }
 0x1cf   : > { %2714 = vmatpush.msra.mxu0 %v2087_v16  ;;  %v2787_v26 = vadd.f32 %v2786_v56, %v2785_v22  ;;  %v2794_v33 = vsel %vm2047_vm0, %v2751_v20, 0.0  ;;  %v2796_v53 = vsel %vm2047_vm0, %v2752_v47, 0.0  ;;  %v2798_v28 = vsel %vm2047_vm0, %v2753_v58, 0.0 }
 0x1d0   : > { %v2800_v7 = vsel %vm2047_vm0, %v2754_v51, 0.0  ;;  %v2438_v62 = vadd.f32 %v2437_v61, %v2418_v24 }
 0x1d1   : > { %2636 = vmatmul.f32.vlgmr.msrb.gmra.mxu0 %v2360_v10  ;;  %2656 = vmatmul.f32.vlgmr.msrb.gmra.mxu1 %v2361_v32  ;;  %v2789_v44 = vadd.f32 %v2788_v8, %v2787_v26 }
 0x1d2   : > { %2676 = vmatmul.f32.vlgmr.msrb.gmra.mxu2 %v2362_v52  ;;  %2696 = vmatmul.f32.vlgmr.msrb.gmra.mxu3 %v2363_v13  ;;  %v2458_v54 = vadd.f32 %v2457_v36, %v2438_v62 }
 0x1d3   : > { %2715 = vmatpush.msra.mxu0 %v2086_v29  ;;  %v2791_v37 = vadd.f32 %v2790_v55, %v2789_v44 }
 0x1d4   : > { %v2478_v1 = vadd.f32 %v2477_v63, %v2458_v54 }
 0x1d5   : > { %2716 = vmatpush.msra.mxu0 %v2085_v49  ;;  %v2793_v0 = vadd.f32 %v2792_v31, %v2791_v37  ;;  %v2517_v2 = vpop.f32.mrf.mxu2  ;;  %v2537_v23 = vpop.f32.mrf.mxu3 }
 0x1d6   : > { %v2498_v35 = vadd.f32 %v2497_v9, %v2478_v1 }
 0x1d7   : > { %2717 = vmatpush.msra.mxu0 %v2084_v40  ;;  %v2795_v4 = vadd.f32 %v2794_v33, %v2793_v0 }
 0x1d8   : > { %v2518_v15 = vadd.f32 %v2517_v2, %v2498_v35 }
 0x1d9   : > { %2718 = vmatpush.msra.mxu0 %v2083_v45  ;;  %v2797_v57 = vadd.f32 %v2796_v53, %v2795_v4 }
 0x1db   : > { %2719 = vmatpush.msra.mxu0 %v2082_v50  ;;  %v2799_v39 = vadd.f32 %v2798_v28, %v2797_v57 }
 0x1dc   : > { %3431 = vmatmul.msk.f32.vlgmr.msra.gmra.mxu0 %vm2700_vm8, %v5800_v38  ;;  %v2538_v38 = vadd.f32 %v2537_v23, %v2518_v15 }
 0x1dd   : > { %v2801_v6 = vadd.f32 %v2800_v7, %v2799_v39 }
 0x1df   : > { %2802 = vadd.xlane.f32.xlu0 %v2801_v6 }
 0x221   : > { %v2730_v56 = vpop.xlane.xlu0 %2729 }
 0x246   : > { %v2557_v17 = vpop.f32.mrf.mxu0  ;;  %v2577_v21 = vpop.f32.mrf.mxu1 }
 0x247   : > { %v2558_v18 = vadd.f32 %v2557_v17, %v2538_v38 }
 0x249   : > { %v2578_v3 = vadd.f32 %v2577_v21, %v2558_v18 }
 0x24d   : > { %v2597_v42 = vpop.f32.mrf.mxu2  ;;  %v2617_v5 = vpop.f32.mrf.mxu3 }
 0x24e   : > { %v2598_v25 = vadd.f32 %v2597_v42, %v2578_v3  ;;  %v2637_v14 = vpop.f32.mrf.mxu0  ;;  %v2657_v34 = vpop.f32.mrf.mxu1 }
 0x250   : > { %v2618_v30 = vadd.f32 %v2617_v5, %v2598_v25 }
 0x252   : > { %v2638_v11 = vadd.f32 %v2637_v14, %v2618_v30  ;;  %v2803_v52 = vpop.xlane.xlu0 %2802 }
 0x253   : > { %v2804_v29 = vadd.f32 %v2803_v52, %v2730_v56 }
 0x254   : > { %v2658_v12 = vadd.f32 %v2657_v34, %v2638_v11 }
 0x255   : > { %v2677_v48 = vpop.f32.mrf.mxu2  ;;  %v2697_v19 = vpop.f32.mrf.mxu3 }
 0x256   : > { %v2678_v16 = vadd.f32 %v2677_v48, %v2658_v12 }
 0x258   : > { %v2698_v46 = vadd.f32 %v2697_v19, %v2678_v16 }
 0x259   : > { %v2721_v41 = vpop.f32.mrf.mxu0 }
 0x25a   : > { %v2722_v22 = vadd.f32 %v2721_v41, %v2698_v46 }
 0x25c   : > { %v2805_v10 = vmul.f32 %v2722_v22, %v2722_v22 }
 0x25e   : > { %v2807_v32 = vsel %vm2806_vm9, %v2805_v10, 0.0 }
 0x25f   : > { %2808 = vadd.xlane.f32.xlu1 %v2807_v32 }
 0x278   : > { %2814 = vrot.lane.b32.xlu1 %v3593_v27, %s3622_s22 }
 0x2d2   : > { %v2809_v13 = vpop.xlane.xlu1 %2808 }
 0x2d3   : > { %v2810_v26 = vsub.f32 %v2809_v13, %v2804_v29 }
 0x2d5   : > { %v2818_v8 = vmul.f32 0.5, %v2810_v26 }
 0x2ea   : > { %v2815_v43 = vpop.permute.xlu1 %2814 }
 0x2eb   : > { %v2817_v49 = vadd.f32 %v2815_v43, %v2722_v22 }
 0x2ed   : > { %v2819_v44 = vadd.f32 %v2818_v8, %v2817_v49 }
 0x2ef   : > { %2821 = vrot.lane.b32.xlu2 %v2819_v44, %s3623_s24 }
 0x349   : > { %v2822_v20 = vpop.permute.xlu2 %2821 }
 0x34a   : > { %2825 = vst.msk [vmem:[%s372_s27] sm:$0x1] %vm2824_vm10, %v2822_v20 }
 0x34b PF: > { %s21_s13 = sadd.s32 1, %s3620_s13   ;;  %s5883_s11 = smov %s3616_s12 }
 0x34c   : > { %p18_p5 = scmp.ge.s32.totalorder %s21_s13, 4   ;;  %s5884_s12 = smov %s5886_s8 }
 0x34e   :  { %20 = sbr.rel (!%p18_p5) target bundleno = 3 (0x3), region = 97 }

</bundles_post_ra>
